<compile_context>
chip_gen: v7x
topology: tpu7x:2x2x1
jax: 0.10.0
libtpu: 0.0.40
codegen_flags: <defaults>
</compile_context>

<pallas_src>
import functools

import jax
import jax.numpy as jnp
from jax.experimental import pallas as pl
from jax.experimental.pallas import tpu as pltpu

LEAKY_SLOPE = 0.2
BN_EPS = 1e-5

# Multiple of both the f32 (8) and bf16 (16) sublane tilings so leading-dim
# collapses/splits inside kernels stay layout-free.
_ROW_TILE = 16


def _default_vmem_limit():
    try:
        cap = int(pltpu.get_tpu_info().vmem_capacity_bytes)
        if cap > 0:
            return int(cap * 0.6)          # ~38 MiB on v7x, ~77 MiB on v5e/v6e
    except Exception:
        pass
    return 48 * 1024 * 1024


VMEM_LIMIT = _default_vmem_limit()


def _tensorcores_per_chip():
    """Best-effort: 2 on megacore parts (v4/v5p/v7x), else 1."""
    try:
        kind = jax.devices()[0].device_kind.lower()
    except Exception:
        return 1
    if ("v7" in kind) or ("v4" in kind) or ("v5p" in kind) or ("v5 p" in kind):
        return 2
    return 1


def _round_up(x, m):
    return ((x + m - 1) // m) * m


def _tile_and_pad(n, pref):
    """Pick a row tile (multiple of _ROW_TILE, <= pref) and the padded extent.

    Uses a near-even split so padding waste stays small for awkward sizes,
    e.g. n=2500 -> tile 848, padded 2544 (instead of full-N or 8-row tiles)."""
    n_min = _round_up(max(n, 1), _ROW_TILE)
    if n_min <= pref:
        return n_min, n_min
    steps = -(-n // pref)                       # ceil(n / pref)
    t = _round_up(-(-n // steps), _ROW_TILE)    # near-even split, row-aligned
    return t, t * steps


def _apply_act(y, act):
    if act == "relu":
        return jnp.maximum(y, 0.0)
    if act == "leaky_relu":
        return jnp.where(y >= 0.0, y, LEAKY_SLOPE * y)
    return y


# ---------------------------------------------------------------------------
# Kernel 1: fused 3-layer pointwise MLP (+folded BN) + max over points.
#   x:(B,N,C0) -> per point C0->64->128->1024 -> max over N -> (B,1024)
# Grid: (B, cout_tiles, N_tiles); point axis last + "arbitrary".
# ---------------------------------------------------------------------------
def _mlp3_max_kernel(x_ref, w1_ref, s1_ref, w2_ref, s2_ref, w3_ref, s3_ref,
                     o_ref, acc_ref, *, acts, valid_n):
    n = pl.program_id(2)

    @pl.when(n == 0)
    def _():
        acc_ref[...] = jnp.full(acc_ref.shape, -jnp.inf, acc_ref.dtype)

    h = jnp.dot(x_ref[0], w1_ref[...], preferred_element_type=jnp.float32)
    h = _apply_act(h + s1_ref[...], acts[0])
    h = jnp.dot(h.astype(w2_ref.dtype), w2_ref[...],
                preferred_element_type=jnp.float32)
    h = _apply_act(h + s2_ref[...], acts[1])
    h = jnp.dot(h.astype(w3_ref.dtype), w3_ref[...],
                preferred_element_type=jnp.float32)
    h = _apply_act(h + s3_ref[...], acts[2])

    tn, cout = h.shape
    if valid_n is not None:                         # mask padded point rows
        row = jax.lax.broadcasted_iota(jnp.int32, (tn, 1), 0) + n * tn
        h = jnp.where(row < valid_n, h, -jnp.inf)

    # Per-step reduction stays on the VPU (max across 8-row slabs); the single
    # cross-sublane (XLU) 8->1 reduce happens only in the epilogue.
    h8 = jnp.max(h.reshape(tn // 8, 8, cout), axis=0)
    acc_ref[...] = jnp.maximum(acc_ref[...], h8)

    @pl.when(n == pl.num_programs(2) - 1)
    def _():
        o_ref[0] = jnp.max(acc_ref[...], axis=0, keepdims=True).astype(o_ref.dtype)


def fused_mlp3_max(x_bnc, l1, l2, l3, acts, tn_pref=1024):
    B, N, C0 = x_bnc.shape
    (w1, s1), (w2, s2), (w3, s3) = l1, l2, l3
    cout = w3.shape[1]

    tn, n_pad = _tile_and_pad(N, tn_pref)
    if n_pad != N:
        x_bnc = jnp.pad(x_bnc, ((0, 0), (0, n_pad - N), (0, 0)))
    valid_n = N if n_pad != N else None

    # Channel-split parallel axis: gives both TensorCores work on megacore
    # parts (v7x) when B is tiny; skipped on single-core chips.
    ct = 2 if (_tensorcores_per_chip() > 1 and B < 4 and cout % 256 == 0) else 1
    tc = cout // ct

    out = pl.pallas_call(
        functools.partial(_mlp3_max_kernel, acts=acts, valid_n=valid_n),
        out_shape=jax.ShapeDtypeStruct((B, 1, cout), jnp.float32),
        grid=(B, ct, n_pad // tn),
        in_specs=[
            pl.BlockSpec((1, tn, C0), lambda b, c, n: (b, n, 0)),
            pl.BlockSpec(w1.shape, lambda b, c, n: (0, 0)),
            pl.BlockSpec(s1.shape, lambda b, c, n: (0, 0)),
            pl.BlockSpec(w2.shape, lambda b, c, n: (0, 0)),
            pl.BlockSpec(s2.shape, lambda b, c, n: (0, 0)),
            pl.BlockSpec((w3.shape[0], tc), lambda b, c, n: (0, c)),
            pl.BlockSpec((1, tc), lambda b, c, n: (0, c)),
        ],
        out_specs=pl.BlockSpec((1, 1, tc), lambda b, c, n: (b, 0, c)),
        scratch_shapes=[pltpu.VMEM((8, tc), jnp.float32)],
        compiler_params=pltpu.CompilerParams(
            dimension_semantics=("parallel", "parallel", "arbitrary"),
            vmem_limit_bytes=VMEM_LIMIT),
    )(x_bnc, w1, s1, w2, s2, w3, s3)
    return out.reshape(B, cout)


# ---------------------------------------------------------------------------
# Kernel 2: fused edge-conv (conv4/conv5) + BN + LeakyReLU + max over k.
#   out[i] = max_j leaky( feat[j,i] @ W_top + center[i] @ (W_bot - W_top) + shift )
# k is folded into the block: one (k*tm, C) matmul per grid step, grid = rows.
# ---------------------------------------------------------------------------
def _edge_conv_max_kernel(feat_ref, ctr_ref, wt_ref, wcb_ref, shift_ref, o_ref):
    k, tm, cin = feat_ref.shape
    cout = o_ref.shape[-1]
    q = jnp.dot(ctr_ref[...], wcb_ref[...],
                preferred_element_type=jnp.float32) + shift_ref[...]
    y = jnp.dot(feat_ref[...].reshape(k * tm, cin), wt_ref[...],
                preferred_element_type=jnp.float32)
    y = y.reshape(k, tm, cout) + q[None]
    y = jnp.where(y >= 0.0, y, LEAKY_SLOPE * y)            # LeakyReLU(0.2)
    o_ref[...] = jnp.max(y, axis=0).astype(o_ref.dtype)


def edge_conv_max(feat_kmc, center_mc, layer, out_dtype, tm_pref=1024):
    w_top, w_cb, shift = layer
    k, M, C = feat_kmc.shape
    cout = w_top.shape[1]
    tm, m_pad = _tile_and_pad(M, tm_pref)
    if m_pad != M:
        feat_kmc = jnp.pad(feat_kmc, ((0, 0), (0, m_pad - M), (0, 0)))
        center_mc = jnp.pad(center_mc, ((0, m_pad - M), (0, 0)))
    out = pl.pallas_call(
        _edge_conv_max_kernel,
        out_shape=jax.ShapeDtypeStruct((m_pad, cout), out_dtype),
        grid=(m_pad // tm,),
        in_specs=[
            pl.BlockSpec((k, tm, C), lambda i: (0, i, 0)),
            pl.BlockSpec((tm, C), lambda i: (i, 0)),
            pl.BlockSpec((C, cout), lambda i: (0, 0)),
            pl.BlockSpec((C, cout), lambda i: (0, 0)),
            pl.BlockSpec((1, cout), lambda i: (0, 0)),
        ],
        out_specs=pl.BlockSpec((tm, cout), lambda i: (i, 0)),
        compiler_params=pltpu.CompilerParams(
            dimension_semantics=("parallel",),
            vmem_limit_bytes=VMEM_LIMIT),
    )(feat_kmc, center_mc, w_top, w_cb, shift)
    return out[:M] if m_pad != M else out


# ---------------------------------------------------------------------------
# Kernel 3: row-tiled negative pairwise squared distances (for kNN), bf16 out.
# ---------------------------------------------------------------------------
def _pdist_kernel(q_ref, xf_ref, sqx_ref, o_ref):
    q = q_ref[0]                                                    # (tq, C)
    g = jax.lax.dot_general(q, xf_ref[0], (((1,), (1,)), ((), ())),
                            preferred_element_type=jnp.float32)     # (tq, N)
    qf = q.astype(jnp.float32)
    sq_q = jnp.sum(qf * qf, axis=1, keepdims=True)                  # (tq, 1)
    o_ref[0] = (2.0 * g - sq_q - sqx_ref[0]).astype(o_ref.dtype)


def pairwise_neg_sqdist(x_bnc, tq_pref=512):
    B, N, C = x_bnc.shape
    xb = x_bnc.astype(jnp.bfloat16)
    sqx = jnp.sum(jnp.square(x_bnc.astype(jnp.float32)), axis=-1)[:, None, :]
    tq, nq_pad = _tile_and_pad(N, tq_pref)
    q = xb if nq_pad == N else jnp.pad(xb, ((0, 0), (0, nq_pad - N), (0, 0)))
    pd = pl.pallas_call(
        _pdist_kernel,
        out_shape=jax.ShapeDtypeStruct((B, nq_pad, N), jnp.bfloat16),
        grid=(B, nq_pad // tq),
        in_specs=[
            pl.BlockSpec((1, tq, C), lambda b, i: (b, i, 0)),
            pl.BlockSpec((1, N, C), lambda b, i: (b, 0, 0)),
            pl.BlockSpec((1, 1, N), lambda b, i: (b, 0, 0)),
        ],
        out_specs=pl.BlockSpec((1, tq, N), lambda b, i: (b, i, 0)),
        compiler_params=pltpu.CompilerParams(
            dimension_semantics=("parallel", "parallel"),
            vmem_limit_bytes=VMEM_LIMIT),
    )(q, xb, sqx)
    return pd if nq_pad == N else pd[:, :N, :]


# ---------------------------------------------------------------------------
# Kernel 4: fused STN fully-connected head fc1->fc2->fc3 (one launch, M = B).
# ---------------------------------------------------------------------------
def _fc_head_kernel(x_ref, w1_ref, s1_ref, w2_ref, s2_ref, w3_ref, s3_ref, o_ref):
    h = jnp.dot(x_ref[...], w1_ref[...], preferred_element_type=jnp.float32)
    h = jnp.maximum(h + s1_ref[...], 0.0)
    h = jnp.dot(h.astype(w2_ref.dtype), w2_ref[...],
                preferred_element_type=jnp.float32)
    h = jnp.maximum(h + s2_ref[...], 0.0)
    h = jnp.dot(h.astype(w3_ref.dtype), w3_ref[...],
                preferred_element_type=jnp.float32)
    o_ref[...] = (h + s3_ref[...]).astype(o_ref.dtype)


def fused_fc_head(x, l1, l2, l3):
    (w1, s1), (w2, s2), (w3, s3) = l1, l2, l3
    B = x.shape[0]
    cout = w3.shape[1]
    return pl.pallas_call(
        _fc_head_kernel,
        out_shape=jax.ShapeDtypeStruct((B, cout), jnp.float32),
        grid=(1,),
        in_specs=[
            pl.BlockSpec(x.shape, lambda i: (0, 0)),
            pl.BlockSpec(w1.shape, lambda i: (0, 0)),
            pl.BlockSpec(s1.shape, lambda i: (0, 0)),
            pl.BlockSpec(w2.shape, lambda i: (0, 0)),
            pl.BlockSpec(s2.shape, lambda i: (0, 0)),
            pl.BlockSpec(w3.shape, lambda i: (0, 0)),
            pl.BlockSpec(s3.shape, lambda i: (0, 0)),
        ],
        out_specs=pl.BlockSpec((B, cout), lambda i: (0, 0)),
        compiler_params=pltpu.CompilerParams(
            dimension_semantics=("arbitrary",),
            vmem_limit_bytes=VMEM_LIMIT),
    )(x, w1, s1, w2, s2, w3, s3)


# ------------------------------ model pieces -------------------------------

def knn_indices(x_bnc, k):
    pd = pairwise_neg_sqdist(x_bnc)                    # (B, N, N) bf16, Pallas
    N = pd.shape[-1]
    # TODO(synk): neighbour top-k selection stays in XLA; approx_max_k is the
    # TPU-native custom call (exact top_k kept for tiny N where it is free).
    if N >= 128:
        return jax.lax.approx_max_k(pd, k)[1]          # (B, N, k)
    return jax.lax.top_k(pd.astype(jnp.float32), k)[1]


def gather_neighbors(x_flat, idx):
    """x_flat: (B*N, C), idx: (B, N, k) per-batch indices -> (k, B*N, C)."""
    B, N, k = idx.shape
    base = (jnp.arange(B, dtype=idx.dtype) * N)[:, None, None]
    flat = (idx + base).reshape(B * N, k).T            # (k, B*N)
    # TODO(synk): the data-dependent neighbour gather stays in XLA; fusing it
    # into the edge-conv kernel would need an in-kernel DMA gather via
    # scalar-prefetched indices.
    return jnp.take(x_flat, flat, axis=0)              # (k, B*N, C)


def stn3d_forward(x_bnc, p):
    B = x_bnc.shape[0]
    g = fused_mlp3_max(x_bnc.astype(jnp.bfloat16),
                       p["conv1"], p["conv2"], p["conv3"],
                       acts=("relu", "relu", "relu"))                # (B, 1024)
    h = fused_fc_head(g.astype(jnp.bfloat16),
                      p["fc1"], p["fc2"], p["fc3"])                  # (B, 9)
    iden = jnp.eye(3, dtype=jnp.float32).reshape(1, 9)
    return (h + iden).reshape(B, 3, 3)


def pointnetfeat_forward(x, p, k=20, global_feat=True):
    """x: (B, 3, N) float32, the torch NCW input."""
    B, _, N = x.shape
    x0_bnc = jnp.transpose(x, (0, 2, 1))                             # (B, N, 3)

    trans = stn3d_forward(x0_bnc, p["stn"])                          # (B, 3, 3)
    xt = jnp.einsum("bnc,bcd->bnd", x0_bnc, trans)                   # tiny bmm in XLA

    # Main trunk: conv1 -> conv2 -> conv3 (bn3, no relu) -> max over points.
    g = fused_mlp3_max(xt.astype(jnp.bfloat16),
                       p["conv1"], p["conv2"], p["conv3"],
                       acts=("relu", "relu", "none"))                # (B, 1024) f32

    # Edge conv 1: kNN on raw coords; conv4 + LeakyReLU + max over k (fused).
    x0_flat = x0_bnc.reshape(B * N, 3).astype(jnp.bfloat16)
    idx1 = knn_indices(x0_bnc, k)                                    # (B, N, k)
    feat1 = gather_neighbors(x0_flat, idx1)                          # (k, B*N, 3)
    x1 = edge_conv_max(feat1, x0_flat, p["conv4"], jnp.float32)      # (B*N, 64)

    # Edge conv 2: kNN on x1; conv5 + LeakyReLU + max over k (fused).
    x1_bnc = x1.reshape(B, N, 64)
    idx2 = knn_indices(x1_bnc, k)
    x1_b = x1.astype(jnp.bfloat16)
    feat2 = gather_neighbors(x1_b, idx2)                             # (k, B*N, 64)
    x2 = edge_conv_max(feat2, x1_b, p["conv5"], jnp.float32)         # (B*N, 64)

    trans_feat = None                                                # feature_transform=False

    if global_feat:
        return g, trans, trans_feat
    pointfeat_bcn = jnp.transpose(x2.reshape(B, N, 64), (0, 2, 1))   # (B, 64, N)
    g_rep = jnp.broadcast_to(g[:, :, None], (B, 1024, N))
    return jnp.concatenate([g_rep, pointfeat_bcn], axis=1), trans, trans_feat


# ------------------------------ parameter init ------------------------------

def init_params(key):
    kit = iter(jax.random.split(key, 64))

    def dense(cin, cout, has_bias=True, has_bn=True):
        w = jax.random.normal(next(kit), (cin, cout), jnp.float32) / jnp.sqrt(cin)
        bias = (0.05 * jax.random.normal(next(kit), (cout,), jnp.float32)
                if has_bias else jnp.zeros((cout,), jnp.float32))
        if has_bn:
            gamma = 1.0 + 0.1 * jax.random.normal(next(kit), (cout,), jnp.float32)
            beta = 0.1 * jax.random.normal(next(kit), (cout,), jnp.float32)
            mean = jnp.zeros((cout,), jnp.float32)   # inference running stats
            var = jnp.ones((cout,), jnp.float32)
            scale = gamma / jnp.sqrt(var + BN_EPS)
            shift = (bias - mean) * scale + beta
        else:
            scale = jnp.ones((cout,), jnp.float32)
            shift = bias
        # BN scale folded into the weights; only the shift is added in-kernel.
        w_folded = (w * scale[None, :]).astype(jnp.bfloat16)
        return (w_folded, shift.reshape(1, cout))

    def edge(cin2, cout):          # Conv2d(cin2, cout, 1, bias=False) + BN2d
        c = cin2 // 2
        w = jax.random.normal(next(kit), (cin2, cout), jnp.float32) / jnp.sqrt(cin2)
        gamma = 1.0 + 0.1 * jax.random.normal(next(kit), (cout,), jnp.float32)
        beta = 0.1 * jax.random.normal(next(kit), (cout,), jnp.float32)
        mean = jnp.zeros((cout,), jnp.float32)
        var = jnp.ones((cout,), jnp.float32)
        scale = gamma / jnp.sqrt(var + BN_EPS)
        shift = (-mean) * scale + beta
        wf = w * scale[None, :]
        w_top = wf[:c]                      # applied to gathered neighbour feature
        w_cb = wf[c:] - wf[:c]              # (W_bot - W_top), applied to center
        return (w_top.astype(jnp.bfloat16), w_cb.astype(jnp.bfloat16),
                shift.reshape(1, cout))

    stn = {
        "conv1": dense(3, 64),
        "conv2": dense(64, 128),
        "conv3": dense(128, 1024),
        "fc1": dense(1024, 512),
        "fc2": dense(512, 256),
        "fc3": dense(256, 9, has_bn=False),
    }
    return {
        "stn": stn,
        "conv1": dense(3, 64),
        "conv2": dense(64, 128),
        "conv3": dense(128, 1024),
        "conv4": edge(6, 64),
        "conv5": edge(128, 64),
    }


# ----------------------------------- main -----------------------------------

if __name__ == "__main__":
    pkey, xkey, x2key = jax.random.split(jax.random.PRNGKey(0), 3)
    params = init_params(pkey)

    B, N, K = 2, 32, 20                       # torch code requires N >= k
    x = jax.random.normal(xkey, (B, 3, N), jnp.float32)

    fwd_global = jax.jit(lambda xx, pp: pointnetfeat_forward(xx, pp, k=K, global_feat=True))
    fwd_dense = jax.jit(lambda xx, pp: pointnetfeat_forward(xx, pp, k=K, global_feat=False))

    gfeat, trans, trans_feat = fwd_global(x, params)
    dense_out, trans2, _ = fwd_dense(x, params)

    # Exercise the padding + in-kernel masking path (N not a multiple of the
    # row tiling) once, to validate the non-divisible tiling handling.
    N2 = 36
    x2 = jax.random.normal(x2key, (B, 3, N2), jnp.float32)
    gfeat2, _, _ = fwd_global(x2, params)

    jax.block_until_ready((gfeat, trans, dense_out, trans2, gfeat2))

    assert gfeat.shape == (B, 1024) and gfeat.dtype == jnp.float32
    assert trans.shape == (B, 3, 3)
    assert trans_feat is None
    assert dense_out.shape == (B, 1024 + 64, N)
    assert gfeat2.shape == (B, 1024)
    assert bool(jnp.all(jnp.isfinite(gfeat))) and bool(jnp.all(jnp.isfinite(gfeat2)))
    print("KERNEL_OK")
</pallas_src>

<mosaic_0001>
module attributes {stable_mosaic.version = 11 : i64} {
  func.func @_mlp3_max_kernel(%arg0: i32, %arg1: i32, %arg2: i32, %arg3: memref<1x32x3xbf16, #tpu.memory_space<vmem>>, %arg4: memref<3x64xbf16, #tpu.memory_space<vmem>>, %arg5: memref<1x64xf32, #tpu.memory_space<vmem>>, %arg6: memref<64x128xbf16, #tpu.memory_space<vmem>>, %arg7: memref<1x128xf32, #tpu.memory_space<vmem>>, %arg8: memref<128x1024xbf16, #tpu.memory_space<vmem>>, %arg9: memref<1x1024xf32, #tpu.memory_space<vmem>>, %arg10: memref<1x1x1024xf32, #tpu.memory_space<vmem>>, %arg11: memref<8x1024xf32, #tpu.memory_space<vmem>>) attributes {dimension_semantics = [#tpu.dimension_semantics<parallel>, #tpu.dimension_semantics<parallel>, #tpu.dimension_semantics<arbitrary>], iteration_bounds = array<i64: 2, 1, 1>, scalar_prefetch = 0 : i64, scratch_operands = 1 : i64, tpu.core_type = #tpu.core_type<tc>, window_params = [{transform_indices = @transform_0, window_bounds = array<i64: 1, 32, 3>}, {pipeline_mode = #tpu.pipeline_mode<synchronous>, transform_indices = @transform_1, window_bounds = array<i64: 3, 64>}, {pipeline_mode = #tpu.pipeline_mode<synchronous>, transform_indices = @transform_2, window_bounds = array<i64: 1, 64>}, {pipeline_mode = #tpu.pipeline_mode<synchronous>, transform_indices = @transform_3, window_bounds = array<i64: 64, 128>}, {pipeline_mode = #tpu.pipeline_mode<synchronous>, transform_indices = @transform_4, window_bounds = array<i64: 1, 128>}, {transform_indices = @transform_5, window_bounds = array<i64: 128, 1024>}, {transform_indices = @transform_6, window_bounds = array<i64: 1, 1024>}, {transform_indices = @transform_7, window_bounds = array<i64: 1, 1, 1024>}]} {
    %c0_i32 = arith.constant 0 : i32
    %0 = arith.cmpi eq, %arg2, %c0_i32 : i32
    %1 = arith.extui %0 : i1 to i32
    %c0_i32_0 = arith.constant 0 : i32
    %2 = arith.cmpi ne, %1, %c0_i32_0 : i32
    scf.if %2 {
      %cst_27 = arith.constant 0xFF800000 : f32
      %36 = vector.broadcast %cst_27 : f32 to vector<8x1024xf32>
      %c0_28 = arith.constant 0 : index
      %c0_29 = arith.constant 0 : index
      %37 = vector.load %arg11[%c0_28, %c0_29] : memref<8x1024xf32, #tpu.memory_space<vmem>>, vector<8x1024xf32>
      tpu.vector_store %arg11[%c0_28, %c0_29], %36 {strides = array<i32>} : memref<8x1024xf32, #tpu.memory_space<vmem>>, vector<8x1024xf32>,
    } else {
    }
    %c0 = arith.constant 0 : index
    %c0_1 = arith.constant 0 : index
    %c0_2 = arith.constant 0 : index
    %3 = vector.load %arg3[%c0, %c0_1, %c0_2] : memref<1x32x3xbf16, #tpu.memory_space<vmem>>, vector<1x32x3xbf16>
    %4 = vector.shape_cast %3 : vector<1x32x3xbf16> to vector<32x3xbf16>
    %c0_3 = arith.constant 0 : index
    %c0_4 = arith.constant 0 : index
    %5 = vector.load %arg4[%c0_3, %c0_4] : memref<3x64xbf16, #tpu.memory_space<vmem>>, vector<3x64xbf16>
    %cst = arith.constant dense<0.000000e+00> : vector<32x64xf32>
    %6 = tpu.matmul %4, %5, %cst {dimension_numbers = #tpu.dot_dimension_numbers<[1], [0], [0], [1], [0, 0, 1, 1], [], []>} : vector<32x3xbf16>, vector<3x64xbf16>, vector<32x64xf32> -> vector<32x64xf32>
    %c0_5 = arith.constant 0 : index
    %c0_6 = arith.constant 0 : index
    %7 = vector.load %arg5[%c0_5, %c0_6] : memref<1x64xf32, #tpu.memory_space<vmem>>, vector<1x64xf32>
    %8 = vector.broadcast %7 : vector<1x64xf32> to vector<32x64xf32>
    %9 = arith.addf %6, %8 : vector<32x64xf32>
    %cst_7 = arith.constant 0.000000e+00 : f32
    %10 = vector.broadcast %cst_7 : f32 to vector<32x64xf32>
    %11 = arith.maximumf %9, %10 : vector<32x64xf32>
    %12 = arith.truncf %11 : vector<32x64xf32> to vector<32x64xbf16>
    %c0_8 = arith.constant 0 : index
    %c0_9 = arith.constant 0 : index
    %13 = vector.load %arg6[%c0_8, %c0_9] : memref<64x128xbf16, #tpu.memory_space<vmem>>, vector<64x128xbf16>
    %cst_10 = arith.constant dense<0.000000e+00> : vector<32x128xf32>
    %14 = tpu.matmul %12, %13, %cst_10 {dimension_numbers = #tpu.dot_dimension_numbers<[1], [0], [0], [1], [0, 0, 1, 1], [], []>} : vector<32x64xbf16>, vector<64x128xbf16>, vector<32x128xf32> -> vector<32x128xf32>
    %c0_11 = arith.constant 0 : index
    %c0_12 = arith.constant 0 : index
    %15 = vector.load %arg7[%c0_11, %c0_12] : memref<1x128xf32, #tpu.memory_space<vmem>>, vector<1x128xf32>
    %16 = vector.broadcast %15 : vector<1x128xf32> to vector<32x128xf32>
    %17 = arith.addf %14, %16 : vector<32x128xf32>
    %cst_13 = arith.constant 0.000000e+00 : f32
    %18 = vector.broadcast %cst_13 : f32 to vector<32x128xf32>
    %19 = arith.maximumf %17, %18 : vector<32x128xf32>
    %20 = arith.truncf %19 : vector<32x128xf32> to vector<32x128xbf16>
    %c0_14 = arith.constant 0 : index
    %c0_15 = arith.constant 0 : index
    %21 = vector.load %arg8[%c0_14, %c0_15] : memref<128x1024xbf16, #tpu.memory_space<vmem>>, vector<128x1024xbf16>
    %cst_16 = arith.constant dense<0.000000e+00> : vector<32x1024xf32>
    %22 = tpu.matmul %20, %21, %cst_16 {dimension_numbers = #tpu.dot_dimension_numbers<[1], [0], [0], [1], [0, 0, 1, 1], [], []>} : vector<32x128xbf16>, vector<128x1024xbf16>, vector<32x1024xf32> -> vector<32x1024xf32>
    %c0_17 = arith.constant 0 : index
    %c0_18 = arith.constant 0 : index
    %23 = vector.load %arg9[%c0_17, %c0_18] : memref<1x1024xf32, #tpu.memory_space<vmem>>, vector<1x1024xf32>
    %24 = vector.broadcast %23 : vector<1x1024xf32> to vector<32x1024xf32>
    %25 = arith.addf %22, %24 : vector<32x1024xf32>
    %cst_19 = arith.constant 0.000000e+00 : f32
    %26 = vector.broadcast %cst_19 : f32 to vector<32x1024xf32>
    %27 = arith.maximumf %25, %26 : vector<32x1024xf32>
    %28 = vector.shape_cast %27 : vector<32x1024xf32> to vector<4x8x1024xf32>
    %cst_20 = arith.constant dense<0xFF800000> : vector<8x1024xf32>
    %29 = vector.multi_reduction <maximumf>, %28, %cst_20 [0] : vector<4x8x1024xf32> to vector<8x1024xf32>
    %c0_21 = arith.constant 0 : index
    %c0_22 = arith.constant 0 : index
    %30 = vector.load %arg11[%c0_21, %c0_22] : memref<8x1024xf32, #tpu.memory_space<vmem>>, vector<8x1024xf32>
    %31 = arith.maximumf %30, %29 : vector<8x1024xf32>
    %c0_23 = arith.constant 0 : index
    %c0_24 = arith.constant 0 : index
    %32 = vector.load %arg11[%c0_23, %c0_24] : memref<8x1024xf32, #tpu.memory_space<vmem>>, vector<8x1024xf32>
    tpu.vector_store %arg11[%c0_23, %c0_24], %31 {strides = array<i32>} : memref<8x1024xf32, #tpu.memory_space<vmem>>, vector<8x1024xf32>,
    %c0_i32_25 = arith.constant 0 : i32
    %33 = arith.cmpi eq, %arg2, %c0_i32_25 : i32
    %34 = arith.extui %33 : i1 to i32
    %c0_i32_26 = arith.constant 0 : i32
    %35 = arith.cmpi ne, %34, %c0_i32_26 : i32
    scf.if %35 {
      %c0_27 = arith.constant 0 : index
      %c0_28 = arith.constant 0 : index
      %36 = vector.load %arg11[%c0_27, %c0_28] : memref<8x1024xf32, #tpu.memory_space<vmem>>, vector<8x1024xf32>
      %cst_29 = arith.constant dense<0xFF800000> : vector<1024xf32>
      %37 = vector.multi_reduction <maximumf>, %36, %cst_29 [0] : vector<8x1024xf32> to vector<1024xf32>
      %38 = vector.shape_cast %37 : vector<1024xf32> to vector<1x1024xf32>
      %c0_30 = arith.constant 0 : index
      %c0_31 = arith.constant 0 : index
      %c0_32 = arith.constant 0 : index
      %39 = vector.load %arg10[%c0_30, %c0_31, %c0_32] : memref<1x1x1024xf32, #tpu.memory_space<vmem>>, vector<1x1x1024xf32>
      %40 = vector.shape_cast %39 : vector<1x1x1024xf32> to vector<1x1024xf32>
      %41 = vector.shape_cast %38 : vector<1x1024xf32> to vector<1x1x1024xf32>
      tpu.vector_store %arg10[%c0_30, %c0_31, %c0_32], %41 {strides = array<i32>} : memref<1x1x1024xf32, #tpu.memory_space<vmem>>, vector<1x1x1024xf32>,
    } else {
    }
    return
  }
  func.func @transform_0(%arg0: i32, %arg1: i32, %arg2: i32) -> (i32, i32, i32) {
    %c0_i32 = arith.constant 0 : i32
    %c0_i32_0 = arith.constant 0 : i32
    return %arg0, %arg2, %c0_i32 : i32, i32, i32
  }
  func.func @transform_1(%arg0: i32, %arg1: i32, %arg2: i32) -> (i32, i32) {
    %c0_i32 = arith.constant 0 : i32
    %c0_i32_0 = arith.constant 0 : i32
    %c0_i32_1 = arith.constant 0 : i32
    return %c0_i32, %c0_i32_0 : i32, i32
  }
  func.func @transform_2(%arg0: i32, %arg1: i32, %arg2: i32) -> (i32, i32) {
    %c0_i32 = arith.constant 0 : i32
    %c0_i32_0 = arith.constant 0 : i32
    %c0_i32_1 = arith.constant 0 : i32
    return %c0_i32, %c0_i32_0 : i32, i32
  }
  func.func @transform_3(%arg0: i32, %arg1: i32, %arg2: i32) -> (i32, i32) {
    %c0_i32 = arith.constant 0 : i32
    %c0_i32_0 = arith.constant 0 : i32
    %c0_i32_1 = arith.constant 0 : i32
    return %c0_i32, %c0_i32_0 : i32, i32
  }
  func.func @transform_4(%arg0: i32, %arg1: i32, %arg2: i32) -> (i32, i32) {
    %c0_i32 = arith.constant 0 : i32
    %c0_i32_0 = arith.constant 0 : i32
    %c0_i32_1 = arith.constant 0 : i32
    return %c0_i32, %c0_i32_0 : i32, i32
  }
  func.func @transform_5(%arg0: i32, %arg1: i32, %arg2: i32) -> (i32, i32) {
    %c0_i32 = arith.constant 0 : i32
    %c0_i32_0 = arith.constant 0 : i32
    return %c0_i32, %arg1 : i32, i32
  }
  func.func @transform_6(%arg0: i32, %arg1: i32, %arg2: i32) -> (i32, i32) {
    %c0_i32 = arith.constant 0 : i32
    %c0_i32_0 = arith.constant 0 : i32
    return %c0_i32, %arg1 : i32, i32
  }
  func.func @transform_7(%arg0: i32, %arg1: i32, %arg2: i32) -> (i32, i32, i32) {
    %c0_i32 = arith.constant 0 : i32
    %c0_i32_0 = arith.constant 0 : i32
    return %arg0, %c0_i32, %arg1 : i32, i32, i32
  }
}

module attributes {stable_mosaic.version = 11 : i64} {
  func.func @_fc_head_kernel(%arg0: i32, %arg1: memref<2x1024xbf16, #tpu.memory_space<vmem>>, %arg2: memref<1024x512xbf16, #tpu.memory_space<vmem>>, %arg3: memref<1x512xf32, #tpu.memory_space<vmem>>, %arg4: memref<512x256xbf16, #tpu.memory_space<vmem>>, %arg5: memref<1x256xf32, #tpu.memory_space<vmem>>, %arg6: memref<256x9xbf16, #tpu.memory_space<vmem>>, %arg7: memref<1x9xf32, #tpu.memory_space<vmem>>, %arg8: memref<2x9xf32, #tpu.memory_space<vmem>>) attributes {dimension_semantics = [#tpu.dimension_semantics<arbitrary>], iteration_bounds = array<i64: 1>, scalar_prefetch = 0 : i64, scratch_operands = 0 : i64, tpu.core_type = #tpu.core_type<tc>, window_params = [{pipeline_mode = #tpu.pipeline_mode<synchronous>, transform_indices = @transform_0, window_bounds = array<i64: 2, 1024>}, {pipeline_mode = #tpu.pipeline_mode<synchronous>, transform_indices = @transform_1, window_bounds = array<i64: 1024, 512>}, {pipeline_mode = #tpu.pipeline_mode<synchronous>, transform_indices = @transform_2, window_bounds = array<i64: 1, 512>}, {pipeline_mode = #tpu.pipeline_mode<synchronous>, transform_indices = @transform_3, window_bounds = array<i64: 512, 256>}, {pipeline_mode = #tpu.pipeline_mode<synchronous>, transform_indices = @transform_4, window_bounds = array<i64: 1, 256>}, {pipeline_mode = #tpu.pipeline_mode<synchronous>, transform_indices = @transform_5, window_bounds = array<i64: 256, 9>}, {pipeline_mode = #tpu.pipeline_mode<synchronous>, transform_indices = @transform_6, window_bounds = array<i64: 1, 9>}, {pipeline_mode = #tpu.pipeline_mode<synchronous>, transform_indices = @transform_7, window_bounds = array<i64: 2, 9>}]} {
    %c0 = arith.constant 0 : index
    %c0_0 = arith.constant 0 : index
    %0 = vector.load %arg1[%c0, %c0_0] : memref<2x1024xbf16, #tpu.memory_space<vmem>>, vector<2x1024xbf16>
    %c0_1 = arith.constant 0 : index
    %c0_2 = arith.constant 0 : index
    %1 = vector.load %arg2[%c0_1, %c0_2] : memref<1024x512xbf16, #tpu.memory_space<vmem>>, vector<1024x512xbf16>
    %cst = arith.constant dense<0.000000e+00> : vector<2x512xf32>
    %2 = tpu.matmul %0, %1, %cst {dimension_numbers = #tpu.dot_dimension_numbers<[1], [0], [0], [1], [0, 0, 1, 1], [], []>} : vector<2x1024xbf16>, vector<1024x512xbf16>, vector<2x512xf32> -> vector<2x512xf32>
    %c0_3 = arith.constant 0 : index
    %c0_4 = arith.constant 0 : index
    %3 = vector.load %arg3[%c0_3, %c0_4] : memref<1x512xf32, #tpu.memory_space<vmem>>, vector<1x512xf32>
    %4 = vector.broadcast %3 : vector<1x512xf32> to vector<2x512xf32>
    %5 = arith.addf %2, %4 : vector<2x512xf32>
    %cst_5 = arith.constant 0.000000e+00 : f32
    %6 = vector.broadcast %cst_5 : f32 to vector<2x512xf32>
    %7 = arith.maximumf %5, %6 : vector<2x512xf32>
    %8 = arith.truncf %7 : vector<2x512xf32> to vector<2x512xbf16>
    %c0_6 = arith.constant 0 : index
    %c0_7 = arith.constant 0 : index
    %9 = vector.load %arg4[%c0_6, %c0_7] : memref<512x256xbf16, #tpu.memory_space<vmem>>, vector<512x256xbf16>
    %cst_8 = arith.constant dense<0.000000e+00> : vector<2x256xf32>
    %10 = tpu.matmul %8, %9, %cst_8 {dimension_numbers = #tpu.dot_dimension_numbers<[1], [0], [0], [1], [0, 0, 1, 1], [], []>} : vector<2x512xbf16>, vector<512x256xbf16>, vector<2x256xf32> -> vector<2x256xf32>
    %c0_9 = arith.constant 0 : index
    %c0_10 = arith.constant 0 : index
    %11 = vector.load %arg5[%c0_9, %c0_10] : memref<1x256xf32, #tpu.memory_space<vmem>>, vector<1x256xf32>
    %12 = vector.broadcast %11 : vector<1x256xf32> to vector<2x256xf32>
    %13 = arith.addf %10, %12 : vector<2x256xf32>
    %cst_11 = arith.constant 0.000000e+00 : f32
    %14 = vector.broadcast %cst_11 : f32 to vector<2x256xf32>
    %15 = arith.maximumf %13, %14 : vector<2x256xf32>
    %16 = arith.truncf %15 : vector<2x256xf32> to vector<2x256xbf16>
    %c0_12 = arith.constant 0 : index
    %c0_13 = arith.constant 0 : index
    %17 = vector.load %arg6[%c0_12, %c0_13] : memref<256x9xbf16, #tpu.memory_space<vmem>>, vector<256x9xbf16>
    %cst_14 = arith.constant dense<0.000000e+00> : vector<2x9xf32>
    %18 = tpu.matmul %16, %17, %cst_14 {dimension_numbers = #tpu.dot_dimension_numbers<[1], [0], [0], [1], [0, 0, 1, 1], [], []>} : vector<2x256xbf16>, vector<256x9xbf16>, vector<2x9xf32> -> vector<2x9xf32>
    %c0_15 = arith.constant 0 : index
    %c0_16 = arith.constant 0 : index
    %19 = vector.load %arg7[%c0_15, %c0_16] : memref<1x9xf32, #tpu.memory_space<vmem>>, vector<1x9xf32>
    %20 = vector.broadcast %19 : vector<1x9xf32> to vector<2x9xf32>
    %21 = arith.addf %18, %20 : vector<2x9xf32>
    %c0_17 = arith.constant 0 : index
    %c0_18 = arith.constant 0 : index
    %22 = vector.load %arg8[%c0_17, %c0_18] : memref<2x9xf32, #tpu.memory_space<vmem>>, vector<2x9xf32>
    tpu.vector_store %arg8[%c0_17, %c0_18], %21 {strides = array<i32>} : memref<2x9xf32, #tpu.memory_space<vmem>>, vector<2x9xf32>,
    return
  }
  func.func @transform_0(%arg0: i32) -> (i32, i32) {
    %c0_i32 = arith.constant 0 : i32
    %c0_i32_0 = arith.constant 0 : i32
    %c0_i32_1 = arith.constant 0 : i32
    return %c0_i32, %c0_i32_0 : i32, i32
  }
  func.func @transform_1(%arg0: i32) -> (i32, i32) {
    %c0_i32 = arith.constant 0 : i32
    %c0_i32_0 = arith.constant 0 : i32
    %c0_i32_1 = arith.constant 0 : i32
    return %c0_i32, %c0_i32_0 : i32, i32
  }
  func.func @transform_2(%arg0: i32) -> (i32, i32) {
    %c0_i32 = arith.constant 0 : i32
    %c0_i32_0 = arith.constant 0 : i32
    %c0_i32_1 = arith.constant 0 : i32
    return %c0_i32, %c0_i32_0 : i32, i32
  }
  func.func @transform_3(%arg0: i32) -> (i32, i32) {
    %c0_i32 = arith.constant 0 : i32
    %c0_i32_0 = arith.constant 0 : i32
    %c0_i32_1 = arith.constant 0 : i32
    return %c0_i32, %c0_i32_0 : i32, i32
  }
  func.func @transform_4(%arg0: i32) -> (i32, i32) {
    %c0_i32 = arith.constant 0 : i32
    %c0_i32_0 = arith.constant 0 : i32
    %c0_i32_1 = arith.constant 0 : i32
    return %c0_i32, %c0_i32_0 : i32, i32
  }
  func.func @transform_5(%arg0: i32) -> (i32, i32) {
    %c0_i32 = arith.constant 0 : i32
    %c0_i32_0 = arith.constant 0 : i32
    %c0_i32_1 = arith.constant 0 : i32
    return %c0_i32, %c0_i32_0 : i32, i32
  }
  func.func @transform_6(%arg0: i32) -> (i32, i32) {
    %c0_i32 = arith.constant 0 : i32
    %c0_i32_0 = arith.constant 0 : i32
    %c0_i32_1 = arith.constant 0 : i32
    return %c0_i32, %c0_i32_0 : i32, i32
  }
  func.func @transform_7(%arg0: i32) -> (i32, i32) {
    %c0_i32 = arith.constant 0 : i32
    %c0_i32_0 = arith.constant 0 : i32
    %c0_i32_1 = arith.constant 0 : i32
    return %c0_i32, %c0_i32_0 : i32, i32
  }
}

module attributes {stable_mosaic.version = 11 : i64} {
  func.func @_mlp3_max_kernel(%arg0: i32, %arg1: i32, %arg2: i32, %arg3: memref<1x32x3xbf16, #tpu.memory_space<vmem>>, %arg4: memref<3x64xbf16, #tpu.memory_space<vmem>>, %arg5: memref<1x64xf32, #tpu.memory_space<vmem>>, %arg6: memref<64x128xbf16, #tpu.memory_space<vmem>>, %arg7: memref<1x128xf32, #tpu.memory_space<vmem>>, %arg8: memref<128x1024xbf16, #tpu.memory_space<vmem>>, %arg9: memref<1x1024xf32, #tpu.memory_space<vmem>>, %arg10: memref<1x1x1024xf32, #tpu.memory_space<vmem>>, %arg11: memref<8x1024xf32, #tpu.memory_space<vmem>>) attributes {dimension_semantics = [#tpu.dimension_semantics<parallel>, #tpu.dimension_semantics<parallel>, #tpu.dimension_semantics<arbitrary>], iteration_bounds = array<i64: 2, 1, 1>, scalar_prefetch = 0 : i64, scratch_operands = 1 : i64, tpu.core_type = #tpu.core_type<tc>, window_params = [{transform_indices = @transform_0, window_bounds = array<i64: 1, 32, 3>}, {pipeline_mode = #tpu.pipeline_mode<synchronous>, transform_indices = @transform_1, window_bounds = array<i64: 3, 64>}, {pipeline_mode = #tpu.pipeline_mode<synchronous>, transform_indices = @transform_2, window_bounds = array<i64: 1, 64>}, {pipeline_mode = #tpu.pipeline_mode<synchronous>, transform_indices = @transform_3, window_bounds = array<i64: 64, 128>}, {pipeline_mode = #tpu.pipeline_mode<synchronous>, transform_indices = @transform_4, window_bounds = array<i64: 1, 128>}, {transform_indices = @transform_5, window_bounds = array<i64: 128, 1024>}, {transform_indices = @transform_6, window_bounds = array<i64: 1, 1024>}, {transform_indices = @transform_7, window_bounds = array<i64: 1, 1, 1024>}]} {
    %c0_i32 = arith.constant 0 : i32
    %0 = arith.cmpi eq, %arg2, %c0_i32 : i32
    %1 = arith.extui %0 : i1 to i32
    %c0_i32_0 = arith.constant 0 : i32
    %2 = arith.cmpi ne, %1, %c0_i32_0 : i32
    scf.if %2 {
      %cst_26 = arith.constant 0xFF800000 : f32
      %34 = vector.broadcast %cst_26 : f32 to vector<8x1024xf32>
      %c0_27 = arith.constant 0 : index
      %c0_28 = arith.constant 0 : index
      %35 = vector.load %arg11[%c0_27, %c0_28] : memref<8x1024xf32, #tpu.memory_space<vmem>>, vector<8x1024xf32>
      tpu.vector_store %arg11[%c0_27, %c0_28], %34 {strides = array<i32>} : memref<8x1024xf32, #tpu.memory_space<vmem>>, vector<8x1024xf32>,
    } else {
    }
    %c0 = arith.constant 0 : index
    %c0_1 = arith.constant 0 : index
    %c0_2 = arith.constant 0 : index
    %3 = vector.load %arg3[%c0, %c0_1, %c0_2] : memref<1x32x3xbf16, #tpu.memory_space<vmem>>, vector<1x32x3xbf16>
    %4 = vector.shape_cast %3 : vector<1x32x3xbf16> to vector<32x3xbf16>
    %c0_3 = arith.constant 0 : index
    %c0_4 = arith.constant 0 : index
    %5 = vector.load %arg4[%c0_3, %c0_4] : memref<3x64xbf16, #tpu.memory_space<vmem>>, vector<3x64xbf16>
    %cst = arith.constant dense<0.000000e+00> : vector<32x64xf32>
    %6 = tpu.matmul %4, %5, %cst {dimension_numbers = #tpu.dot_dimension_numbers<[1], [0], [0], [1], [0, 0, 1, 1], [], []>} : vector<32x3xbf16>, vector<3x64xbf16>, vector<32x64xf32> -> vector<32x64xf32>
    %c0_5 = arith.constant 0 : index
    %c0_6 = arith.constant 0 : index
    %7 = vector.load %arg5[%c0_5, %c0_6] : memref<1x64xf32, #tpu.memory_space<vmem>>, vector<1x64xf32>
    %8 = vector.broadcast %7 : vector<1x64xf32> to vector<32x64xf32>
    %9 = arith.addf %6, %8 : vector<32x64xf32>
    %cst_7 = arith.constant 0.000000e+00 : f32
    %10 = vector.broadcast %cst_7 : f32 to vector<32x64xf32>
    %11 = arith.maximumf %9, %10 : vector<32x64xf32>
    %12 = arith.truncf %11 : vector<32x64xf32> to vector<32x64xbf16>
    %c0_8 = arith.constant 0 : index
    %c0_9 = arith.constant 0 : index
    %13 = vector.load %arg6[%c0_8, %c0_9] : memref<64x128xbf16, #tpu.memory_space<vmem>>, vector<64x128xbf16>
    %cst_10 = arith.constant dense<0.000000e+00> : vector<32x128xf32>
    %14 = tpu.matmul %12, %13, %cst_10 {dimension_numbers = #tpu.dot_dimension_numbers<[1], [0], [0], [1], [0, 0, 1, 1], [], []>} : vector<32x64xbf16>, vector<64x128xbf16>, vector<32x128xf32> -> vector<32x128xf32>
    %c0_11 = arith.constant 0 : index
    %c0_12 = arith.constant 0 : index
    %15 = vector.load %arg7[%c0_11, %c0_12] : memref<1x128xf32, #tpu.memory_space<vmem>>, vector<1x128xf32>
    %16 = vector.broadcast %15 : vector<1x128xf32> to vector<32x128xf32>
    %17 = arith.addf %14, %16 : vector<32x128xf32>
    %cst_13 = arith.constant 0.000000e+00 : f32
    %18 = vector.broadcast %cst_13 : f32 to vector<32x128xf32>
    %19 = arith.maximumf %17, %18 : vector<32x128xf32>
    %20 = arith.truncf %19 : vector<32x128xf32> to vector<32x128xbf16>
    %c0_14 = arith.constant 0 : index
    %c0_15 = arith.constant 0 : index
    %21 = vector.load %arg8[%c0_14, %c0_15] : memref<128x1024xbf16, #tpu.memory_space<vmem>>, vector<128x1024xbf16>
    %cst_16 = arith.constant dense<0.000000e+00> : vector<32x1024xf32>
    %22 = tpu.matmul %20, %21, %cst_16 {dimension_numbers = #tpu.dot_dimension_numbers<[1], [0], [0], [1], [0, 0, 1, 1], [], []>} : vector<32x128xbf16>, vector<128x1024xbf16>, vector<32x1024xf32> -> vector<32x1024xf32>
    %c0_17 = arith.constant 0 : index
    %c0_18 = arith.constant 0 : index
    %23 = vector.load %arg9[%c0_17, %c0_18] : memref<1x1024xf32, #tpu.memory_space<vmem>>, vector<1x1024xf32>
    %24 = vector.broadcast %23 : vector<1x1024xf32> to vector<32x1024xf32>
    %25 = arith.addf %22, %24 : vector<32x1024xf32>
    %26 = vector.shape_cast %25 : vector<32x1024xf32> to vector<4x8x1024xf32>
    %cst_19 = arith.constant dense<0xFF800000> : vector<8x1024xf32>
    %27 = vector.multi_reduction <maximumf>, %26, %cst_19 [0] : vector<4x8x1024xf32> to vector<8x1024xf32>
    %c0_20 = arith.constant 0 : index
    %c0_21 = arith.constant 0 : index
    %28 = vector.load %arg11[%c0_20, %c0_21] : memref<8x1024xf32, #tpu.memory_space<vmem>>, vector<8x1024xf32>
    %29 = arith.maximumf %28, %27 : vector<8x1024xf32>
    %c0_22 = arith.constant 0 : index
    %c0_23 = arith.constant 0 : index
    %30 = vector.load %arg11[%c0_22, %c0_23] : memref<8x1024xf32, #tpu.memory_space<vmem>>, vector<8x1024xf32>
    tpu.vector_store %arg11[%c0_22, %c0_23], %29 {strides = array<i32>} : memref<8x1024xf32, #tpu.memory_space<vmem>>, vector<8x1024xf32>,
    %c0_i32_24 = arith.constant 0 : i32
    %31 = arith.cmpi eq, %arg2, %c0_i32_24 : i32
    %32 = arith.extui %31 : i1 to i32
    %c0_i32_25 = arith.constant 0 : i32
    %33 = arith.cmpi ne, %32, %c0_i32_25 : i32
    scf.if %33 {
      %c0_26 = arith.constant 0 : index
      %c0_27 = arith.constant 0 : index
      %34 = vector.load %arg11[%c0_26, %c0_27] : memref<8x1024xf32, #tpu.memory_space<vmem>>, vector<8x1024xf32>
      %cst_28 = arith.constant dense<0xFF800000> : vector<1024xf32>
      %35 = vector.multi_reduction <maximumf>, %34, %cst_28 [0] : vector<8x1024xf32> to vector<1024xf32>
      %36 = vector.shape_cast %35 : vector<1024xf32> to vector<1x1024xf32>
      %c0_29 = arith.constant 0 : index
      %c0_30 = arith.constant 0 : index
      %c0_31 = arith.constant 0 : index
      %37 = vector.load %arg10[%c0_29, %c0_30, %c0_31] : memref<1x1x1024xf32, #tpu.memory_space<vmem>>, vector<1x1x1024xf32>
      %38 = vector.shape_cast %37 : vector<1x1x1024xf32> to vector<1x1024xf32>
      %39 = vector.shape_cast %36 : vector<1x1024xf32> to vector<1x1x1024xf32>
      tpu.vector_store %arg10[%c0_29, %c0_30, %c0_31], %39 {strides = array<i32>} : memref<1x1x1024xf32, #tpu.memory_space<vmem>>, vector<1x1x1024xf32>,
    } else {
    }
    return
  }
  func.func @transform_0(%arg0: i32, %arg1: i32, %arg2: i32) -> (i32, i32, i32) {
    %c0_i32 = arith.constant 0 : i32
    %c0_i32_0 = arith.constant 0 : i32
    return %arg0, %arg2, %c0_i32 : i32, i32, i32
  }
  func.func @transform_1(%arg0: i32, %arg1: i32, %arg2: i32) -> (i32, i32) {
    %c0_i32 = arith.constant 0 : i32
    %c0_i32_0 = arith.constant 0 : i32
    %c0_i32_1 = arith.constant 0 : i32
    return %c0_i32, %c0_i32_0 : i32, i32
  }
  func.func @transform_2(%arg0: i32, %arg1: i32, %arg2: i32) -> (i32, i32) {
    %c0_i32 = arith.constant 0 : i32
    %c0_i32_0 = arith.constant 0 : i32
    %c0_i32_1 = arith.constant 0 : i32
    return %c0_i32, %c0_i32_0 : i32, i32
  }
  func.func @transform_3(%arg0: i32, %arg1: i32, %arg2: i32) -> (i32, i32) {
    %c0_i32 = arith.constant 0 : i32
    %c0_i32_0 = arith.constant 0 : i32
    %c0_i32_1 = arith.constant 0 : i32
    return %c0_i32, %c0_i32_0 : i32, i32
  }
  func.func @transform_4(%arg0: i32, %arg1: i32, %arg2: i32) -> (i32, i32) {
    %c0_i32 = arith.constant 0 : i32
    %c0_i32_0 = arith.constant 0 : i32
    %c0_i32_1 = arith.constant 0 : i32
    return %c0_i32, %c0_i32_0 : i32, i32
  }
  func.func @transform_5(%arg0: i32, %arg1: i32, %arg2: i32) -> (i32, i32) {
    %c0_i32 = arith.constant 0 : i32
    %c0_i32_0 = arith.constant 0 : i32
    return %c0_i32, %arg1 : i32, i32
  }
  func.func @transform_6(%arg0: i32, %arg1: i32, %arg2: i32) -> (i32, i32) {
    %c0_i32 = arith.constant 0 : i32
    %c0_i32_0 = arith.constant 0 : i32
    return %c0_i32, %arg1 : i32, i32
  }
  func.func @transform_7(%arg0: i32, %arg1: i32, %arg2: i32) -> (i32, i32, i32) {
    %c0_i32 = arith.constant 0 : i32
    %c0_i32_0 = arith.constant 0 : i32
    return %arg0, %c0_i32, %arg1 : i32, i32, i32
  }
}

</mosaic_0001>

<bundles_post_ra>
// kernel: _lambda_.3
= control target key start
LH: loop header
LB: loop body
LE: loop exit
PB: predicated region body
PF: predicated region fallthrough
CT: control target
= control target key end

     0   :  { %12 = vsyncpa [#allocation4], 0  ;;  %s1782_s24 = smov 0   ;;  %s1784_s25 = smov 0   ;;  %s1944_s0 = inlined_call_operand.vmem [shape: bf16[2,32,3], index: 0, kind: input, shape index: {}]   ;;  %s1945_s1 = inlined_call_operand.vmem [shape: bf16[3,64], index: 1, kind: input, shape index: {}]   ;;  %s1946_s2 = inlined_call_operand.vmem [shape: f32[1,64], index: 2, kind: input, shape index: {}]   ;;  %s1947_s3 = inlined_call_operand.vmem [shape: bf16[64,128], index: 3, kind: input, shape index: {}]   ;;  %s1948_s4 = inlined_call_operand.vmem [shape: f32[1,128], index: 4, kind: input, shape index: {}]   ;;  %s1949_s5 = inlined_call_operand.hbm [shape: bf16[128,1024], index: 5, kind: input, shape index: {}]   ;;  %s1950_s6 = inlined_call_operand.vmem [shape: f32[1,1024], index: 6, kind: input, shape index: {}]   ;;  %s1951_s7 = inlined_call_operand.vmem [shape: f32[2,1,1024], index: 7, kind: output, shape index: {}]  }
   0x1   :  { %s1786_s26 = smov 0  }
   0x2 LB: > { %s1517_s27 = sadd.s32 4294967295, %s1734_s26   ;;  %s37_s28 = sadd.s32 1, %s1730_s25  ;;  %s1734_s26 = sphi %s1786_s26, %s18_s26   ;;  %s1730_s25 = sphi %s1784_s25, %s1961_s25   ;;  %s1726_s24 = sphi %s1782_s24, %s1960_s24  }
   0x3   : > { %p39_p0 = scmp.ge.s32.totalorder %s37_s28, 2  ;;  %p1519_p1 = scmp.ge.s32.totalorder %s1734_s26, 1 }
   0x4   : > { %p234_p2 = scmp.lt.s32.totalorder %s1734_s26, 3  ;;  %p1807_p4 = scmp.eq.s32.totalorder %s1517_s27, 0 }
   0x5   : > { %s1963_s28 = smov (%p39_p0, %s37_s28), 0  ;;  %s1736_s8 = smov [#allocation3]  }
   0x6   : > { %p1803_p3 = pnand %p1519_p1, %p234_p2  ;;  %s261_s9 = sshll.u32 %s1736_s8, 4  ;;  %s262_s9 = int_to_ptr.vmem [resolvable:$true] %s261_s9 }
   0x7   : > { %s1956_s30 = scalar_select %p1807_p4, 1, 0 }
   0x8   : > { %s1955_s29 = scalar_select %p1803_p3, 1, 0 }
   0x9   : > { %p1638_p5 = pneg %p1803_p3  ;;  %s1680_s13 = scalar_lea.hbm %s1949_s5, 8192 }
   0xa   : > { %p1681_p7 = scmp.ne.s32.totalorder %s1949_s5, %s1680_s13  ;;  %p1687_p11 = scmp.lt.u32.totalorder %s1680_s13, %s1949_s5 }
   0xb   : > { %p1815_p6 = pnand %p1807_p4, %p1638_p5 }
   0xd   : > { %p1682_p8 = pneg %p1815_p6 }
   0xf   : > { %p1683_p9 = pnand %p1682_p8, %p1681_p7 }
  0x11   : > { %p1684_p10 = pneg %p1683_p9 }
  0x13   : > { %p1689_p12 = pnand %p1687_p11, %p1684_p10 }
  0x15   : > { %1692 = shalt.err (!%p1689_p12)
}
  0x16   : > { %s1693_s18 = scalar_lea.vmem %s262_s9, 8192  ;;  %p1701_p2 = scmp.lt.s32.totalorder %s262_s9, %s262_s9 }
  0x17   : > { %p1694_p13 = scmp.ne.s32.totalorder %s262_s9, %s1693_s18  ;;  %p1702_p5 = scmp.lt.s32.totalorder %s1693_s18, %s1693_s18 }
  0x19   : > { %p1696_p0 = pnand %p1694_p13, %p1682_p8  ;;  %p1703_p4 = por %p1702_p5, %p1701_p2 }
  0x1b   : > { %p1697_p1 = pneg %p1696_p0 }
  0x1d   : > { %p1704_p3 = pnand %p1703_p4, %p1697_p1 }
  0x1f   : > { %1707 = shalt.err (!%p1704_p3)
}
  0x20   : > { %s1737_s19 = smov 512   ;;  %s1738_s20 = smov 32  }
  0x21   : > { %1641 = dma.hbm_to_vmem [thread:$0]  (!%p1815_p6), %s1949_s5, 8192, %s262_s9, [#allocation4], %s1737_s19, %s1737_s19, %s1738_s20  }
  0x22   : > { %p1958_p7 = scmp.ne.s32.totalorder %s1955_s29, 0 }
  0x23   : > { %p1959_p9 = scmp.ne.s32.totalorder (!%p1958_p7), %s1956_s30, 0 }
  0x24   : > { %298 = sbr.rel (%p1958_p7) target bundleno = 780 (0x30c), region = 48 }
  0x2b   : > { %1721 = dma.done.wait (%p1959_p9), [#allocation4], 8192  }
  0x2c   : > { %1723 = vsyncadd (%p1959_p9), [#allocation4], 4294959104  ;;  %vm408_vm0 = vcmask 1040384   ;;  %p342_p3 = scmp.lt.s32.totalorder %s1726_s24, 1  ;;  %vm409_vm1 = vcmask 1041408   ;;  %v1739_v0 = vmov 65535  }
  0x2d   : > { %v410_v1 = vsel %vm408_vm0, 4294967295, %v1739_v0  ;;  %vm401_vm2 = vcmask 23552   ;;  %v383_v3 = vld [vmem:[%s1945_s1] sm:$0x3]  ;;  %v1677_v8 = vld [vmem:[%s1947_s3 + $0x8] sm:$0xff]   ;;  %v1678_v9 = vld [vmem:[%s1947_s3 + $0x10] sm:$0xff]  }
  0x2e   : > { %s1965_s24 = smov (!%p342_p3, %s1726_s24), 1  ;;  %v411_v2 = vsel %vm409_vm1, %v410_v1, 0  ;;  %v1676_v7 = vld [vmem:[%s1947_s3] sm:$0xff]   ;;  %v1679_v10 = vld [vmem:[%s1947_s3 + $0x18] sm:$0xff]   ;;  %v572_v13 = vld [vmem:[#allocation3 + $0x8] sm:$0xff]  ;;  %vm509_vm3 = vcmask 523264  }
  0x2f   : > { %s1606_s23 = sshll.u32 %s1965_s24, 4  ;;  %v413_v4 = vand.u32 %v411_v2, %v383_v3  ;;  %1622 = vmatprep.subr.bf16.mxu1 %v1676_v7  ;;  %v571_v11 = vld [vmem:[#allocation3] sm:$0xff]  ;;  %v576_v16 = vld [vmem:[#allocation3 + $0x28] sm:$0xff]  ;;  %s1527_s27 = sshll.u32 %s1965_s24, 3 }
  0x30   : > { %s349_s8 = scalar_lea.vmem %s1944_s0, %s1606_s23  ;;  %1623 = vmatpush3.bf16.msra.mxu1 %v1676_v7  ;;  %v575_v12 = vld [vmem:[#allocation3 + $0x20] sm:$0xff]  ;;  %v1542_v19 = vcombine.low %v572_v13, %v576_v16  ;;  %v1543_v20 = vcombine.high %v572_v13, %v576_v16  ;;  %v580_v52 = vld [vmem:[#allocation3 + $0x48] sm:$0xff]  ;;  %s364_s9 = scalar_lea.vmem %s1951_s7, %s1527_s27 }
  0x31   : > { %v1674_v5 = vld [vmem:[%s349_s8] sm:$0xff]   ;;  %v1675_v6 = vld [vmem:[%s349_s8 + $0x8] sm:$0xff]   ;;  %1616 = vmatprep.subr.bf16.mxu0 %v413_v4  ;;  %1624 = vmatprep.subr.bf16.mxu1 %v1677_v8  ;;  %v1540_v14 = vcombine.low %v571_v11, %v575_v12  ;;  %v1541_v15 = vcombine.high %v571_v11, %v575_v12 }
  0x32   : > { %1618 = vmatprep.mubr.msk.bf16.mxu0 %vm401_vm2, %v1674_v5  ;;  %1617 = vmatpush3.bf16.msra.mxu0 %v413_v4  ;;  %v579_v17 = vld [vmem:[#allocation3 + $0x40] sm:$0xff]  ;;  %v584_v53 = vld [vmem:[#allocation3 + $0x68] sm:$0xff] }
  0x33   : > { %v583_v18 = vld [vmem:[#allocation3 + $0x60] sm:$0xff]  ;;  %997 = vmatprep.subr.bf16.mxu0 %v1541_v15  ;;  %v1551_v56 = vcombine.high %v580_v52, %v584_v53  ;;  %v588_v57 = vld [vmem:[#allocation3 + $0x88] sm:$0xff]  ;;  %v1550_v59 = vcombine.low %v580_v52, %v584_v53 }
  0x34   : > { %1625 = vmatpush3.bf16.msra.mxu1 %v1677_v8  ;;  %v1549_v21 = vcombine.high %v579_v17, %v583_v18  ;;  %v1548_v22 = vcombine.low %v579_v17, %v583_v18  ;;  %v587_v23 = vld [vmem:[#allocation3 + $0x80] sm:$0xff]  ;;  %v592_v58 = vld [vmem:[#allocation3 + $0xa8] sm:$0xff] }
  0x35   : > { %1619 = vmatmul.mubr.msk.bf16.vlgmr.msra.gmra.mrb[0].mxu0 %vm401_vm2, %v1675_v6  ;;  %1626 = vmatprep.subr.bf16.mxu1 %v1678_v9  ;;  %v591_v24 = vld [vmem:[#allocation3 + $0xa0] sm:$0xff]  ;;  %v1559_v60 = vcombine.high %v588_v57, %v592_v58  ;;  %v596_v61 = vld [vmem:[#allocation3 + $0xc8] sm:$0xff]  ;;  %v1558_v63 = vcombine.low %v588_v57, %v592_v58  ;;  %v593_v57 = vld [vmem:[#allocation3 + $0xb0] sm:$0xff] }
  0x36   : > { %998 = vmatpush1.bf16.msra.mxu0 %v1540_v14  ;;  %v1557_v25 = vcombine.high %v587_v23, %v591_v24  ;;  %v1556_v26 = vcombine.low %v587_v23, %v591_v24  ;;  %v595_v27 = vld [vmem:[#allocation3 + $0xc0] sm:$0xff]  ;;  %v600_v62 = vld [vmem:[#allocation3 + $0xe8] sm:$0xff]  ;;  %v590_v58 = vld [vmem:[#allocation3 + $0x98] sm:$0xff] }
  0x37   : > { %999 = vmatprep.subr.bf16.mxu0 %v1549_v21  ;;  %v599_v28 = vld [vmem:[#allocation3 + $0xe0] sm:$0xff]  ;;  %v1567_v0 = vcombine.high %v596_v61, %v600_v62  ;;  %v604_v1 = vld [vmem:[#allocation3 + $0x108] sm:$0xff]  ;;  %v1566_v3 = vcombine.low %v596_v61, %v600_v62 }
  0x38   : > { %1627 = vmatpush3.bf16.msra.mxu1 %v1678_v9  ;;  %v1565_v29 = vcombine.high %v595_v27, %v599_v28  ;;  %v1564_v30 = vcombine.low %v595_v27, %v599_v28  ;;  %v603_v31 = vld [vmem:[#allocation3 + $0x100] sm:$0xff]  ;;  %v608_v2 = vld [vmem:[#allocation3 + $0x128] sm:$0xff]  ;;  %v577_v27 = vld [vmem:[#allocation3 + $0x30] sm:$0xff] }
  0x39   : > { %1628 = vmatprep.subr.bf16.mxu1 %v1679_v10  ;;  %v607_v32 = vld [vmem:[#allocation3 + $0x120] sm:$0xff]  ;;  %v1575_v4 = vcombine.high %v604_v1, %v608_v2  ;;  %v612_v5 = vld [vmem:[#allocation3 + $0x148] sm:$0xff]  ;;  %v1574_v7 = vcombine.low %v604_v1, %v608_v2  ;;  %v574_v28 = vld [vmem:[#allocation3 + $0x18] sm:$0xff] }
  0x3a   : > { %1000 = vmatpush1.bf16.msra.mxu0 %v1548_v22  ;;  %v1573_v33 = vcombine.high %v603_v31, %v607_v32  ;;  %v1572_v34 = vcombine.low %v603_v31, %v607_v32  ;;  %v611_v35 = vld [vmem:[#allocation3 + $0x140] sm:$0xff]  ;;  %v616_v6 = vld [vmem:[#allocation3 + $0x168] sm:$0xff]  ;;  %v601_v1 = vld [vmem:[#allocation3 + $0xf0] sm:$0xff] }
  0x3b   : > { %1001 = vmatprep.subr.bf16.mxu0 %v1557_v25  ;;  %v615_v36 = vld [vmem:[#allocation3 + $0x160] sm:$0xff]  ;;  %v1583_v8 = vcombine.high %v612_v5, %v616_v6  ;;  %v1582_v9 = vcombine.low %v612_v5, %v616_v6  ;;  %v620_v12 = vld [vmem:[#allocation3 + $0x188] sm:$0xff]  ;;  %v598_v2 = vld [vmem:[#allocation3 + $0xd8] sm:$0xff] }
  0x3c   : > { %1629 = vmatpush3.bf16.msra.mxu1 %v1679_v10  ;;  %v1581_v37 = vcombine.high %v611_v35, %v615_v36  ;;  %v1580_v38 = vcombine.low %v611_v35, %v615_v36  ;;  %v1528_v39 = vld [vmem:[%s1946_s2] ss:$0 sm:$0xff]  ;;  %v624_v14 = vld [vmem:[#allocation3 + $0x1a8] sm:$0xff] }
  0x3d   : > { %1050 = vmatprep.subr.bf16.mxu1 %v1543_v20  ;;  %v619_v10 = vld [vmem:[#allocation3 + $0x180] sm:$0xff]  ;;  %v1590_v16 = vcombine.low %v620_v12, %v624_v14  ;;  %v1591_v17 = vcombine.high %v620_v12, %v624_v14  ;;  %v628_v20 = vld [vmem:[#allocation3 + $0x1c8] sm:$0xff] }
  0x3e   : > { %1002 = vmatpush1.bf16.msra.mxu0 %v1556_v26  ;;  %v623_v11 = vld [vmem:[#allocation3 + $0x1a0] sm:$0xff]  ;;  %v632_v22 = vld [vmem:[#allocation3 + $0x1e8] sm:$0xff]  ;;  %v573_v26 = vld [vmem:[#allocation3 + $0x10] sm:$0xff] }
  0x3f   : > { %1003 = vmatprep.subr.bf16.mxu0 %v1565_v29  ;;  %v1589_v13 = vcombine.high %v619_v10, %v623_v11  ;;  %v1588_v15 = vcombine.low %v619_v10, %v623_v11  ;;  %v627_v18 = vld [vmem:[#allocation3 + $0x1c0] sm:$0xff]  ;;  %v1598_v24 = vcombine.low %v628_v20, %v632_v22  ;;  %v1599_v25 = vcombine.high %v628_v20, %v632_v22  ;;  %v606_v10 = vld [vmem:[#allocation3 + $0x118] sm:$0xff] }
  0x40   : > { %v1545_v29 = vcombine.high %v573_v26, %v577_v27  ;;  %v1544_v31 = vcombine.low %v573_v26, %v577_v27  ;;  %v1533_v35 = vld [vmem:[%s1948_s4] ss:$0 sm:$0xff]  ;;  %v610_v11 = vld [vmem:[#allocation3 + $0x138] sm:$0xff] }
  0x41   : > { %v622_v26 = vld [vmem:[#allocation3 + $0x198] sm:$0xff] }
  0x42   : > { %1004 = vmatpush1.bf16.msra.mxu0 %v1564_v30  ;;  %v578_v30 = vld [vmem:[#allocation3 + $0x38] sm:$0xff] }
  0x43   : > { %1005 = vmatprep.subr.bf16.mxu0 %v1573_v33  ;;  %v1546_v32 = vcombine.low %v574_v28, %v578_v30  ;;  %v1547_v33 = vcombine.high %v574_v28, %v578_v30  ;;  %v626_v27 = vld [vmem:[#allocation3 + $0x1b8] sm:$0xff] }
  0x46   : > { %1006 = vmatpush1.bf16.msra.mxu0 %v1572_v34  ;;  %v1740_v34 = vmov 0  }
  0x47   : > { %1007 = vmatprep.subr.bf16.mxu0 %v1581_v37  ;;  %1029 = vmatprep.mubr.bf16.mxu0 %v1740_v34 }
  0x4a   : > { %1008 = vmatpush1.bf16.msra.mxu0 %v1580_v38 }
  0x4b   : > { %1009 = vmatprep.subr.bf16.mxu0 %v1589_v13 }
  0x4e   : > { %1010 = vmatpush1.bf16.msra.mxu0 %v1588_v15  ;;  %v1579_v15 = vcombine.high %v606_v10, %v610_v11 }
 0x108   : > { %v1620_v40 = vpop.f32.mrb[0].mxu0 }
 0x109   : > { %v458_v41 = vadd.f32 %v1620_v40, %v1528_v39  ;;  %v449_v42 = vpop.f32.mrb[1].mxu0 }
 0x10a   : > { %v450_v43 = vadd.f32 %v1528_v39, %v449_v42  ;;  %v1621_v44 = vpop.f32.mrb[2].mxu0 }
 0x10b   : > { %v461_v45 = vadd.f32 %v1621_v44, %v1528_v39  ;;  %v452_v46 = vpop.f32.mrb[3].mxu0  ;;  %v466_v48 = vmax.f32 %v458_v41, 0.0  ;;  %v581_v44 = vld [vmem:[#allocation3 + $0x50] sm:$0xff] }
 0x10c   : > { %v453_v47 = vadd.f32 %v1528_v39, %v452_v46  ;;  %v464_v50 = vmax.f32 %v450_v43, 0.0 }
 0x10d   : > { %v467_v49 = vmax.f32 %v461_v45, 0.0 }
 0x10e   : > { %v465_v51 = vmax.f32 %v453_v47, 0.0  ;;  %v585_v47 = vld [vmem:[#allocation3 + $0x70] sm:$0xff] }
 0x10f   : > { %v469_v54 = vpack.c.bf16 %v467_v49, %v466_v48  ;;  %v582_v48 = vld [vmem:[#allocation3 + $0x58] sm:$0xff] }
 0x110   : > { %v468_v55 = vpack.c.bf16 %v465_v51, %v464_v50  ;;  %v586_v49 = vld [vmem:[#allocation3 + $0x78] sm:$0xff] }
 0x111   : > { %v1554_v61 = vcombine.low %v582_v48, %v586_v49 }
 0x112   : > { %1630 = vmatprep.mubr.msk.bf16.mxu1 %vm509_vm3, %v468_v55  ;;  %v1555_v55 = vcombine.high %v582_v48, %v586_v49 }
 0x113   : > { %1631 = vmatmul.mubr.msk.bf16.vlgmr.msra.gmra.mrb[0].mxu1 %vm509_vm3, %v469_v54  ;;  %v1553_v54 = vcombine.high %v581_v44, %v585_v47 }
 0x114   : > { %1051 = vmatpush1.bf16.msra.mxu1 %v1542_v19  ;;  %v631_v19 = vld [vmem:[#allocation3 + $0x1e0] sm:$0xff]  ;;  %1082 = vmatprep.mubr.bf16.mxu1 %v1740_v34 }
 0x115   : > { %1052 = vmatprep.subr.bf16.mxu1 %v1551_v56  ;;  %v1597_v21 = vcombine.high %v627_v18, %v631_v19  ;;  %v1596_v23 = vcombine.low %v627_v18, %v631_v19  ;;  %v589_v56 = vld [vmem:[#allocation3 + $0x90] sm:$0xff]  ;;  %v614_v18 = vld [vmem:[#allocation3 + $0x158] sm:$0xff] }
 0x116   : > { %v1561_v62 = vcombine.high %v589_v56, %v593_v57  ;;  %v618_v19 = vld [vmem:[#allocation3 + $0x178] sm:$0xff] }
 0x117   : > { %1011 = vmatprep.subr.bf16.mxu0 %v1597_v21  ;;  %v1578_v21 = vcombine.low %v606_v10, %v610_v11 }
 0x118   : > { %1053 = vmatpush1.bf16.msra.mxu1 %v1550_v59  ;;  %1012 = vmatpush1.bf16.msra.mxu0 %v1596_v23  ;;  %v594_v59 = vld [vmem:[#allocation3 + $0xb8] sm:$0xff]  ;;  %v1587_v23 = vcombine.high %v614_v18, %v618_v19 }
 0x119   : > { %1054 = vmatprep.subr.bf16.mxu1 %v1559_v60  ;;  %1103 = vmatprep.subr.bf16.mxu0 %v1545_v29  ;;  %v1552_v60 = vcombine.low %v581_v44, %v585_v47  ;;  %v1562_v5 = vcombine.low %v590_v58, %v594_v59  ;;  %v1586_v29 = vcombine.low %v614_v18, %v618_v19  ;;  %v1897_v47 = vld [vmem:[%s1950_s6] sm:$0xff] }
 0x11c   : > { %1055 = vmatpush1.bf16.msra.mxu1 %v1558_v63  ;;  %v1563_v63 = vcombine.high %v590_v58, %v594_v59 }
 0x11d   : > { %1056 = vmatprep.subr.bf16.mxu1 %v1567_v0  ;;  %v597_v0 = vld [vmem:[#allocation3 + $0xd0] sm:$0xff] }
 0x11e   : > { %v1569_v6 = vcombine.high %v597_v0, %v601_v1  ;;  %v1568_v12 = vcombine.low %v597_v0, %v601_v1 }
 0x120   : > { %1057 = vmatpush1.bf16.msra.mxu1 %v1566_v3  ;;  %v602_v3 = vld [vmem:[#allocation3 + $0xf8] sm:$0xff] }
 0x121   : > { %1058 = vmatprep.subr.bf16.mxu1 %v1575_v4  ;;  %v1560_v4 = vcombine.low %v589_v56, %v593_v57  ;;  %v1570_v13 = vcombine.low %v598_v2, %v602_v3 }
 0x124   : > { %1059 = vmatpush1.bf16.msra.mxu1 %v1574_v7  ;;  %v1571_v7 = vcombine.high %v598_v2, %v602_v3 }
 0x125   : > { %1060 = vmatprep.subr.bf16.mxu1 %v1583_v8  ;;  %v605_v8 = vld [vmem:[#allocation3 + $0x110] sm:$0xff] }
 0x128   : > { %1061 = vmatpush1.bf16.msra.mxu1 %v1582_v9  ;;  %v609_v9 = vld [vmem:[#allocation3 + $0x130] sm:$0xff] }
 0x129   : > { %1062 = vmatprep.subr.bf16.mxu1 %v1591_v17  ;;  %v1577_v14 = vcombine.high %v605_v8, %v609_v9  ;;  %v617_v17 = vld [vmem:[#allocation3 + $0x170] sm:$0xff]  ;;  %v1576_v20 = vcombine.low %v605_v8, %v609_v9 }
 0x12c   : > { %1063 = vmatpush1.bf16.msra.mxu1 %v1590_v16  ;;  %v613_v16 = vld [vmem:[#allocation3 + $0x150] sm:$0xff] }
 0x12d   : > { %1064 = vmatprep.subr.bf16.mxu1 %v1599_v25  ;;  %v1585_v22 = vcombine.high %v613_v16, %v617_v17  ;;  %v625_v25 = vld [vmem:[#allocation3 + $0x1b0] sm:$0xff]  ;;  %v1584_v28 = vcombine.low %v613_v16, %v617_v17 }
 0x130   : > { %1065 = vmatpush1.bf16.msra.mxu1 %v1598_v24  ;;  %v621_v24 = vld [vmem:[#allocation3 + $0x190] sm:$0xff] }
 0x131   : > { %1156 = vmatprep.subr.bf16.mxu1 %v1547_v33  ;;  %v1593_v30 = vcombine.high %v621_v24, %v625_v25  ;;  %v633_v33 = vld [vmem:[#allocation3 + $0x1f0] sm:$0xff] }
 0x1e6   : > { %v1632_v36 = vpop.f32.mrb[0].mxu1 }
 0x1e7   : > { %v559_v37 = vadd.f32 %v1632_v36, %v1533_v35  ;;  %v550_v38 = vpop.f32.mrb[1].mxu1  ;;  %v634_v36 = vld [vmem:[#allocation3 + $0x1f8] sm:$0xff] }
 0x1e8   : > { %v551_v39 = vadd.f32 %v1533_v35, %v550_v38  ;;  %v1633_v40 = vpop.f32.mrb[2].mxu1  ;;  %v1594_v38 = vcombine.low %v622_v26, %v626_v27 }
 0x1e9   : > { %v562_v41 = vadd.f32 %v1633_v40, %v1533_v35  ;;  %v553_v42 = vpop.f32.mrb[3].mxu1  ;;  %v567_v45 = vmax.f32 %v559_v37, 0.0  ;;  %v1592_v37 = vcombine.low %v621_v24, %v625_v25 }
 0x1ea   : > { %v554_v43 = vadd.f32 %v1533_v35, %v553_v42  ;;  %v565_v50 = vmax.f32 %v551_v39, 0.0  ;;  %v630_v35 = vld [vmem:[#allocation3 + $0x1d8] sm:$0xff] }
 0x1eb   : > { %v568_v46 = vmax.f32 %v562_v41, 0.0  ;;  %v1603_v40 = vcombine.high %v630_v35, %v634_v36  ;;  %v1602_v42 = vcombine.low %v630_v35, %v634_v36 }
 0x1ec   : > { %v566_v51 = vmax.f32 %v554_v43, 0.0  ;;  %v637_v43 = vlaneseq }
 0x1ed   : > { %v1872_v52 = vpack.c.bf16 %v568_v46, %v567_v45 }
 0x1ee   : > { %v1874_v53 = vpack.c.bf16 %v566_v51, %v565_v50  ;;  %v1890_v44 = vshrl.u32 %v637_v43, 7 }
 0x1f0   : > { %1030 = vmatmul.mubr.bf16.vlgmr.msra.gmra.mrb[4].mxu0 %v1874_v53  ;;  %1083 = vmatmul.mubr.bf16.vlgmr.msra.gmra.mrb[4].mxu1 %v1874_v53  ;;  %v639_v45 = vsub.s32 0, %v1890_v44  ;;  %v647_v46 = vsub.s32 2, %v1890_v44  ;;  %v643_v48 = vsub.s32 1, %v1890_v44 }
 0x1f1   : > { %1104 = vmatpush1.bf16.msra.mxu0 %v1544_v31  ;;  %1157 = vmatpush1.bf16.msra.mxu1 %v1546_v32  ;;  %v1595_v31 = vcombine.high %v622_v26, %v626_v27  ;;  %v629_v32 = vld [vmem:[#allocation3 + $0x1d0] sm:$0xff] }
 0x1f2   : > { %1105 = vmatprep.subr.bf16.mxu0 %v1553_v54  ;;  %1158 = vmatprep.subr.bf16.mxu1 %v1555_v55  ;;  %v1601_v39 = vcombine.high %v629_v32, %v633_v33  ;;  %v1600_v41 = vcombine.low %v629_v32, %v633_v33  ;;  %v640_v49 = vrot.slane %v1897_v47, %v639_v45 }
 0x1f3   : > { %1039 = vmatprep.mubr.bf16.mxu0 %v1740_v34  ;;  %1092 = vmatprep.mubr.bf16.mxu1 %v1740_v34  ;;  %v648_v50 = vrot.slane %v1897_v47, %v647_v46  ;;  %v644_v51 = vrot.slane %v1897_v47, %v643_v48 }
 0x1f5   : > { %1106 = vmatpush1.bf16.msra.mxu0 %v1552_v60  ;;  %1159 = vmatpush1.bf16.msra.mxu1 %v1554_v61 }
 0x1f6   : > { %1107 = vmatprep.subr.bf16.mxu0 %v1561_v62  ;;  %1160 = vmatprep.subr.bf16.mxu1 %v1563_v63 }
 0x1f8   : > { %1040 = vmatmul.mubr.bf16.gmra.mrb[8].mxu0 %v1872_v52  ;;  %1093 = vmatmul.mubr.bf16.gmra.mrb[8].mxu1 %v1872_v52 }
 0x1f9   : > { %1108 = vmatpush1.bf16.msra.mxu0 %v1560_v4  ;;  %1161 = vmatpush1.bf16.msra.mxu1 %v1562_v5 }
 0x1fa   : > { %1109 = vmatprep.subr.bf16.mxu0 %v1569_v6  ;;  %1162 = vmatprep.subr.bf16.mxu1 %v1571_v7 }
 0x1fb   : > { %1135 = vmatprep.mubr.bf16.mxu0 %v1740_v34  ;;  %1188 = vmatprep.mubr.bf16.mxu1 %v1740_v34 }
 0x1fd   : > { %1110 = vmatpush1.bf16.msra.mxu0 %v1568_v12  ;;  %1163 = vmatpush1.bf16.msra.mxu1 %v1570_v13 }
 0x1fe   : > { %1111 = vmatprep.subr.bf16.mxu0 %v1577_v14  ;;  %1164 = vmatprep.subr.bf16.mxu1 %v1579_v15 }
 0x201   : > { %1112 = vmatpush1.bf16.msra.mxu0 %v1576_v20  ;;  %1165 = vmatpush1.bf16.msra.mxu1 %v1578_v21 }
 0x202   : > { %1113 = vmatprep.subr.bf16.mxu0 %v1585_v22  ;;  %1166 = vmatprep.subr.bf16.mxu1 %v1587_v23 }
 0x205   : > { %1114 = vmatpush1.bf16.msra.mxu0 %v1584_v28  ;;  %1167 = vmatpush1.bf16.msra.mxu1 %v1586_v29 }
 0x206   : > { %1115 = vmatprep.subr.bf16.mxu0 %v1593_v30  ;;  %1168 = vmatprep.subr.bf16.mxu1 %v1595_v31 }
 0x209   : > { %1116 = vmatpush1.bf16.msra.mxu0 %v1592_v37  ;;  %1169 = vmatpush1.bf16.msra.mxu1 %v1594_v38 }
 0x20a   : > { %1117 = vmatprep.subr.bf16.mxu0 %v1601_v39  ;;  %1170 = vmatprep.subr.bf16.mxu1 %v1603_v40 }
 0x20d   : > { %1118 = vmatpush1.bf16.msra.mxu0 %v1600_v41  ;;  %1171 = vmatpush1.bf16.msra.mxu1 %v1602_v42 }
 0x210   : > { %1136 = vmatmul.mubr.bf16.vlgmr.msra.gmra.mrb[12].mxu0 %v1874_v53  ;;  %1189 = vmatmul.mubr.bf16.vlgmr.msra.gmra.mrb[12].mxu1 %v1874_v53 }
 0x211   : > { %1145 = vmatprep.mubr.bf16.mxu0 %v1740_v34  ;;  %1198 = vmatprep.mubr.bf16.mxu1 %v1740_v34  ;;  %v651_v34 = vsub.s32 3, %v1890_v44 }
 0x218   : > { %1146 = vmatmul.mubr.bf16.gmra.mrb[16].mxu0 %v1872_v52  ;;  %1199 = vmatmul.mubr.bf16.gmra.mrb[16].mxu1 %v1872_v52  ;;  %v652_v52 = vrot.slane %v1897_v47, %v651_v34 }
 0x2c3   : > { %v1031_v53 = vpop.f32.mrb[4].mxu0  ;;  %v1084_v54 = vpop.f32.mrb[4].mxu1 }
 0x2c4   : > { %v1032_v55 = vadd.f32 %v1031_v53, %v640_v49  ;;  %v1085_v56 = vadd.f32 %v1084_v54, %v648_v50  ;;  %v1033_v57 = vpop.f32.mrb[5].mxu0  ;;  %v1086_v58 = vpop.f32.mrb[5].mxu1 }
 0x2c5   : > { %v1034_v59 = vadd.f32 %v1033_v57, %v644_v51  ;;  %v1087_v60 = vadd.f32 %v1086_v58, %v652_v52  ;;  %v1035_v61 = vpop.f32.mrb[6].mxu0  ;;  %v1088_v62 = vpop.f32.mrb[6].mxu1 }
 0x2c6   : > { %v1036_v63 = vadd.f32 %v1035_v61, %v640_v49  ;;  %v1089_v0 = vadd.f32 %v1088_v62, %v648_v50  ;;  %v1037_v1 = vpop.f32.mrb[7].mxu0  ;;  %v1090_v2 = vpop.f32.mrb[7].mxu1  ;;  %v1209_v5 = vmax.f32 %v1032_v55, 0.0  ;;  %v1211_v6 = vmax.f32 %v1085_v56, 0.0 }
 0x2c7   : > { %v1038_v3 = vadd.f32 %v1037_v1, %v644_v51  ;;  %v1091_v4 = vadd.f32 %v1090_v2, %v652_v52  ;;  %v1210_v9 = vmax.f32 %v1034_v59, 0.0  ;;  %v1212_v10 = vmax.f32 %v1087_v60, 0.0 }
 0x2c8   : > { %v1217_v7 = vmax.f32 %v1036_v63, 0.0  ;;  %v1219_v8 = vmax.f32 %v1089_v0, 0.0 }
 0x2c9   : > { %v1218_v11 = vmax.f32 %v1038_v3, 0.0  ;;  %v1220_v12 = vmax.f32 %v1091_v4, 0.0 }
 0x2ca   : > { %v1241_v13 = vmax.f32 %v1209_v5, %v1217_v7  ;;  %v1247_v14 = vmax.f32 %v1211_v6, %v1219_v8  ;;  %v655_v8 = vsub.s32 4, %v1890_v44 }
 0x2cb   : > { %v1244_v15 = vmax.f32 %v1210_v9, %v1218_v11  ;;  %v1250_v16 = vmax.f32 %v1212_v10, %v1220_v12  ;;  %v1041_v17 = vpop.f32.mrb[8].mxu0  ;;  %v1094_v18 = vpop.f32.mrb[8].mxu1  ;;  %v663_v9 = vsub.s32 6, %v1890_v44  ;;  %v659_v12 = vsub.s32 5, %v1890_v44 }
 0x2cc   : > { %v1042_v19 = vadd.f32 %v1041_v17, %v640_v49  ;;  %v1095_v20 = vadd.f32 %v1094_v18, %v648_v50  ;;  %v1043_v21 = vpop.f32.mrb[9].mxu0  ;;  %v1096_v22 = vpop.f32.mrb[9].mxu1 }
 0x2cd   : > { %v1044_v23 = vadd.f32 %v1043_v21, %v644_v51  ;;  %v1097_v24 = vadd.f32 %v1096_v22, %v652_v52  ;;  %v1045_v25 = vpop.f32.mrb[10].mxu0  ;;  %v1098_v26 = vpop.f32.mrb[10].mxu1 }
 0x2ce   : > { %v1225_v27 = vmax.f32 %v1042_v19, 0.0  ;;  %v1227_v28 = vmax.f32 %v1095_v20, 0.0  ;;  %v1046_v29 = vadd.f32 %v1045_v25, %v640_v49  ;;  %v1099_v30 = vadd.f32 %v1098_v26, %v648_v50  ;;  %v1047_v31 = vpop.f32.mrb[11].mxu0  ;;  %v1100_v32 = vpop.f32.mrb[11].mxu1 }
 0x2cf   : > { %v1226_v33 = vmax.f32 %v1044_v23, 0.0  ;;  %v1228_v35 = vmax.f32 %v1097_v24, 0.0  ;;  %v1048_v36 = vadd.f32 %v1047_v31, %v644_v51  ;;  %v1101_v37 = vadd.f32 %v1100_v32, %v652_v52 }
 0x2d0   : > { %v1242_v38 = vmax.f32 %v1241_v13, %v1225_v27  ;;  %v1248_v39 = vmax.f32 %v1247_v14, %v1227_v28  ;;  %v1233_v40 = vmax.f32 %v1046_v29, 0.0  ;;  %v1235_v41 = vmax.f32 %v1099_v30, 0.0 }
 0x2d1   : > { %v1245_v42 = vmax.f32 %v1244_v15, %v1226_v33  ;;  %v1251_v43 = vmax.f32 %v1250_v16, %v1228_v35  ;;  %v1234_v45 = vmax.f32 %v1048_v36, 0.0  ;;  %v1236_v46 = vmax.f32 %v1101_v37, 0.0 }
 0x2d2   : > { %v1243_v48 = vmax.f32 %v1242_v38, %v1233_v40  ;;  %v1249_v34 = vmax.f32 %v1248_v39, %v1235_v41  ;;  %v1741_v52 = vmov 1966171168   ;;  %v667_v15 = vsub.s32 7, %v1890_v44 }
 0x2d3   : > { %v1246_v53 = vmax.f32 %v1245_v42, %v1234_v45  ;;  %v1252_v54 = vmax.f32 %v1251_v43, %v1236_v46  ;;  %v1361_v59 = vunpack.c.l.s4 %v1741_v52  ;;  %v656_v19 = vrot.slane %v1897_v47, %v655_v8 }
 0x2d4   : > { %v1300_v49 = vrot.slane %v1243_v48, 4  ;;  %v1312_v50 = vrot.slane %v1249_v34, 4  ;;  %v664_v20 = vrot.slane %v1897_v47, %v663_v9  ;;  %v660_v23 = vrot.slane %v1897_v47, %v659_v12 }
 0x2d5   : > { %v1306_v55 = vrot.slane %v1246_v53, 4  ;;  %v1318_v56 = vrot.slane %v1252_v54, 4  ;;  %v1362_v4 = vunpack.c.0.s8 %v1361_v59  ;;  %v668_v24 = vrot.slane %v1897_v47, %v667_v15 }
 0x2d6   : > { %v1301_v57 = vmax.f32 %v1243_v48, %v1300_v49  ;;  %v1313_v58 = vmax.f32 %v1249_v34, %v1312_v50 }
 0x2d7   : > { %v1307_v51 = vmax.f32 %v1246_v53, %v1306_v55  ;;  %v1319_v60 = vmax.f32 %v1252_v54, %v1318_v56  ;;  %v1910_v17 = vsub.s32 %v1362_v4, %v1890_v44 }
 0x2d8   : > { %v1302_v61 = vrot.slane %v1301_v57, 2  ;;  %v1314_v62 = vrot.slane %v1313_v58, 2 }
 0x2d9   : > { %v1308_v63 = vrot.slane %v1307_v51, 2  ;;  %v1320_v0 = vrot.slane %v1319_v60, 2 }
 0x2da   : > { %v1303_v1 = vmax.f32 %v1301_v57, %v1302_v61  ;;  %v1315_v2 = vmax.f32 %v1313_v58, %v1314_v62 }
 0x2db   : > { %v1309_v3 = vmax.f32 %v1307_v51, %v1308_v63  ;;  %v1321_v5 = vmax.f32 %v1319_v60, %v1320_v0 }
 0x2dc   : > { %v1304_v6 = vrot.slane %v1303_v1, 1  ;;  %v1316_v7 = vrot.slane %v1315_v2, 1 }
 0x2dd   : > { %v1310_v10 = vrot.slane %v1309_v3, 1  ;;  %v1322_v11 = vrot.slane %v1321_v5, 1 }
 0x2de   : > { %v1305_v13 = vmax.f32 %v1303_v1, %v1304_v6  ;;  %v1317_v14 = vmax.f32 %v1315_v2, %v1316_v7 }
 0x2df   : > { %v1311_v16 = vmax.f32 %v1309_v3, %v1310_v10  ;;  %v1323_v18 = vmax.f32 %v1321_v5, %v1322_v11 }
 0x2e1   : > { %v1356_v21 = vcombine.low %v1305_v13, %v1311_v16  ;;  %v1357_v22 = vcombine.low %v1317_v14, %v1323_v18 }
 0x2e3   : > { %v1917_v25 = vrot.slane %v1356_v21, %v1910_v17  ;;  %v1920_v26 = vrot.slane %v1357_v22, %v1910_v17  ;;  %v1137_v27 = vpop.f32.mrb[12].mxu0  ;;  %v1190_v44 = vpop.f32.mrb[12].mxu1 }
 0x2e4   : > { %v1138_v28 = vadd.f32 %v1137_v27, %v656_v19  ;;  %v1191_v29 = vadd.f32 %v1190_v44, %v664_v20  ;;  %v1139_v30 = vpop.f32.mrb[13].mxu0  ;;  %v1192_v31 = vpop.f32.mrb[13].mxu1 }
 0x2e5   : > { %v1388_v32 = vcombine.low %v1917_v25, %v1920_v26  ;;  %v1140_v33 = vadd.f32 %v1139_v30, %v660_v23  ;;  %v1141_v35 = vpop.f32.mrb[14].mxu0  ;;  %v1194_v36 = vpop.f32.mrb[14].mxu1  ;;  %v1193_v37 = vadd.f32 %v1192_v31, %v668_v24 }
 0x2e6   : > { %v1142_v47 = vadd.f32 %v1141_v35, %v656_v19  ;;  %v1195_v38 = vadd.f32 %v1194_v36, %v664_v20  ;;  %v1143_v39 = vpop.f32.mrb[15].mxu0  ;;  %v1196_v40 = vpop.f32.mrb[15].mxu1  ;;  %v1213_v41 = vmax.f32 %v1138_v28, 0.0  ;;  %v1215_v43 = vmax.f32 %v1191_v29, 0.0 }
 0x2e7   : > { %v1144_v42 = vadd.f32 %v1143_v39, %v660_v23  ;;  %v1197_v48 = vadd.f32 %v1196_v40, %v668_v24  ;;  %v1214_v34 = vmax.f32 %v1140_v33, 0.0  ;;  %v1216_v54 = vmax.f32 %v1193_v37, 0.0 }
 0x2e8   : > { %v1221_v45 = vmax.f32 %v1142_v47, 0.0  ;;  %v1223_v46 = vmax.f32 %v1195_v38, 0.0 }
 0x2e9   : > { %v1222_v53 = vmax.f32 %v1144_v42, 0.0  ;;  %v1224_v55 = vmax.f32 %v1197_v48, 0.0 }
 0x2ea   : > { %v1253_v49 = vmax.f32 %v1213_v41, %v1221_v45  ;;  %v1259_v50 = vmax.f32 %v1215_v43, %v1223_v46 }
 0x2eb   : > { %v1256_v56 = vmax.f32 %v1214_v34, %v1222_v53  ;;  %v1147_v57 = vpop.f32.mrb[16].mxu0  ;;  %v1200_v58 = vpop.f32.mrb[16].mxu1  ;;  %v1262_v51 = vmax.f32 %v1216_v54, %v1224_v55 }
 0x2ec   : > { %v1148_v52 = vadd.f32 %v1147_v57, %v656_v19  ;;  %v1201_v59 = vadd.f32 %v1200_v58, %v664_v20  ;;  %v1149_v60 = vpop.f32.mrb[17].mxu0  ;;  %v1202_v61 = vpop.f32.mrb[17].mxu1 }
 0x2ed   : > { %v1150_v62 = vadd.f32 %v1149_v60, %v660_v23  ;;  %v1203_v63 = vadd.f32 %v1202_v61, %v668_v24  ;;  %v1151_v0 = vpop.f32.mrb[18].mxu0  ;;  %v1204_v1 = vpop.f32.mrb[18].mxu1 }
 0x2ee   : > { %v1229_v2 = vmax.f32 %v1148_v52, 0.0  ;;  %v1231_v3 = vmax.f32 %v1201_v59, 0.0  ;;  %v1152_v4 = vadd.f32 %v1151_v0, %v656_v19  ;;  %v1205_v5 = vadd.f32 %v1204_v1, %v664_v20  ;;  %v1153_v6 = vpop.f32.mrb[19].mxu0  ;;  %v1206_v7 = vpop.f32.mrb[19].mxu1 }
 0x2ef   : > { %v1230_v8 = vmax.f32 %v1150_v62, 0.0  ;;  %v1232_v9 = vmax.f32 %v1203_v63, 0.0  ;;  %v1154_v10 = vadd.f32 %v1153_v6, %v660_v23  ;;  %v1207_v11 = vadd.f32 %v1206_v7, %v668_v24 }
 0x2f0   : > { %v1254_v12 = vmax.f32 %v1253_v49, %v1229_v2  ;;  %v1260_v13 = vmax.f32 %v1259_v50, %v1231_v3  ;;  %v1237_v14 = vmax.f32 %v1152_v4, 0.0  ;;  %v1239_v15 = vmax.f32 %v1205_v5, 0.0 }
 0x2f1   : > { %v1257_v16 = vmax.f32 %v1256_v56, %v1230_v8  ;;  %v1263_v18 = vmax.f32 %v1262_v51, %v1232_v9  ;;  %v1238_v21 = vmax.f32 %v1154_v10, 0.0  ;;  %v1240_v22 = vmax.f32 %v1207_v11, 0.0 }
 0x2f2   : > { %v1255_v27 = vmax.f32 %v1254_v12, %v1237_v14  ;;  %v1261_v44 = vmax.f32 %v1260_v13, %v1239_v15  ;;  %v1396_v51 = vrot.slane %v1388_v32, %v1910_v17 }
 0x2f3   : > { %v1258_v28 = vmax.f32 %v1257_v16, %v1238_v21  ;;  %v1264_v29 = vmax.f32 %v1263_v18, %v1240_v22 }
 0x2f4   : > { %v1324_v19 = vrot.slane %v1255_v27, 4  ;;  %v1336_v20 = vrot.slane %v1261_v44, 4 }
 0x2f5   : > { %v1330_v30 = vrot.slane %v1258_v28, 4  ;;  %v1342_v31 = vrot.slane %v1264_v29, 4 }
 0x2f6   : > { %v1325_v33 = vmax.f32 %v1255_v27, %v1324_v19  ;;  %v1337_v35 = vmax.f32 %v1261_v44, %v1336_v20 }
 0x2f7   : > { %v1331_v23 = vmax.f32 %v1258_v28, %v1330_v30  ;;  %v1343_v24 = vmax.f32 %v1264_v29, %v1342_v31 }
 0x2f8   : > { %v1326_v36 = vrot.slane %v1325_v33, 2  ;;  %v1338_v37 = vrot.slane %v1337_v35, 2 }
 0x2f9   : > { %v1332_v47 = vrot.slane %v1331_v23, 2  ;;  %v1344_v38 = vrot.slane %v1343_v24, 2 }
 0x2fa   : > { %v1327_v39 = vmax.f32 %v1325_v33, %v1326_v36  ;;  %v1339_v40 = vmax.f32 %v1337_v35, %v1338_v37 }
 0x2fb   : > { %v1333_v41 = vmax.f32 %v1331_v23, %v1332_v47  ;;  %v1345_v42 = vmax.f32 %v1343_v24, %v1344_v38 }
 0x2fc   : > { %v1328_v43 = vrot.slane %v1327_v39, 1  ;;  %v1340_v45 = vrot.slane %v1339_v40, 1 }
 0x2fd   : > { %v1334_v46 = vrot.slane %v1333_v41, 1  ;;  %v1346_v48 = vrot.slane %v1345_v42, 1 }
 0x2fe   : > { %v1329_v34 = vmax.f32 %v1327_v39, %v1328_v43  ;;  %v1341_v53 = vmax.f32 %v1339_v40, %v1340_v45 }
 0x2ff   : > { %v1335_v54 = vmax.f32 %v1333_v41, %v1334_v46  ;;  %v1347_v49 = vmax.f32 %v1345_v42, %v1346_v48 }
 0x301   : > { %v1358_v50 = vcombine.low %v1329_v34, %v1335_v54  ;;  %v1359_v55 = vcombine.low %v1341_v53, %v1347_v49 }
 0x303   : > { %v1380_v56 = vrot.slane %v1358_v50, %v1910_v17  ;;  %v1387_v57 = vrot.slane %v1359_v55, %v1910_v17 }
 0x305   : > { %v1389_v58 = vcombine.low %v1380_v56, %v1387_v57 }
 0x307   : > { %v1403_v52 = vrot.slane %v1389_v58, %v1910_v17 }
 0x309   : > { %v1404_v59 = vcombine.low %v1396_v51, %v1403_v52 }
 0x30b   : > { %1406 = vst [vmem:[%s364_s9] sm:$0xff] %v1404_v59 }
 0x30c PF: > { %s18_s26 = sadd.s32 1, %s1734_s26   ;;  %s1960_s24 = smov %s1730_s25 }
 0x30d   : > { %p15_p4 = scmp.ge.s32.totalorder %s18_s26, 4   ;;  %s1961_s25 = smov %s1963_s28 }
 0x30f   :  { %17 = sbr.rel (!%p15_p4) target bundleno = 2 (0x2), region = 95 }
 0x316   :  { %1435 = vsyncpa [#allocation4], 1 }
 0x317   :  { %1437 = vsyncpa [#allocation4 + $0x1], 1 }

// kernel: _lambda_.5
= control target key start
LH: loop header
LB: loop body
LE: loop exit
PB: predicated region body
PF: predicated region fallthrough
CT: control target
= control target key end

     0   :  { %s1700_s24 = smov 0   ;;  %s1702_s25 = smov 0   ;;  %s2011_s0 = inlined_call_operand.vmem [shape: bf16[2,32,3], index: 0, kind: input, shape index: {}]   ;;  %s2012_s1 = inlined_call_operand.vmem [shape: bf16[3,64], index: 1, kind: input, shape index: {}]   ;;  %s2013_s2 = inlined_call_operand.vmem [shape: f32[1,64], index: 2, kind: input, shape index: {}]   ;;  %s2014_s3 = inlined_call_operand.vmem [shape: bf16[64,128], index: 3, kind: input, shape index: {}]   ;;  %s2015_s4 = inlined_call_operand.vmem [shape: f32[1,128], index: 4, kind: input, shape index: {}]   ;;  %s2016_s5 = inlined_call_operand.vmem [shape: bf16[128,1024], index: 5, kind: input, shape index: {}]   ;;  %s2017_s6 = inlined_call_operand.vmem [shape: f32[1,1024], index: 6, kind: input, shape index: {}]   ;;  %s2018_s7 = inlined_call_operand.vmem [shape: f32[2,1,1024], index: 7, kind: output, shape index: {}]  }
   0x1   :  { %s1704_s26 = smov 0  }
   0x2 LB: > { %s36_s27 = sadd.s32 1, %s1651_s25  ;;  %p1490_p0 = scmp.ge.s32.totalorder %s1655_s26, 1  ;;  %s1655_s26 = sphi %s1704_s26, %s17_s26   ;;  %s1651_s25 = sphi %s1702_s25, %s2020_s25   ;;  %s1647_s24 = sphi %s1700_s24, %s2019_s24  }
   0x3   : > { %p38_p1 = scmp.ge.s32.totalorder %s36_s27, 2  ;;  %p286_p2 = scmp.lt.s32.totalorder %s1655_s26, 3 }
   0x5   : > { %s2022_s27 = smov (%p38_p1, %s36_s27), 0  ;;  %p287_p3 = pnand %p1490_p0, %p286_p2 }
   0x6   : > { %v381_v0 = vld [vmem:[%s2012_s1] sm:$0x3] (!%p287_p3)  ;;  %vm406_vm0 = vcmask (!%p287_p3), 1040384   ;;  %vm407_vm1 = vcmask (!%p287_p3), 1041408   ;;  %p335_p4 = scmp.lt.s32.totalorder (!%p287_p3), %s1647_s24, 1  ;;  %v1657_v1 = vmov (!%p287_p3), 65535  }
   0x7   : > { %290 = sbr.rel (%p287_p3) target bundleno = 744 (0x2e8), region = 48  ;;  %v408_v2 = vsel (!%p287_p3), %vm406_vm0, 4294967295, %v1657_v1  ;;  %v1629_v4 = vld [vmem:[%s2014_s3] sm:$0xff] (!%p287_p3)   ;;  %v1630_v5 = vld [vmem:[%s2014_s3 + $0x8] sm:$0xff] (!%p287_p3)   ;;  %vm399_vm2 = vcmask (!%p287_p3), 23552   ;;  %v1631_v9 = vld [vmem:[%s2014_s3 + $0x10] sm:$0xff] (!%p287_p3)  }
   0x8   : > { %v409_v3 = vsel (!%p287_p3), %vm407_vm1, %v408_v2, 0  ;;  %1588 = vmatprep.subr.bf16.mxu1 (!%p287_p3), %v1629_v4  ;;  %v1632_v10 = vld [vmem:[%s2014_s3 + $0x18] sm:$0xff] (!%p287_p3)   ;;  %v569_v11 = vld [vmem:[%s2016_s5] sm:$0xff] (!%p287_p3)  ;;  %v570_v13 = vld [vmem:[%s2016_s5 + $0x8] sm:$0xff] (!%p287_p3)  ;;  %vm507_vm3 = vcmask (!%p287_p3), 523264  }
   0x9   : > { %v411_v6 = vand.u32 (!%p287_p3), %v409_v3, %v381_v0  ;;  %1589 = vmatpush3.bf16.msra.mxu1 (!%p287_p3), %v1629_v4  ;;  %v573_v12 = vld [vmem:[%s2016_s5 + $0x20] sm:$0xff] (!%p287_p3)  ;;  %v574_v16 = vld [vmem:[%s2016_s5 + $0x28] sm:$0xff] (!%p287_p3) }
   0xa   : > { %1590 = vmatprep.subr.bf16.mxu1 (!%p287_p3), %v1630_v5  ;;  %v1506_v14 = vcombine.low (!%p287_p3), %v569_v11, %v573_v12  ;;  %v1507_v15 = vcombine.high (!%p287_p3), %v569_v11, %v573_v12  ;;  %v577_v17 = vld [vmem:[%s2016_s5 + $0x40] sm:$0xff] (!%p287_p3)  ;;  %v1508_v19 = vcombine.low (!%p287_p3), %v570_v13, %v574_v16  ;;  %v1509_v20 = vcombine.high (!%p287_p3), %v570_v13, %v574_v16  ;;  %v578_v52 = vld [vmem:[%s2016_s5 + $0x48] sm:$0xff] (!%p287_p3) }
   0xb   : > { %1582 = vmatprep.subr.bf16.mxu0 (!%p287_p3), %v411_v6  ;;  %v581_v18 = vld [vmem:[%s2016_s5 + $0x60] sm:$0xff] (!%p287_p3)  ;;  %v582_v53 = vld [vmem:[%s2016_s5 + $0x68] sm:$0xff] (!%p287_p3) }
   0xc   : > { %1583 = vmatpush3.bf16.msra.mxu0 (!%p287_p3), %v411_v6  ;;  %v1515_v21 = vcombine.high (!%p287_p3), %v577_v17, %v581_v18  ;;  %v1514_v22 = vcombine.low (!%p287_p3), %v577_v17, %v581_v18  ;;  %v585_v23 = vld [vmem:[%s2016_s5 + $0x80] sm:$0xff] (!%p287_p3)  ;;  %v1517_v56 = vcombine.high (!%p287_p3), %v578_v52, %v582_v53  ;;  %v586_v57 = vld [vmem:[%s2016_s5 + $0x88] sm:$0xff] (!%p287_p3)  ;;  %v1516_v59 = vcombine.low (!%p287_p3), %v578_v52, %v582_v53 }
   0xd   : > { %1591 = vmatpush3.bf16.msra.mxu1 (!%p287_p3), %v1630_v5  ;;  %995 = vmatprep.subr.bf16.mxu0 (!%p287_p3), %v1507_v15  ;;  %v589_v24 = vld [vmem:[%s2016_s5 + $0xa0] sm:$0xff] (!%p287_p3)  ;;  %v590_v58 = vld [vmem:[%s2016_s5 + $0xa8] sm:$0xff] (!%p287_p3) }
   0xe   : > { %s2024_s24 = smov (!%p335_p4, %s1647_s24), 1  ;;  %1592 = vmatprep.subr.bf16.mxu1 %v1631_v9  ;;  %v1523_v25 = vcombine.high %v585_v23, %v589_v24  ;;  %v1522_v26 = vcombine.low %v585_v23, %v589_v24  ;;  %v593_v27 = vld [vmem:[%s2016_s5 + $0xc0] sm:$0xff]  ;;  %v1525_v60 = vcombine.high %v586_v57, %v590_v58  ;;  %v594_v61 = vld [vmem:[%s2016_s5 + $0xc8] sm:$0xff]  ;;  %v1524_v63 = vcombine.low %v586_v57, %v590_v58  ;;  %v591_v57 = vld [vmem:[%s2016_s5 + $0xb0] sm:$0xff] }
   0xf   : > { %s1572_s11 = sshll.u32 %s2024_s24, 4  ;;  %v597_v28 = vld [vmem:[%s2016_s5 + $0xe0] sm:$0xff]  ;;  %v598_v62 = vld [vmem:[%s2016_s5 + $0xe8] sm:$0xff]  ;;  %v588_v58 = vld [vmem:[%s2016_s5 + $0x98] sm:$0xff]  ;;  %s1493_s20 = sshll.u32 %s2024_s24, 3 }
  0x10   : > { %s342_s14 = scalar_lea.vmem %s2011_s0, %s1572_s11  ;;  %v1531_v29 = vcombine.high %v593_v27, %v597_v28  ;;  %v1530_v30 = vcombine.low %v593_v27, %v597_v28  ;;  %v601_v31 = vld [vmem:[%s2016_s5 + $0x100] sm:$0xff]  ;;  %v1533_v0 = vcombine.high %v594_v61, %v598_v62  ;;  %v602_v1 = vld [vmem:[%s2016_s5 + $0x108] sm:$0xff]  ;;  %v1532_v3 = vcombine.low %v594_v61, %v598_v62  ;;  %v575_v27 = vld [vmem:[%s2016_s5 + $0x30] sm:$0xff]  ;;  %s362_s23 = scalar_lea.vmem %s2018_s7, %s1493_s20 }
  0x11   : > { %v1627_v7 = vld [vmem:[%s342_s14] sm:$0xff]   ;;  %v1628_v8 = vld [vmem:[%s342_s14 + $0x8] sm:$0xff]   ;;  %1593 = vmatpush3.bf16.msra.mxu1 %v1631_v9  ;;  %v572_v28 = vld [vmem:[%s2016_s5 + $0x18] sm:$0xff] }
  0x12   : > { %1584 = vmatprep.mubr.msk.bf16.mxu0 %vm399_vm2, %v1627_v7  ;;  %1594 = vmatprep.subr.bf16.mxu1 %v1632_v10  ;;  %v605_v32 = vld [vmem:[%s2016_s5 + $0x120] sm:$0xff]  ;;  %v606_v2 = vld [vmem:[%s2016_s5 + $0x128] sm:$0xff] }
  0x13   : > { %1585 = vmatmul.mubr.msk.bf16.vlgmr.msra.gmra.mrb[0].mxu0 %vm399_vm2, %v1628_v8  ;;  %v1539_v33 = vcombine.high %v601_v31, %v605_v32  ;;  %v1538_v34 = vcombine.low %v601_v31, %v605_v32  ;;  %v609_v35 = vld [vmem:[%s2016_s5 + $0x140] sm:$0xff]  ;;  %v1541_v4 = vcombine.high %v602_v1, %v606_v2  ;;  %v610_v5 = vld [vmem:[%s2016_s5 + $0x148] sm:$0xff]  ;;  %v1540_v7 = vcombine.low %v602_v1, %v606_v2  ;;  %v599_v1 = vld [vmem:[%s2016_s5 + $0xf0] sm:$0xff] }
  0x14   : > { %996 = vmatpush1.bf16.msra.mxu0 %v1506_v14  ;;  %v613_v36 = vld [vmem:[%s2016_s5 + $0x160] sm:$0xff]  ;;  %v614_v6 = vld [vmem:[%s2016_s5 + $0x168] sm:$0xff]  ;;  %v596_v2 = vld [vmem:[%s2016_s5 + $0xd8] sm:$0xff] }
  0x15   : > { %1595 = vmatpush3.bf16.msra.mxu1 %v1632_v10  ;;  %997 = vmatprep.subr.bf16.mxu0 %v1515_v21  ;;  %v1547_v37 = vcombine.high %v609_v35, %v613_v36  ;;  %v1546_v38 = vcombine.low %v609_v35, %v613_v36  ;;  %v1494_v39 = vld [vmem:[%s2013_s2] ss:$0 sm:$0xff]  ;;  %v1549_v8 = vcombine.high %v610_v5, %v614_v6  ;;  %v618_v12 = vld [vmem:[%s2016_s5 + $0x188] sm:$0xff] }
  0x16   : > { %1048 = vmatprep.subr.bf16.mxu1 %v1509_v20  ;;  %v1548_v9 = vcombine.low %v610_v5, %v614_v6  ;;  %v617_v10 = vld [vmem:[%s2016_s5 + $0x180] sm:$0xff]  ;;  %v622_v14 = vld [vmem:[%s2016_s5 + $0x1a8] sm:$0xff] }
  0x17   : > { %v621_v11 = vld [vmem:[%s2016_s5 + $0x1a0] sm:$0xff]  ;;  %v1556_v16 = vcombine.low %v618_v12, %v622_v14  ;;  %v1557_v17 = vcombine.high %v618_v12, %v622_v14  ;;  %v626_v20 = vld [vmem:[%s2016_s5 + $0x1c8] sm:$0xff] }
  0x18   : > { %998 = vmatpush1.bf16.msra.mxu0 %v1514_v22  ;;  %v1555_v13 = vcombine.high %v617_v10, %v621_v11  ;;  %v1554_v15 = vcombine.low %v617_v10, %v621_v11  ;;  %v625_v18 = vld [vmem:[%s2016_s5 + $0x1c0] sm:$0xff]  ;;  %v630_v22 = vld [vmem:[%s2016_s5 + $0x1e8] sm:$0xff]  ;;  %v604_v10 = vld [vmem:[%s2016_s5 + $0x118] sm:$0xff] }
  0x19   : > { %999 = vmatprep.subr.bf16.mxu0 %v1523_v25  ;;  %v1564_v24 = vcombine.low %v626_v20, %v630_v22  ;;  %v1565_v25 = vcombine.high %v626_v20, %v630_v22  ;;  %v1499_v35 = vld [vmem:[%s2015_s4] ss:$0 sm:$0xff]  ;;  %v608_v11 = vld [vmem:[%s2016_s5 + $0x138] sm:$0xff] }
  0x1c   : > { %1000 = vmatpush1.bf16.msra.mxu0 %v1522_v26  ;;  %v571_v26 = vld [vmem:[%s2016_s5 + $0x10] sm:$0xff] }
  0x1d   : > { %1001 = vmatprep.subr.bf16.mxu0 %v1531_v29  ;;  %v1511_v29 = vcombine.high %v571_v26, %v575_v27  ;;  %v1510_v31 = vcombine.low %v571_v26, %v575_v27  ;;  %v620_v26 = vld [vmem:[%s2016_s5 + $0x198] sm:$0xff] }
  0x1e   : > { %v624_v27 = vld [vmem:[%s2016_s5 + $0x1b8] sm:$0xff] }
  0x20   : > { %1002 = vmatpush1.bf16.msra.mxu0 %v1530_v30  ;;  %v576_v30 = vld [vmem:[%s2016_s5 + $0x38] sm:$0xff] }
  0x21   : > { %1003 = vmatprep.subr.bf16.mxu0 %v1539_v33  ;;  %v1512_v32 = vcombine.low %v572_v28, %v576_v30  ;;  %v1513_v33 = vcombine.high %v572_v28, %v576_v30 }
  0x24   : > { %1004 = vmatpush1.bf16.msra.mxu0 %v1538_v34  ;;  %v1658_v34 = vmov 0  }
  0x25   : > { %1005 = vmatprep.subr.bf16.mxu0 %v1547_v37  ;;  %1027 = vmatprep.mubr.bf16.mxu0 %v1658_v34 }
  0x28   : > { %1006 = vmatpush1.bf16.msra.mxu0 %v1546_v38 }
  0x29   : > { %1007 = vmatprep.subr.bf16.mxu0 %v1555_v13 }
  0x2c   : > { %1008 = vmatpush1.bf16.msra.mxu0 %v1554_v15  ;;  %v1545_v15 = vcombine.high %v604_v10, %v608_v11 }
  0xe6   : > { %v1586_v40 = vpop.f32.mrb[0].mxu0 }
  0xe7   : > { %v456_v41 = vadd.f32 %v1586_v40, %v1494_v39  ;;  %v447_v42 = vpop.f32.mrb[1].mxu0 }
  0xe8   : > { %v448_v43 = vadd.f32 %v1494_v39, %v447_v42  ;;  %v1587_v44 = vpop.f32.mrb[2].mxu0 }
  0xe9   : > { %v459_v45 = vadd.f32 %v1587_v44, %v1494_v39  ;;  %v450_v46 = vpop.f32.mrb[3].mxu0  ;;  %v464_v48 = vmax.f32 %v456_v41, 0.0  ;;  %v579_v44 = vld [vmem:[%s2016_s5 + $0x50] sm:$0xff] }
  0xea   : > { %v451_v47 = vadd.f32 %v1494_v39, %v450_v46  ;;  %v462_v50 = vmax.f32 %v448_v43, 0.0 }
  0xeb   : > { %v465_v49 = vmax.f32 %v459_v45, 0.0 }
  0xec   : > { %v463_v51 = vmax.f32 %v451_v47, 0.0  ;;  %v583_v47 = vld [vmem:[%s2016_s5 + $0x70] sm:$0xff] }
  0xed   : > { %v467_v54 = vpack.c.bf16 %v465_v49, %v464_v48  ;;  %v580_v48 = vld [vmem:[%s2016_s5 + $0x58] sm:$0xff] }
  0xee   : > { %v466_v55 = vpack.c.bf16 %v463_v51, %v462_v50  ;;  %v584_v49 = vld [vmem:[%s2016_s5 + $0x78] sm:$0xff] }
  0xef   : > { %v1520_v61 = vcombine.low %v580_v48, %v584_v49 }
  0xf0   : > { %1596 = vmatprep.mubr.msk.bf16.mxu1 %vm507_vm3, %v466_v55  ;;  %v1521_v55 = vcombine.high %v580_v48, %v584_v49 }
  0xf1   : > { %1597 = vmatmul.mubr.msk.bf16.vlgmr.msra.gmra.mrb[0].mxu1 %vm507_vm3, %v467_v54  ;;  %v1519_v54 = vcombine.high %v579_v44, %v583_v47 }
  0xf2   : > { %1049 = vmatpush1.bf16.msra.mxu1 %v1508_v19  ;;  %v629_v19 = vld [vmem:[%s2016_s5 + $0x1e0] sm:$0xff]  ;;  %1080 = vmatprep.mubr.bf16.mxu1 %v1658_v34 }
  0xf3   : > { %1050 = vmatprep.subr.bf16.mxu1 %v1517_v56  ;;  %v1563_v21 = vcombine.high %v625_v18, %v629_v19  ;;  %v1562_v23 = vcombine.low %v625_v18, %v629_v19  ;;  %v587_v56 = vld [vmem:[%s2016_s5 + $0x90] sm:$0xff]  ;;  %v612_v18 = vld [vmem:[%s2016_s5 + $0x158] sm:$0xff] }
  0xf4   : > { %v1527_v62 = vcombine.high %v587_v56, %v591_v57  ;;  %v616_v19 = vld [vmem:[%s2016_s5 + $0x178] sm:$0xff] }
  0xf5   : > { %1009 = vmatprep.subr.bf16.mxu0 %v1563_v21  ;;  %v1544_v21 = vcombine.low %v604_v10, %v608_v11 }
  0xf6   : > { %1051 = vmatpush1.bf16.msra.mxu1 %v1516_v59  ;;  %1010 = vmatpush1.bf16.msra.mxu0 %v1562_v23  ;;  %v592_v59 = vld [vmem:[%s2016_s5 + $0xb8] sm:$0xff]  ;;  %v1553_v23 = vcombine.high %v612_v18, %v616_v19 }
  0xf7   : > { %1052 = vmatprep.subr.bf16.mxu1 %v1525_v60  ;;  %1101 = vmatprep.subr.bf16.mxu0 %v1511_v29  ;;  %v1518_v60 = vcombine.low %v579_v44, %v583_v47  ;;  %v1528_v5 = vcombine.low %v588_v58, %v592_v59  ;;  %v1552_v29 = vcombine.low %v612_v18, %v616_v19  ;;  %v1964_v47 = vld [vmem:[%s2017_s6] sm:$0xff] }
  0xfa   : > { %1053 = vmatpush1.bf16.msra.mxu1 %v1524_v63  ;;  %v1529_v63 = vcombine.high %v588_v58, %v592_v59 }
  0xfb   : > { %1054 = vmatprep.subr.bf16.mxu1 %v1533_v0  ;;  %v595_v0 = vld [vmem:[%s2016_s5 + $0xd0] sm:$0xff] }
  0xfc   : > { %v1535_v6 = vcombine.high %v595_v0, %v599_v1  ;;  %v1534_v12 = vcombine.low %v595_v0, %v599_v1 }
  0xfe   : > { %1055 = vmatpush1.bf16.msra.mxu1 %v1532_v3  ;;  %v600_v3 = vld [vmem:[%s2016_s5 + $0xf8] sm:$0xff] }
  0xff   : > { %1056 = vmatprep.subr.bf16.mxu1 %v1541_v4  ;;  %v1526_v4 = vcombine.low %v587_v56, %v591_v57  ;;  %v1536_v13 = vcombine.low %v596_v2, %v600_v3 }
 0x102   : > { %1057 = vmatpush1.bf16.msra.mxu1 %v1540_v7  ;;  %v1537_v7 = vcombine.high %v596_v2, %v600_v3 }
 0x103   : > { %1058 = vmatprep.subr.bf16.mxu1 %v1549_v8  ;;  %v603_v8 = vld [vmem:[%s2016_s5 + $0x110] sm:$0xff] }
 0x106   : > { %1059 = vmatpush1.bf16.msra.mxu1 %v1548_v9  ;;  %v607_v9 = vld [vmem:[%s2016_s5 + $0x130] sm:$0xff] }
 0x107   : > { %1060 = vmatprep.subr.bf16.mxu1 %v1557_v17  ;;  %v1543_v14 = vcombine.high %v603_v8, %v607_v9  ;;  %v615_v17 = vld [vmem:[%s2016_s5 + $0x170] sm:$0xff]  ;;  %v1542_v20 = vcombine.low %v603_v8, %v607_v9 }
 0x10a   : > { %1061 = vmatpush1.bf16.msra.mxu1 %v1556_v16  ;;  %v611_v16 = vld [vmem:[%s2016_s5 + $0x150] sm:$0xff] }
 0x10b   : > { %1062 = vmatprep.subr.bf16.mxu1 %v1565_v25  ;;  %v1551_v22 = vcombine.high %v611_v16, %v615_v17  ;;  %v623_v25 = vld [vmem:[%s2016_s5 + $0x1b0] sm:$0xff]  ;;  %v1550_v28 = vcombine.low %v611_v16, %v615_v17 }
 0x10e   : > { %1063 = vmatpush1.bf16.msra.mxu1 %v1564_v24  ;;  %v619_v24 = vld [vmem:[%s2016_s5 + $0x190] sm:$0xff] }
 0x10f   : > { %1154 = vmatprep.subr.bf16.mxu1 %v1513_v33  ;;  %v1559_v30 = vcombine.high %v619_v24, %v623_v25  ;;  %v631_v33 = vld [vmem:[%s2016_s5 + $0x1f0] sm:$0xff] }
 0x1c4   : > { %v1598_v36 = vpop.f32.mrb[0].mxu1 }
 0x1c5   : > { %v557_v37 = vadd.f32 %v1598_v36, %v1499_v35  ;;  %v548_v38 = vpop.f32.mrb[1].mxu1  ;;  %v632_v36 = vld [vmem:[%s2016_s5 + $0x1f8] sm:$0xff] }
 0x1c6   : > { %v549_v39 = vadd.f32 %v1499_v35, %v548_v38  ;;  %v1599_v40 = vpop.f32.mrb[2].mxu1  ;;  %v1560_v38 = vcombine.low %v620_v26, %v624_v27 }
 0x1c7   : > { %v560_v41 = vadd.f32 %v1599_v40, %v1499_v35  ;;  %v551_v42 = vpop.f32.mrb[3].mxu1  ;;  %v565_v45 = vmax.f32 %v557_v37, 0.0  ;;  %v1558_v37 = vcombine.low %v619_v24, %v623_v25 }
 0x1c8   : > { %v552_v43 = vadd.f32 %v1499_v35, %v551_v42  ;;  %v563_v50 = vmax.f32 %v549_v39, 0.0  ;;  %v628_v35 = vld [vmem:[%s2016_s5 + $0x1d8] sm:$0xff] }
 0x1c9   : > { %v566_v46 = vmax.f32 %v560_v41, 0.0  ;;  %v1569_v40 = vcombine.high %v628_v35, %v632_v36  ;;  %v1568_v42 = vcombine.low %v628_v35, %v632_v36 }
 0x1ca   : > { %v564_v51 = vmax.f32 %v552_v43, 0.0  ;;  %v635_v43 = vlaneseq }
 0x1cb   : > { %v1867_v52 = vpack.c.bf16 %v566_v46, %v565_v45 }
 0x1cc   : > { %v1869_v53 = vpack.c.bf16 %v564_v51, %v563_v50  ;;  %v1957_v44 = vshrl.u32 %v635_v43, 7 }
 0x1ce   : > { %1028 = vmatmul.mubr.bf16.vlgmr.msra.gmra.mrb[4].mxu0 %v1869_v53  ;;  %1081 = vmatmul.mubr.bf16.vlgmr.msra.gmra.mrb[4].mxu1 %v1869_v53  ;;  %v637_v45 = vsub.s32 0, %v1957_v44  ;;  %v645_v46 = vsub.s32 2, %v1957_v44  ;;  %v641_v48 = vsub.s32 1, %v1957_v44 }
 0x1cf   : > { %1102 = vmatpush1.bf16.msra.mxu0 %v1510_v31  ;;  %1155 = vmatpush1.bf16.msra.mxu1 %v1512_v32  ;;  %v1561_v31 = vcombine.high %v620_v26, %v624_v27  ;;  %v627_v32 = vld [vmem:[%s2016_s5 + $0x1d0] sm:$0xff] }
 0x1d0   : > { %1103 = vmatprep.subr.bf16.mxu0 %v1519_v54  ;;  %1156 = vmatprep.subr.bf16.mxu1 %v1521_v55  ;;  %v1567_v39 = vcombine.high %v627_v32, %v631_v33  ;;  %v1566_v41 = vcombine.low %v627_v32, %v631_v33  ;;  %v638_v49 = vrot.slane %v1964_v47, %v637_v45 }
 0x1d1   : > { %1037 = vmatprep.mubr.bf16.mxu0 %v1658_v34  ;;  %1090 = vmatprep.mubr.bf16.mxu1 %v1658_v34  ;;  %v646_v50 = vrot.slane %v1964_v47, %v645_v46 }
 0x1d3   : > { %1104 = vmatpush1.bf16.msra.mxu0 %v1518_v60  ;;  %1157 = vmatpush1.bf16.msra.mxu1 %v1520_v61 }
 0x1d4   : > { %1105 = vmatprep.subr.bf16.mxu0 %v1527_v62  ;;  %1158 = vmatprep.subr.bf16.mxu1 %v1529_v63 }
 0x1d6   : > { %1038 = vmatmul.mubr.bf16.gmra.mrb[8].mxu0 %v1867_v52  ;;  %1091 = vmatmul.mubr.bf16.gmra.mrb[8].mxu1 %v1867_v52 }
 0x1d7   : > { %1106 = vmatpush1.bf16.msra.mxu0 %v1526_v4  ;;  %1159 = vmatpush1.bf16.msra.mxu1 %v1528_v5 }
 0x1d8   : > { %1107 = vmatprep.subr.bf16.mxu0 %v1535_v6  ;;  %1160 = vmatprep.subr.bf16.mxu1 %v1537_v7 }
 0x1d9   : > { %1133 = vmatprep.mubr.bf16.mxu0 %v1658_v34  ;;  %1186 = vmatprep.mubr.bf16.mxu1 %v1658_v34 }
 0x1db   : > { %1108 = vmatpush1.bf16.msra.mxu0 %v1534_v12  ;;  %1161 = vmatpush1.bf16.msra.mxu1 %v1536_v13 }
 0x1dc   : > { %1109 = vmatprep.subr.bf16.mxu0 %v1543_v14  ;;  %1162 = vmatprep.subr.bf16.mxu1 %v1545_v15 }
 0x1df   : > { %1110 = vmatpush1.bf16.msra.mxu0 %v1542_v20  ;;  %1163 = vmatpush1.bf16.msra.mxu1 %v1544_v21 }
 0x1e0   : > { %1111 = vmatprep.subr.bf16.mxu0 %v1551_v22  ;;  %1164 = vmatprep.subr.bf16.mxu1 %v1553_v23 }
 0x1e3   : > { %1112 = vmatpush1.bf16.msra.mxu0 %v1550_v28  ;;  %1165 = vmatpush1.bf16.msra.mxu1 %v1552_v29 }
 0x1e4   : > { %1113 = vmatprep.subr.bf16.mxu0 %v1559_v30  ;;  %1166 = vmatprep.subr.bf16.mxu1 %v1561_v31 }
 0x1e7   : > { %1114 = vmatpush1.bf16.msra.mxu0 %v1558_v37  ;;  %1167 = vmatpush1.bf16.msra.mxu1 %v1560_v38 }
 0x1e8   : > { %1115 = vmatprep.subr.bf16.mxu0 %v1567_v39  ;;  %1168 = vmatprep.subr.bf16.mxu1 %v1569_v40 }
 0x1eb   : > { %1116 = vmatpush1.bf16.msra.mxu0 %v1566_v41  ;;  %1169 = vmatpush1.bf16.msra.mxu1 %v1568_v42  ;;  %v1659_v41 = vmov 1966171168  }
 0x1ec   : > { %v1327_v42 = vunpack.c.l.s4 %v1659_v41 }
 0x1ee   : > { %1134 = vmatmul.mubr.bf16.vlgmr.msra.gmra.mrb[12].mxu0 %v1869_v53  ;;  %1187 = vmatmul.mubr.bf16.vlgmr.msra.gmra.mrb[12].mxu1 %v1869_v53  ;;  %v642_v53 = vrot.slane %v1964_v47, %v641_v48 }
 0x1ef   : > { %1143 = vmatprep.mubr.bf16.mxu0 %v1658_v34  ;;  %1196 = vmatprep.mubr.bf16.mxu1 %v1658_v34  ;;  %v649_v34 = vsub.s32 3, %v1957_v44 }
 0x1f1   : > { %v650_v54 = vrot.slane %v1964_v47, %v649_v34 }
 0x1f6   : > { %1144 = vmatmul.mubr.bf16.gmra.mrb[16].mxu0 %v1867_v52  ;;  %1197 = vmatmul.mubr.bf16.gmra.mrb[16].mxu1 %v1867_v52 }
 0x2a1   : > { %v1029_v51 = vpop.f32.mrb[4].mxu0  ;;  %v1082_v52 = vpop.f32.mrb[4].mxu1 }
 0x2a2   : > { %v1031_v55 = vpop.f32.mrb[5].mxu0  ;;  %v1084_v56 = vpop.f32.mrb[5].mxu1  ;;  %v1030_v59 = vadd.f32 %v1029_v51, %v638_v49  ;;  %v1083_v60 = vadd.f32 %v1082_v52, %v646_v50  ;;  %v1328_v52 = vunpack.c.0.s8 %v1327_v42 }
 0x2a3   : > { %v1033_v57 = vpop.f32.mrb[6].mxu0  ;;  %v1086_v58 = vpop.f32.mrb[6].mxu1  ;;  %v1032_v1 = vadd.f32 %v1031_v55, %v642_v53  ;;  %v1085_v2 = vadd.f32 %v1084_v56, %v650_v54 }
 0x2a4   : > { %v1034_v61 = vadd.f32 %v1033_v57, %v638_v49  ;;  %v1087_v62 = vadd.f32 %v1086_v58, %v646_v50  ;;  %v1035_v63 = vpop.f32.mrb[7].mxu0  ;;  %v1088_v0 = vpop.f32.mrb[7].mxu1 }
 0x2a5   : > { %v1036_v3 = vadd.f32 %v1035_v63, %v642_v53  ;;  %v1089_v4 = vadd.f32 %v1088_v0, %v650_v54  ;;  %v653_v63 = vsub.s32 4, %v1957_v44  ;;  %v661_v0 = vsub.s32 6, %v1957_v44 }
 0x2a6   : > { %v1207_v5 = vmax.f32 %v1030_v59, %v1034_v61  ;;  %v1213_v6 = vmax.f32 %v1083_v60, %v1087_v62  ;;  %v1973_v61 = vsub.s32 %v1328_v52, %v1957_v44 }
 0x2a7   : > { %v1210_v7 = vmax.f32 %v1032_v1, %v1036_v3  ;;  %v1216_v8 = vmax.f32 %v1085_v2, %v1089_v4  ;;  %v657_v3 = vsub.s32 5, %v1957_v44  ;;  %v665_v4 = vsub.s32 7, %v1957_v44 }
 0x2a9   : > { %v1039_v9 = vpop.f32.mrb[8].mxu0  ;;  %v1092_v10 = vpop.f32.mrb[8].mxu1 }
 0x2aa   : > { %v1040_v11 = vadd.f32 %v1039_v9, %v638_v49  ;;  %v1093_v12 = vadd.f32 %v1092_v10, %v646_v50  ;;  %v1041_v13 = vpop.f32.mrb[9].mxu0  ;;  %v1094_v14 = vpop.f32.mrb[9].mxu1 }
 0x2ab   : > { %v1042_v15 = vadd.f32 %v1041_v13, %v642_v53  ;;  %v1095_v16 = vadd.f32 %v1094_v14, %v650_v54  ;;  %v1043_v17 = vpop.f32.mrb[10].mxu0  ;;  %v1096_v18 = vpop.f32.mrb[10].mxu1  ;;  %v666_v13 = vrot.slane %v1964_v47, %v665_v4 }
 0x2ac   : > { %v1208_v19 = vmax.f32 %v1207_v5, %v1040_v11  ;;  %v1214_v20 = vmax.f32 %v1213_v6, %v1093_v12  ;;  %v1044_v21 = vadd.f32 %v1043_v17, %v638_v49  ;;  %v1097_v22 = vadd.f32 %v1096_v18, %v646_v50  ;;  %v1045_v23 = vpop.f32.mrb[11].mxu0  ;;  %v1098_v24 = vpop.f32.mrb[11].mxu1 }
 0x2ad   : > { %v1211_v25 = vmax.f32 %v1210_v7, %v1042_v15  ;;  %v1217_v26 = vmax.f32 %v1216_v8, %v1095_v16  ;;  %v1046_v27 = vadd.f32 %v1045_v23, %v642_v53  ;;  %v1099_v28 = vadd.f32 %v1098_v24, %v650_v54 }
 0x2ae   : > { %v1209_v29 = vmax.f32 %v1208_v19, %v1044_v21  ;;  %v1215_v30 = vmax.f32 %v1214_v20, %v1097_v22  ;;  %v654_v7 = vrot.slane %v1964_v47, %v653_v63  ;;  %v662_v8 = vrot.slane %v1964_v47, %v661_v0 }
 0x2af   : > { %v1212_v31 = vmax.f32 %v1211_v25, %v1046_v27  ;;  %v1218_v32 = vmax.f32 %v1217_v26, %v1099_v28  ;;  %v658_v12 = vrot.slane %v1964_v47, %v657_v3 }
 0x2b0   : > { %v1266_v33 = vrot.slane %v1209_v29, 4  ;;  %v1278_v35 = vrot.slane %v1215_v30, 4 }
 0x2b1   : > { %v1272_v36 = vrot.slane %v1212_v31, 4  ;;  %v1284_v37 = vrot.slane %v1218_v32, 4 }
 0x2b2   : > { %v1267_v38 = vmax.f32 %v1209_v29, %v1266_v33  ;;  %v1279_v39 = vmax.f32 %v1215_v30, %v1278_v35 }
 0x2b3   : > { %v1273_v40 = vmax.f32 %v1212_v31, %v1272_v36  ;;  %v1285_v43 = vmax.f32 %v1218_v32, %v1284_v37 }
 0x2b4   : > { %v1268_v45 = vrot.slane %v1267_v38, 2  ;;  %v1280_v46 = vrot.slane %v1279_v39, 2 }
 0x2b5   : > { %v1274_v48 = vrot.slane %v1273_v40, 2  ;;  %v1286_v34 = vrot.slane %v1285_v43, 2 }
 0x2b6   : > { %v1269_v49 = vmax.f32 %v1267_v38, %v1268_v45  ;;  %v1281_v50 = vmax.f32 %v1279_v39, %v1280_v46 }
 0x2b7   : > { %v1275_v51 = vmax.f32 %v1273_v40, %v1274_v48  ;;  %v1287_v53 = vmax.f32 %v1285_v43, %v1286_v34 }
 0x2b8   : > { %v1270_v54 = vrot.slane %v1269_v49, 1  ;;  %v1282_v55 = vrot.slane %v1281_v50, 1 }
 0x2b9   : > { %v1276_v56 = vrot.slane %v1275_v51, 1  ;;  %v1288_v57 = vrot.slane %v1287_v53, 1 }
 0x2ba   : > { %v1271_v58 = vmax.f32 %v1269_v49, %v1270_v54  ;;  %v1283_v59 = vmax.f32 %v1281_v50, %v1282_v55 }
 0x2bb   : > { %v1277_v60 = vmax.f32 %v1275_v51, %v1276_v56  ;;  %v1289_v62 = vmax.f32 %v1287_v53, %v1288_v57 }
 0x2bd   : > { %v1322_v1 = vcombine.low %v1271_v58, %v1277_v60  ;;  %v1323_v2 = vcombine.low %v1283_v59, %v1289_v62 }
 0x2bf   : > { %v1980_v5 = vrot.slane %v1322_v1, %v1973_v61  ;;  %v1983_v6 = vrot.slane %v1323_v2, %v1973_v61 }
 0x2c1   : > { %v1354_v9 = vcombine.low %v1980_v5, %v1983_v6  ;;  %v1135_v10 = vpop.f32.mrb[12].mxu0  ;;  %v1188_v11 = vpop.f32.mrb[12].mxu1 }
 0x2c2   : > { %v1137_v44 = vpop.f32.mrb[13].mxu0  ;;  %v1190_v14 = vpop.f32.mrb[13].mxu1  ;;  %v1136_v17 = vadd.f32 %v1135_v10, %v654_v7  ;;  %v1189_v18 = vadd.f32 %v1188_v11, %v662_v8 }
 0x2c3   : > { %v1139_v15 = vpop.f32.mrb[14].mxu0  ;;  %v1192_v16 = vpop.f32.mrb[14].mxu1  ;;  %v1138_v23 = vadd.f32 %v1137_v44, %v658_v12  ;;  %v1191_v24 = vadd.f32 %v1190_v14, %v666_v13 }
 0x2c4   : > { %v1140_v19 = vadd.f32 %v1139_v15, %v654_v7  ;;  %v1193_v20 = vadd.f32 %v1192_v16, %v662_v8  ;;  %v1141_v21 = vpop.f32.mrb[15].mxu0  ;;  %v1194_v22 = vpop.f32.mrb[15].mxu1 }
 0x2c5   : > { %v1142_v25 = vadd.f32 %v1141_v21, %v658_v12  ;;  %v1195_v26 = vadd.f32 %v1194_v22, %v666_v13 }
 0x2c6   : > { %v1219_v27 = vmax.f32 %v1136_v17, %v1140_v19  ;;  %v1225_v28 = vmax.f32 %v1189_v18, %v1193_v20 }
 0x2c7   : > { %v1222_v29 = vmax.f32 %v1138_v23, %v1142_v25  ;;  %v1228_v30 = vmax.f32 %v1191_v24, %v1195_v26  ;;  %v1362_v24 = vrot.slane %v1354_v9, %v1973_v61 }
 0x2c9   : > { %v1145_v31 = vpop.f32.mrb[16].mxu0  ;;  %v1198_v47 = vpop.f32.mrb[16].mxu1 }
 0x2ca   : > { %v1146_v32 = vadd.f32 %v1145_v31, %v654_v7  ;;  %v1199_v33 = vadd.f32 %v1198_v47, %v662_v8  ;;  %v1147_v35 = vpop.f32.mrb[17].mxu0  ;;  %v1200_v36 = vpop.f32.mrb[17].mxu1 }
 0x2cb   : > { %v1148_v37 = vadd.f32 %v1147_v35, %v658_v12  ;;  %v1201_v38 = vadd.f32 %v1200_v36, %v666_v13  ;;  %v1149_v39 = vpop.f32.mrb[18].mxu0  ;;  %v1202_v40 = vpop.f32.mrb[18].mxu1 }
 0x2cc   : > { %v1220_v41 = vmax.f32 %v1219_v27, %v1146_v32  ;;  %v1226_v42 = vmax.f32 %v1225_v28, %v1199_v33  ;;  %v1150_v43 = vadd.f32 %v1149_v39, %v654_v7  ;;  %v1203_v45 = vadd.f32 %v1202_v40, %v662_v8  ;;  %v1151_v46 = vpop.f32.mrb[19].mxu0  ;;  %v1204_v48 = vpop.f32.mrb[19].mxu1 }
 0x2cd   : > { %v1223_v34 = vmax.f32 %v1222_v29, %v1148_v37  ;;  %v1229_v49 = vmax.f32 %v1228_v30, %v1201_v38  ;;  %v1152_v50 = vadd.f32 %v1151_v46, %v658_v12  ;;  %v1205_v51 = vadd.f32 %v1204_v48, %v666_v13 }
 0x2ce   : > { %v1221_v52 = vmax.f32 %v1220_v41, %v1150_v43  ;;  %v1227_v53 = vmax.f32 %v1226_v42, %v1203_v45 }
 0x2cf   : > { %v1224_v54 = vmax.f32 %v1223_v34, %v1152_v50  ;;  %v1230_v55 = vmax.f32 %v1229_v49, %v1205_v51 }
 0x2d0   : > { %v1290_v56 = vrot.slane %v1221_v52, 4  ;;  %v1302_v57 = vrot.slane %v1227_v53, 4 }
 0x2d1   : > { %v1296_v58 = vrot.slane %v1224_v54, 4  ;;  %v1308_v59 = vrot.slane %v1230_v55, 4 }
 0x2d2   : > { %v1291_v60 = vmax.f32 %v1221_v52, %v1290_v56  ;;  %v1303_v62 = vmax.f32 %v1227_v53, %v1302_v57 }
 0x2d3   : > { %v1297_v63 = vmax.f32 %v1224_v54, %v1296_v58  ;;  %v1309_v0 = vmax.f32 %v1230_v55, %v1308_v59 }
 0x2d4   : > { %v1292_v1 = vrot.slane %v1291_v60, 2  ;;  %v1304_v2 = vrot.slane %v1303_v62, 2 }
 0x2d5   : > { %v1298_v3 = vrot.slane %v1297_v63, 2  ;;  %v1310_v4 = vrot.slane %v1309_v0, 2 }
 0x2d6   : > { %v1293_v7 = vmax.f32 %v1291_v60, %v1292_v1  ;;  %v1305_v8 = vmax.f32 %v1303_v62, %v1304_v2 }
 0x2d7   : > { %v1299_v10 = vmax.f32 %v1297_v63, %v1298_v3  ;;  %v1311_v11 = vmax.f32 %v1309_v0, %v1310_v4 }
 0x2d8   : > { %v1294_v12 = vrot.slane %v1293_v7, 1  ;;  %v1306_v13 = vrot.slane %v1305_v8, 1 }
 0x2d9   : > { %v1300_v44 = vrot.slane %v1299_v10, 1  ;;  %v1312_v14 = vrot.slane %v1311_v11, 1 }
 0x2da   : > { %v1295_v15 = vmax.f32 %v1293_v7, %v1294_v12  ;;  %v1307_v16 = vmax.f32 %v1305_v8, %v1306_v13 }
 0x2db   : > { %v1301_v17 = vmax.f32 %v1299_v10, %v1300_v44  ;;  %v1313_v18 = vmax.f32 %v1311_v11, %v1312_v14 }
 0x2dd   : > { %v1324_v19 = vcombine.low %v1295_v15, %v1301_v17  ;;  %v1325_v20 = vcombine.low %v1307_v16, %v1313_v18 }
 0x2df   : > { %v1346_v21 = vrot.slane %v1324_v19, %v1973_v61  ;;  %v1353_v22 = vrot.slane %v1325_v20, %v1973_v61 }
 0x2e1   : > { %v1355_v23 = vcombine.low %v1346_v21, %v1353_v22 }
 0x2e3   : > { %v1369_v25 = vrot.slane %v1355_v23, %v1973_v61 }
 0x2e5   : > { %v1370_v26 = vcombine.low %v1362_v24, %v1369_v25 }
 0x2e7   : > { %1372 = vst [vmem:[%s362_s23] sm:$0xff] %v1370_v26 }
 0x2e8 PF: > { %s17_s26 = sadd.s32 1, %s1655_s26   ;;  %s2019_s24 = smov %s1651_s25 }
 0x2e9   : > { %p14_p5 = scmp.ge.s32.totalorder %s17_s26, 4   ;;  %s2020_s25 = smov %s2022_s27 }
 0x2eb   :  { %16 = sbr.rel (!%p14_p5) target bundleno = 2 (0x2), region = 92 }

// kernel: _lambda_.4
= control target key start
LH: loop header
LB: loop body
LE: loop exit
PB: predicated region body
PF: predicated region fallthrough
CT: control target
= control target key end

     0   :  { %12 = vsyncpa [#allocation3], 0  ;;  %s3574_s24 = smov [#allocation2]   ;;  %s3948_s0 = inlined_call_operand.vmem [shape: bf16[2,1024], index: 0, kind: input, shape index: {}]   ;;  %s3949_s1 = inlined_call_operand.hbm [shape: bf16[1024,512], index: 1, kind: input, shape index: {}]   ;;  %s3950_s2 = inlined_call_operand.vmem [shape: f32[1,512], index: 2, kind: input, shape index: {}]   ;;  %s3951_s3 = inlined_call_operand.vmem [shape: bf16[512,256], index: 3, kind: input, shape index: {}]   ;;  %s3952_s4 = inlined_call_operand.vmem [shape: f32[1,256], index: 4, kind: input, shape index: {}]   ;;  %s3953_s5 = inlined_call_operand.vmem [shape: bf16[256,9], index: 5, kind: input, shape index: {}]   ;;  %s3954_s6 = inlined_call_operand.vmem [shape: f32[1,9], index: 6, kind: input, shape index: {}]   ;;  %s3955_s7 = inlined_call_operand.vmem [shape: f32[2,9], index: 7, kind: output, shape index: {}]  }
   0x1   :  { %s20_s25 = sshll.u32 %s3574_s24, 4  ;;  %s3550_s28 = scalar_lea.hbm %s3949_s1, 32768  ;;  %s21_s25 = int_to_ptr.vmem [resolvable:$true] %s20_s25 }
   0x2   :  { %p3551_p0 = scmp.ne.s32.totalorder %s3949_s1, %s3550_s28  ;;  %p3554_p1 = scmp.lt.u32.totalorder %s3550_s28, %s3949_s1 }
   0x4   :  { %p3556_p2 = pnand %p3554_p1, %p3551_p0 }
   0x6   :  { %3559 = shalt.err (!%p3556_p2)
}
   0x7   :  { %s3560_s10 = scalar_lea.vmem %s21_s25, 32768  ;;  %p3565_p4 = scmp.lt.s32.totalorder %s21_s25, %s21_s25 }
   0x8   :  { %p3561_p3 = scmp.ne.s32.totalorder %s21_s25, %s3560_s10  ;;  %p3566_p5 = scmp.lt.s32.totalorder %s3560_s10, %s3560_s10 }
   0xa   :  { %p3567_p6 = por %p3566_p5, %p3565_p4 }
   0xc   :  { %p3568_p7 = pnand %p3567_p6, %p3561_p3 }
   0xe   :  { %3571 = shalt.err (!%p3568_p7)
}
   0xf   :  { %s3575_s11 = smov 256   ;;  %s3576_s12 = smov 16  }
  0x10   :  { %26 = dma.hbm_to_vmem [thread:$0]  %s3949_s1, 32768, %s21_s25, [#allocation3], %s3575_s11, %s3575_s11, %s3576_s12  }
  0x11   :  { %3572 = dma.done.wait [#allocation3], 32768  }
  0x12   :  { %3573 = vsyncadd [#allocation3], 4294934528  ;;  %v3053_v0 = vld [vmem:[#allocation2 + $0x4] ss:$16 sps:$4 sm:$0xff]   ;;  %v3057_v2 = vld [vmem:[#allocation2] ss:$16 sps:$4 sm:$0xff]   ;;  %v300_v36 = vlaneseq }
  0x13   :  { %v3055_v1 = vld [vmem:[#allocation2 + $0x204] ss:$16 sps:$4 sm:$0xff]   ;;  %1658 = vmatprep.subr.bf16.mxu1 %v3053_v0  ;;  %v3058_v3 = vld [vmem:[#allocation2 + $0x200] ss:$16 sps:$4 sm:$0xff]   ;;  %v3577_v37 = vmov 1966171168  }
  0x14   :  { %1699 = vmatprep.subr.bf16.mxu0 %v3055_v1  ;;  %v3059_v4 = vld [vmem:[#allocation2 + $0x24] ss:$16 sps:$4 sm:$0xff]   ;;  %1659 = vmatpush1.bf16.msra.mxu1 %v3057_v2  ;;  %v3063_v6 = vld [vmem:[#allocation2 + $0x20] ss:$16 sps:$4 sm:$0xff]   ;;  %v323_v38 = vunpack.c.l.s4 %v3577_v37  ;;  %v3630_v42 = vshrl.u32 %v300_v36, 7  ;;  %vm2651_vm0 = vcmask 66560  }
  0x15   :  { %1700 = vmatpush1.bf16.msra.mxu0 %v3058_v3  ;;  %v3061_v5 = vld [vmem:[#allocation2 + $0x224] ss:$16 sps:$4 sm:$0xff]   ;;  %1660 = vmatprep.subr.bf16.mxu1 %v3059_v4  ;;  %v3064_v7 = vld [vmem:[#allocation2 + $0x220] ss:$16 sps:$4 sm:$0xff]   ;;  %v3176_v37 = vld [vmem:[#allocation2 + $0x88] ss:$16 sps:$4 sm:$0xff]  }
  0x16   :  { %1701 = vmatprep.subr.bf16.mxu0 %v3061_v5  ;;  %v3065_v8 = vld [vmem:[#allocation2 + $0x44] ss:$16 sps:$4 sm:$0xff]   ;;  %v3069_v10 = vld [vmem:[#allocation2 + $0x40] ss:$16 sps:$4 sm:$0xff]   ;;  %v324_v43 = vunpack.c.0.s8 %v323_v38 }
  0x17   :  { %v3067_v9 = vld [vmem:[#allocation2 + $0x244] ss:$16 sps:$4 sm:$0xff]   ;;  %v3070_v11 = vld [vmem:[#allocation2 + $0x240] ss:$16 sps:$4 sm:$0xff]  }
  0x18   :  { %1661 = vmatpush1.bf16.msra.mxu1 %v3063_v6  ;;  %v3071_v12 = vld [vmem:[#allocation2 + $0x64] ss:$16 sps:$4 sm:$0xff]   ;;  %v3075_v14 = vld [vmem:[#allocation2 + $0x60] ss:$16 sps:$4 sm:$0xff]   ;;  %v3633_v49 = vsub.s32 %v324_v43, %v3630_v42 }
  0x19   :  { %1702 = vmatpush1.bf16.msra.mxu0 %v3064_v7  ;;  %1662 = vmatprep.subr.bf16.mxu1 %v3065_v8  ;;  %v3073_v13 = vld [vmem:[#allocation2 + $0x264] ss:$16 sps:$4 sm:$0xff]   ;;  %v3076_v15 = vld [vmem:[#allocation2 + $0x260] ss:$16 sps:$4 sm:$0xff]  }
  0x1a   :  { %1703 = vmatprep.subr.bf16.mxu0 %v3067_v9  ;;  %v3077_v16 = vld [vmem:[#allocation2 + $0x84] ss:$16 sps:$4 sm:$0xff]   ;;  %v3081_v18 = vld [vmem:[#allocation2 + $0x80] ss:$16 sps:$4 sm:$0xff]  }
  0x1b   :  { %v3079_v17 = vld [vmem:[#allocation2 + $0x284] ss:$16 sps:$4 sm:$0xff]   ;;  %v3082_v19 = vld [vmem:[#allocation2 + $0x280] ss:$16 sps:$4 sm:$0xff]  }
  0x1c   :  { %1663 = vmatpush1.bf16.msra.mxu1 %v3069_v10  ;;  %v3083_v20 = vld [vmem:[#allocation2 + $0xa4] ss:$16 sps:$4 sm:$0xff]   ;;  %v3087_v22 = vld [vmem:[#allocation2 + $0xa0] ss:$16 sps:$4 sm:$0xff]  }
  0x1d   :  { %1704 = vmatpush1.bf16.msra.mxu0 %v3070_v11  ;;  %1664 = vmatprep.subr.bf16.mxu1 %v3071_v12  ;;  %v3085_v21 = vld [vmem:[#allocation2 + $0x2a4] ss:$16 sps:$4 sm:$0xff]   ;;  %v3088_v23 = vld [vmem:[#allocation2 + $0x2a0] ss:$16 sps:$4 sm:$0xff]  }
  0x1e   :  { %1705 = vmatprep.subr.bf16.mxu0 %v3073_v13  ;;  %v3089_v24 = vld [vmem:[#allocation2 + $0xc4] ss:$16 sps:$4 sm:$0xff]   ;;  %v3093_v26 = vld [vmem:[#allocation2 + $0xc0] ss:$16 sps:$4 sm:$0xff]  }
  0x1f   :  { %v3091_v25 = vld [vmem:[#allocation2 + $0x2c4] ss:$16 sps:$4 sm:$0xff]   ;;  %v3094_v27 = vld [vmem:[#allocation2 + $0x2c0] ss:$16 sps:$4 sm:$0xff]  }
  0x20   :  { %1665 = vmatpush1.bf16.msra.mxu1 %v3075_v14  ;;  %v3095_v28 = vld [vmem:[#allocation2 + $0xe4] ss:$16 sps:$4 sm:$0xff]   ;;  %v3099_v30 = vld [vmem:[#allocation2 + $0xe0] ss:$16 sps:$4 sm:$0xff]  }
  0x21   :  { %1706 = vmatpush1.bf16.msra.mxu0 %v3076_v15  ;;  %1666 = vmatprep.subr.bf16.mxu1 %v3077_v16  ;;  %v3097_v29 = vld [vmem:[#allocation2 + $0x2e4] ss:$16 sps:$4 sm:$0xff]   ;;  %v3100_v31 = vld [vmem:[#allocation2 + $0x2e0] ss:$16 sps:$4 sm:$0xff]   ;;  %v3154_v16 = vld [vmem:[#allocation2 + $0xc] ss:$16 sps:$4 sm:$0xff]  }
  0x22   :  { %1707 = vmatprep.subr.bf16.mxu0 %v3079_v17  ;;  %v3101_v32 = vld [vmem:[#allocation2 + $0x104] ss:$16 sps:$4 sm:$0xff]   ;;  %v3105_v34 = vld [vmem:[#allocation2 + $0x100] ss:$16 sps:$4 sm:$0xff]  }
  0x23   :  { %v3103_v33 = vld [vmem:[#allocation2 + $0x304] ss:$16 sps:$4 sm:$0xff]   ;;  %v3106_v35 = vld [vmem:[#allocation2 + $0x300] ss:$16 sps:$4 sm:$0xff]  }
  0x24   :  { %1667 = vmatpush1.bf16.msra.mxu1 %v3081_v18  ;;  %v3107_v39 = vld [vmem:[#allocation2 + $0x124] ss:$16 sps:$4 sm:$0xff]   ;;  %v3111_v41 = vld [vmem:[#allocation2 + $0x120] ss:$16 sps:$4 sm:$0xff]  }
  0x25   :  { %1708 = vmatpush1.bf16.msra.mxu0 %v3082_v19  ;;  %1668 = vmatprep.subr.bf16.mxu1 %v3083_v20  ;;  %v3109_v40 = vld [vmem:[#allocation2 + $0x324] ss:$16 sps:$4 sm:$0xff]   ;;  %v3112_v44 = vld [vmem:[#allocation2 + $0x320] ss:$16 sps:$4 sm:$0xff]   ;;  %v3152_v20 = vld [vmem:[#allocation2 + $0x8] ss:$16 sps:$4 sm:$0xff]  }
  0x26   :  { %1709 = vmatprep.subr.bf16.mxu0 %v3085_v21  ;;  %v3113_v45 = vld [vmem:[#allocation2 + $0x144] ss:$16 sps:$4 sm:$0xff]   ;;  %v3117_v47 = vld [vmem:[#allocation2 + $0x140] ss:$16 sps:$4 sm:$0xff]  }
  0x27   :  { %v3115_v46 = vld [vmem:[#allocation2 + $0x344] ss:$16 sps:$4 sm:$0xff]   ;;  %v3118_v48 = vld [vmem:[#allocation2 + $0x340] ss:$16 sps:$4 sm:$0xff]  }
  0x28   :  { %1669 = vmatpush1.bf16.msra.mxu1 %v3087_v22  ;;  %v3119_v50 = vld [vmem:[#allocation2 + $0x164] ss:$16 sps:$4 sm:$0xff]   ;;  %v3123_v53 = vld [vmem:[#allocation2 + $0x160] ss:$16 sps:$4 sm:$0xff]   ;;  %v3160_v22 = vld [vmem:[#allocation2 + $0x2c] ss:$16 sps:$4 sm:$0xff]  }
  0x29   :  { %1710 = vmatpush1.bf16.msra.mxu0 %v3088_v23  ;;  %1670 = vmatprep.subr.bf16.mxu1 %v3089_v24  ;;  %v3121_v51 = vld [vmem:[#allocation2 + $0x364] ss:$16 sps:$4 sm:$0xff]   ;;  %v3124_v56 = vld [vmem:[#allocation2 + $0x360] ss:$16 sps:$4 sm:$0xff]  }
  0x2a   :  { %1711 = vmatprep.subr.bf16.mxu0 %v3091_v25  ;;  %v41_v52 = vld [vmem:[%s3948_s0] sm:$0xff]  ;;  %v3158_v25 = vld [vmem:[#allocation2 + $0x28] ss:$16 sps:$4 sm:$0xff]  }
  0x2b   :  { %v328_v54 = vrot.slane %v41_v52, %v3633_v49  ;;  %v321_v55 = vcombine.high %v41_v52, %v41_v52  ;;  %v3125_v57 = vld [vmem:[#allocation2 + $0x184] ss:$16 sps:$4 sm:$0xff]   ;;  %v3129_v61 = vld [vmem:[#allocation2 + $0x180] ss:$16 sps:$4 sm:$0xff]   ;;  %v3202_v52 = vld [vmem:[#allocation2 + $0x10c] ss:$16 sps:$4 sm:$0xff]  }
  0x2c   :  { %1671 = vmatpush1.bf16.msra.mxu1 %v3093_v26  ;;  %v3127_v58 = vld [vmem:[#allocation2 + $0x384] ss:$16 sps:$4 sm:$0xff]   ;;  %v3130_v0 = vld [vmem:[#allocation2 + $0x380] ss:$16 sps:$4 sm:$0xff]  }
  0x2d   :  { %1712 = vmatpush1.bf16.msra.mxu0 %v3094_v27  ;;  %1672 = vmatprep.subr.bf16.mxu1 %v3095_v28  ;;  %v336_v59 = vcombine.high %v328_v54, %v328_v54  ;;  %v335_v60 = vrot.slane %v321_v55, %v3633_v49  ;;  %v3131_v1 = vld [vmem:[#allocation2 + $0x1a4] ss:$16 sps:$4 sm:$0xff]   ;;  %v3135_v4 = vld [vmem:[#allocation2 + $0x1a0] ss:$16 sps:$4 sm:$0xff]   ;;  %v3648_v13 = vrot.slane %v328_v54, %v3633_v49  ;;  %v3166_v27 = vld [vmem:[#allocation2 + $0x4c] ss:$16 sps:$4 sm:$0xff]  }
  0x2e   :  { %1713 = vmatprep.subr.bf16.mxu0 %v3097_v29  ;;  %v3133_v2 = vld [vmem:[#allocation2 + $0x3a4] ss:$16 sps:$4 sm:$0xff]   ;;  %v3136_v5 = vld [vmem:[#allocation2 + $0x3a0] ss:$16 sps:$4 sm:$0xff]   ;;  %v3164_v29 = vld [vmem:[#allocation2 + $0x48] ss:$16 sps:$4 sm:$0xff]  }
  0x2f   :  { %v358_v62 = vrot.slane %v336_v59, %v3633_v49  ;;  %v3642_v63 = vrot.slane %v335_v60, %v3633_v49  ;;  %v3137_v6 = vld [vmem:[#allocation2 + $0x1c4] ss:$16 sps:$4 sm:$0xff]   ;;  %v3141_v8 = vld [vmem:[#allocation2 + $0x1c0] ss:$16 sps:$4 sm:$0xff]   ;;  %v337_v17 = vcombine.high %v335_v60, %v335_v60  ;;  %v3652_v19 = vcombine.high %v3648_v13, %v3648_v13  ;;  %v3200_v54 = vld [vmem:[#allocation2 + $0x108] ss:$16 sps:$4 sm:$0xff]  }
  0x30   :  { %1673 = vmatpush1.bf16.msra.mxu1 %v3099_v30  ;;  %v3139_v7 = vld [vmem:[#allocation2 + $0x3c4] ss:$16 sps:$4 sm:$0xff]   ;;  %v3142_v9 = vld [vmem:[#allocation2 + $0x3c0] ss:$16 sps:$4 sm:$0xff]   ;;  %v3214_v60 = vld [vmem:[#allocation2 + $0x14c] ss:$16 sps:$4 sm:$0xff]  }
  0x31   :  { %1714 = vmatpush1.bf16.msra.mxu0 %v3100_v31  ;;  %1674 = vmatprep.subr.bf16.mxu1 %v3101_v32  ;;  %v3644_v3 = vcombine.high %v358_v62, %v358_v62  ;;  %v3143_v10 = vld [vmem:[#allocation2 + $0x1e4] ss:$16 sps:$4 sm:$0xff]   ;;  %v3147_v12 = vld [vmem:[#allocation2 + $0x1e0] ss:$16 sps:$4 sm:$0xff]   ;;  %v3655_v23 = vrot.slane %v337_v17, %v3633_v49  ;;  %v3172_v31 = vld [vmem:[#allocation2 + $0x6c] ss:$16 sps:$4 sm:$0xff]  }
  0x32   :  { %1715 = vmatprep.subr.bf16.mxu0 %v3103_v33  ;;  %1690 = vmatprep.mubr.bf16.mxu1 %v358_v62  ;;  %v3145_v11 = vld [vmem:[#allocation2 + $0x3e4] ss:$16 sps:$4 sm:$0xff]   ;;  %v3148_v14 = vld [vmem:[#allocation2 + $0x3e0] ss:$16 sps:$4 sm:$0xff]   ;;  %v3170_v33 = vld [vmem:[#allocation2 + $0x68] ss:$16 sps:$4 sm:$0xff]  }
  0x33   :  { %1731 = vmatprep.mubr.bf16.mxu0 %v3644_v3  ;;  %v3151_v15 = vld [vmem:[#allocation2 + $0x404] ss:$16 sps:$4 sm:$0xff]   ;;  %v3149_v18 = vld [vmem:[#allocation2 + $0x400] ss:$16 sps:$4 sm:$0xff]   ;;  %v3236_v17 = vld [vmem:[#allocation2 + $0x1c8] ss:$16 sps:$4 sm:$0xff]  }
  0x34   :  { %1675 = vmatpush1.bf16.msra.mxu1 %v3105_v34  ;;  %v3157_v21 = vld [vmem:[#allocation2 + $0x424] ss:$16 sps:$4 sm:$0xff]   ;;  %v3155_v24 = vld [vmem:[#allocation2 + $0x420] ss:$16 sps:$4 sm:$0xff]  }
  0x35   :  { %1716 = vmatpush1.bf16.msra.mxu0 %v3106_v35  ;;  %1676 = vmatprep.subr.bf16.mxu1 %v3107_v39  ;;  %v3163_v26 = vld [vmem:[#allocation2 + $0x444] ss:$16 sps:$4 sm:$0xff]   ;;  %v3161_v28 = vld [vmem:[#allocation2 + $0x440] ss:$16 sps:$4 sm:$0xff]   ;;  %v3178_v35 = vld [vmem:[#allocation2 + $0x8c] ss:$16 sps:$4 sm:$0xff]  }
  0x36   :  { %1717 = vmatprep.subr.bf16.mxu0 %v3109_v40  ;;  %v3169_v30 = vld [vmem:[#allocation2 + $0x464] ss:$16 sps:$4 sm:$0xff]   ;;  %v3167_v32 = vld [vmem:[#allocation2 + $0x460] ss:$16 sps:$4 sm:$0xff]   ;;  %v3184_v39 = vld [vmem:[#allocation2 + $0xac] ss:$16 sps:$4 sm:$0xff]  }
  0x37   :  { %v3175_v34 = vld [vmem:[#allocation2 + $0x484] ss:$16 sps:$4 sm:$0xff]   ;;  %v3173_v36 = vld [vmem:[#allocation2 + $0x480] ss:$16 sps:$4 sm:$0xff]  }
  0x38   :  { %1677 = vmatpush1.bf16.msra.mxu1 %v3111_v41  ;;  %v3181_v38 = vld [vmem:[#allocation2 + $0x4a4] ss:$16 sps:$4 sm:$0xff]   ;;  %v3179_v40 = vld [vmem:[#allocation2 + $0x4a0] ss:$16 sps:$4 sm:$0xff]   ;;  %v3182_v41 = vld [vmem:[#allocation2 + $0xa8] ss:$16 sps:$4 sm:$0xff]  }
  0x39   :  { %1718 = vmatpush1.bf16.msra.mxu0 %v3112_v44  ;;  %1678 = vmatprep.subr.bf16.mxu1 %v3113_v45  ;;  %v3187_v43 = vld [vmem:[#allocation2 + $0x4c4] ss:$16 sps:$4 sm:$0xff]   ;;  %v3190_v44 = vld [vmem:[#allocation2 + $0xcc] ss:$16 sps:$4 sm:$0xff]   ;;  %v3185_v45 = vld [vmem:[#allocation2 + $0x4c0] ss:$16 sps:$4 sm:$0xff]  }
  0x3a   :  { %1719 = vmatprep.subr.bf16.mxu0 %v3115_v46  ;;  %v3188_v46 = vld [vmem:[#allocation2 + $0xc8] ss:$16 sps:$4 sm:$0xff]   ;;  %v3191_v49 = vld [vmem:[#allocation2 + $0x4e0] ss:$16 sps:$4 sm:$0xff]   ;;  %v3205_v55 = vld [vmem:[#allocation2 + $0x524] ss:$16 sps:$4 sm:$0xff]  }
  0x3b   :  { %v3211_v59 = vld [vmem:[#allocation2 + $0x544] ss:$16 sps:$4 sm:$0xff]  }
  0x3c   :  { %1679 = vmatpush1.bf16.msra.mxu1 %v3117_v47  ;;  %v3193_v47 = vld [vmem:[#allocation2 + $0x4e4] ss:$16 sps:$4 sm:$0xff]  }
  0x3d   :  { %1720 = vmatpush1.bf16.msra.mxu0 %v3118_v48  ;;  %1680 = vmatprep.subr.bf16.mxu1 %v3119_v50  ;;  %v3196_v48 = vld [vmem:[#allocation2 + $0xec] ss:$16 sps:$4 sm:$0xff]   ;;  %v3194_v50 = vld [vmem:[#allocation2 + $0xe8] ss:$16 sps:$4 sm:$0xff]  }
  0x3e   :  { %1721 = vmatprep.subr.bf16.mxu0 %v3121_v51  ;;  %v3199_v51 = vld [vmem:[#allocation2 + $0x504] ss:$16 sps:$4 sm:$0xff]  }
  0x40   :  { %1681 = vmatpush1.bf16.msra.mxu1 %v3123_v53  ;;  %v3197_v53 = vld [vmem:[#allocation2 + $0x500] ss:$16 sps:$4 sm:$0xff]  }
  0x41   :  { %1722 = vmatpush1.bf16.msra.mxu0 %v3124_v56  ;;  %1682 = vmatprep.subr.bf16.mxu1 %v3125_v57  ;;  %v3208_v56 = vld [vmem:[#allocation2 + $0x12c] ss:$16 sps:$4 sm:$0xff]   ;;  %v3203_v57 = vld [vmem:[#allocation2 + $0x520] ss:$16 sps:$4 sm:$0xff]  }
  0x42   :  { %1723 = vmatprep.subr.bf16.mxu0 %v3127_v58  ;;  %v3206_v58 = vld [vmem:[#allocation2 + $0x128] ss:$16 sps:$4 sm:$0xff]  }
  0x44   :  { %1683 = vmatpush1.bf16.msra.mxu1 %v3129_v61  ;;  %v3209_v61 = vld [vmem:[#allocation2 + $0x540] ss:$16 sps:$4 sm:$0xff]  }
  0x45   :  { %1724 = vmatpush1.bf16.msra.mxu0 %v3130_v0  ;;  %1684 = vmatprep.subr.bf16.mxu1 %v3131_v1  ;;  %v3217_v0 = vld [vmem:[#allocation2 + $0x564] ss:$16 sps:$4 sm:$0xff]   ;;  %v3220_v1 = vld [vmem:[#allocation2 + $0x16c] ss:$16 sps:$4 sm:$0xff]  }
  0x46   :  { %1725 = vmatprep.subr.bf16.mxu0 %v3133_v2  ;;  %v3215_v2 = vld [vmem:[#allocation2 + $0x560] ss:$16 sps:$4 sm:$0xff]  }
  0x48   :  { %1685 = vmatpush1.bf16.msra.mxu1 %v3135_v4  ;;  %v3218_v4 = vld [vmem:[#allocation2 + $0x168] ss:$16 sps:$4 sm:$0xff]  }
  0x49   :  { %1726 = vmatpush1.bf16.msra.mxu0 %v3136_v5  ;;  %1686 = vmatprep.subr.bf16.mxu1 %v3137_v6  ;;  %v3223_v5 = vld [vmem:[#allocation2 + $0x584] ss:$16 sps:$4 sm:$0xff]   ;;  %v3226_v6 = vld [vmem:[#allocation2 + $0x18c] ss:$16 sps:$4 sm:$0xff]  }
  0x4a   :  { %1727 = vmatprep.subr.bf16.mxu0 %v3139_v7  ;;  %v3221_v7 = vld [vmem:[#allocation2 + $0x580] ss:$16 sps:$4 sm:$0xff]  }
  0x4c   :  { %1687 = vmatpush1.bf16.msra.mxu1 %v3141_v8  ;;  %v3224_v8 = vld [vmem:[#allocation2 + $0x188] ss:$16 sps:$4 sm:$0xff]  }
  0x4d   :  { %1728 = vmatpush1.bf16.msra.mxu0 %v3142_v9  ;;  %1688 = vmatprep.subr.bf16.mxu1 %v3143_v10  ;;  %v3229_v9 = vld [vmem:[#allocation2 + $0x5a4] ss:$16 sps:$4 sm:$0xff]   ;;  %v3232_v10 = vld [vmem:[#allocation2 + $0x1ac] ss:$16 sps:$4 sm:$0xff]  }
  0x4e   :  { %1729 = vmatprep.subr.bf16.mxu0 %v3145_v11  ;;  %v3227_v11 = vld [vmem:[#allocation2 + $0x5a0] ss:$16 sps:$4 sm:$0xff]  }
  0x50   :  { %1689 = vmatpush1.bf16.msra.mxu1 %v3147_v12  ;;  %v3230_v12 = vld [vmem:[#allocation2 + $0x1a8] ss:$16 sps:$4 sm:$0xff]  }
  0x51   :  { %1730 = vmatpush1.bf16.msra.mxu0 %v3148_v14  ;;  %1822 = vmatprep.subr.bf16.mxu1 %v3154_v16  ;;  %v3235_v14 = vld [vmem:[#allocation2 + $0x5c4] ss:$16 sps:$4 sm:$0xff]   ;;  %v3233_v16 = vld [vmem:[#allocation2 + $0x5c0] ss:$16 sps:$4 sm:$0xff]  }
  0x52   :  { %1740 = vmatprep.subr.bf16.mxu0 %v3151_v15  ;;  %v3238_v15 = vld [vmem:[#allocation2 + $0x1cc] ss:$16 sps:$4 sm:$0xff]  }
  0x53   :  { %1691 = vmatmul.mubr.bf16.vlgmr.msra.gmra.mrb[0].mxu1 %v3648_v13 }
  0x54   :  { %1732 = vmatmul.mubr.bf16.vlgmr.msra.gmra.mrb[0].mxu0 %v3652_v19  ;;  %1823 = vmatpush1.bf16.msra.mxu1 %v3152_v20  ;;  %v3244_v20 = vld [vmem:[#allocation2 + $0x1ec] ss:$16 sps:$4 sm:$0xff]  }
  0x55   :  { %1741 = vmatpush1.bf16.msra.mxu0 %v3149_v18  ;;  %1824 = vmatprep.subr.bf16.mxu1 %v3160_v22  ;;  %v3241_v18 = vld [vmem:[#allocation2 + $0x5e4] ss:$16 sps:$4 sm:$0xff]   ;;  %v3242_v22 = vld [vmem:[#allocation2 + $0x1e8] ss:$16 sps:$4 sm:$0xff]  }
  0x56   :  { %1742 = vmatprep.subr.bf16.mxu0 %v3157_v21  ;;  %1772 = vmatprep.mubr.bf16.mxu0 %v3655_v23  ;;  %v3239_v21 = vld [vmem:[#allocation2 + $0x5e0] ss:$16 sps:$4 sm:$0xff]  }
  0x57   :  { %1854 = vmatprep.mubr.bf16.mxu1 %v358_v62  ;;  %v3212_v62 = vld [vmem:[#allocation2 + $0x148] ss:$16 sps:$4 sm:$0xff]  }
  0x58   :  { %1825 = vmatpush1.bf16.msra.mxu1 %v3158_v25  ;;  %v3251_v25 = vld [vmem:[#allocation2 + $0x20c] ss:$16 sps:$4 sm:$0xff]  }
  0x59   :  { %1743 = vmatpush1.bf16.msra.mxu0 %v3155_v24  ;;  %1826 = vmatprep.subr.bf16.mxu1 %v3166_v27  ;;  %v3248_v24 = vld [vmem:[#allocation2 + $0x604] ss:$16 sps:$4 sm:$0xff]   ;;  %v3249_v27 = vld [vmem:[#allocation2 + $0x208] ss:$16 sps:$4 sm:$0xff]  }
  0x5a   :  { %1744 = vmatprep.subr.bf16.mxu0 %v3163_v26  ;;  %v3246_v26 = vld [vmem:[#allocation2 + $0x600] ss:$16 sps:$4 sm:$0xff]  }
  0x5c   :  { %1827 = vmatpush1.bf16.msra.mxu1 %v3164_v29  ;;  %v3257_v29 = vld [vmem:[#allocation2 + $0x22c] ss:$16 sps:$4 sm:$0xff]  }
  0x5d   :  { %1745 = vmatpush1.bf16.msra.mxu0 %v3161_v28  ;;  %1828 = vmatprep.subr.bf16.mxu1 %v3172_v31  ;;  %v3254_v28 = vld [vmem:[#allocation2 + $0x624] ss:$16 sps:$4 sm:$0xff]   ;;  %v3252_v31 = vld [vmem:[#allocation2 + $0x620] ss:$16 sps:$4 sm:$0xff]  }
  0x5e   :  { %1746 = vmatprep.subr.bf16.mxu0 %v3169_v30  ;;  %v3662_v30 = vcombine.high %v3655_v23, %v3655_v23 }
  0x60   :  { %1829 = vmatpush1.bf16.msra.mxu1 %v3170_v33  ;;  %v3260_v33 = vld [vmem:[#allocation2 + $0x644] ss:$16 sps:$4 sm:$0xff]  }
  0x61   :  { %1747 = vmatpush1.bf16.msra.mxu0 %v3167_v32  ;;  %1830 = vmatprep.subr.bf16.mxu1 %v3178_v35  ;;  %v3255_v32 = vld [vmem:[#allocation2 + $0x228] ss:$16 sps:$4 sm:$0xff]   ;;  %v3258_v35 = vld [vmem:[#allocation2 + $0x640] ss:$16 sps:$4 sm:$0xff]  }
  0x62   :  { %1748 = vmatprep.subr.bf16.mxu0 %v3175_v34  ;;  %v3263_v34 = vld [vmem:[#allocation2 + $0x24c] ss:$16 sps:$4 sm:$0xff]  }
  0x64   :  { %1831 = vmatpush1.bf16.msra.mxu1 %v3176_v37  ;;  %v3266_v37 = vld [vmem:[#allocation2 + $0x664] ss:$16 sps:$4 sm:$0xff]  }
  0x65   :  { %1749 = vmatpush1.bf16.msra.mxu0 %v3173_v36  ;;  %1832 = vmatprep.subr.bf16.mxu1 %v3184_v39  ;;  %v3261_v36 = vld [vmem:[#allocation2 + $0x248] ss:$16 sps:$4 sm:$0xff]  }
  0x66   :  { %1750 = vmatprep.subr.bf16.mxu0 %v3181_v38  ;;  %v3264_v38 = vld [vmem:[#allocation2 + $0x660] ss:$16 sps:$4 sm:$0xff]   ;;  %v3267_v39 = vld [vmem:[#allocation2 + $0x268] ss:$16 sps:$4 sm:$0xff]  }
  0x68   :  { %1833 = vmatpush1.bf16.msra.mxu1 %v3182_v41  ;;  %v3275_v41 = vld [vmem:[#allocation2 + $0x28c] ss:$16 sps:$4 sm:$0xff]  }
  0x69   :  { %1751 = vmatpush1.bf16.msra.mxu0 %v3179_v40  ;;  %1834 = vmatprep.subr.bf16.mxu1 %v3190_v44  ;;  %v3272_v40 = vld [vmem:[#allocation2 + $0x684] ss:$16 sps:$4 sm:$0xff]  }
  0x6a   :  { %1752 = vmatprep.subr.bf16.mxu0 %v3187_v43  ;;  %v3270_v43 = vld [vmem:[#allocation2 + $0x680] ss:$16 sps:$4 sm:$0xff]   ;;  %v3278_v44 = vld [vmem:[#allocation2 + $0x6a4] ss:$16 sps:$4 sm:$0xff]  }
  0x6c   :  { %1835 = vmatpush1.bf16.msra.mxu1 %v3188_v46  ;;  %v3276_v46 = vld [vmem:[#allocation2 + $0x6a0] ss:$16 sps:$4 sm:$0xff]  }
  0x6d   :  { %1753 = vmatpush1.bf16.msra.mxu0 %v3185_v45  ;;  %1836 = vmatprep.subr.bf16.mxu1 %v3196_v48  ;;  %v3281_v45 = vld [vmem:[#allocation2 + $0x2ac] ss:$16 sps:$4 sm:$0xff]   ;;  %v3284_v48 = vld [vmem:[#allocation2 + $0x6c4] ss:$16 sps:$4 sm:$0xff]  }
  0x6e   :  { %1754 = vmatprep.subr.bf16.mxu0 %v3193_v47  ;;  %v3279_v47 = vld [vmem:[#allocation2 + $0x2a8] ss:$16 sps:$4 sm:$0xff]  }
  0x70   :  { %1837 = vmatpush1.bf16.msra.mxu1 %v3194_v50  ;;  %v3282_v50 = vld [vmem:[#allocation2 + $0x6c0] ss:$16 sps:$4 sm:$0xff]  }
  0x71   :  { %1755 = vmatpush1.bf16.msra.mxu0 %v3191_v49  ;;  %1838 = vmatprep.subr.bf16.mxu1 %v3202_v52  ;;  %v3287_v49 = vld [vmem:[#allocation2 + $0x2cc] ss:$16 sps:$4 sm:$0xff]   ;;  %v3290_v52 = vld [vmem:[#allocation2 + $0x6e4] ss:$16 sps:$4 sm:$0xff]  }
  0x72   :  { %1756 = vmatprep.subr.bf16.mxu0 %v3199_v51  ;;  %v3285_v51 = vld [vmem:[#allocation2 + $0x2c8] ss:$16 sps:$4 sm:$0xff]  }
  0x74   :  { %1839 = vmatpush1.bf16.msra.mxu1 %v3200_v54  ;;  %v3288_v54 = vld [vmem:[#allocation2 + $0x6e0] ss:$16 sps:$4 sm:$0xff]  }
  0x75   :  { %1757 = vmatpush1.bf16.msra.mxu0 %v3197_v53  ;;  %1840 = vmatprep.subr.bf16.mxu1 %v3208_v56  ;;  %v3293_v53 = vld [vmem:[#allocation2 + $0x2ec] ss:$16 sps:$4 sm:$0xff]   ;;  %v3296_v56 = vld [vmem:[#allocation2 + $0x704] ss:$16 sps:$4 sm:$0xff]  }
  0x76   :  { %1758 = vmatprep.subr.bf16.mxu0 %v3205_v55  ;;  %v3291_v55 = vld [vmem:[#allocation2 + $0x2e8] ss:$16 sps:$4 sm:$0xff]  }
  0x78   :  { %1841 = vmatpush1.bf16.msra.mxu1 %v3206_v58  ;;  %v3294_v58 = vld [vmem:[#allocation2 + $0x700] ss:$16 sps:$4 sm:$0xff]  }
  0x79   :  { %1759 = vmatpush1.bf16.msra.mxu0 %v3203_v57  ;;  %1842 = vmatprep.subr.bf16.mxu1 %v3214_v60  ;;  %v3299_v57 = vld [vmem:[#allocation2 + $0x30c] ss:$16 sps:$4 sm:$0xff]   ;;  %v3302_v60 = vld [vmem:[#allocation2 + $0x724] ss:$16 sps:$4 sm:$0xff]  }
  0x7a   :  { %1760 = vmatprep.subr.bf16.mxu0 %v3211_v59  ;;  %v3297_v59 = vld [vmem:[#allocation2 + $0x308] ss:$16 sps:$4 sm:$0xff]  }
  0x7c   :  { %1843 = vmatpush1.bf16.msra.mxu1 %v3212_v62  ;;  %v3300_v62 = vld [vmem:[#allocation2 + $0x720] ss:$16 sps:$4 sm:$0xff]  }
  0x7d   :  { %1761 = vmatpush1.bf16.msra.mxu0 %v3209_v61  ;;  %1844 = vmatprep.subr.bf16.mxu1 %v3220_v1  ;;  %v3305_v61 = vld [vmem:[#allocation2 + $0x32c] ss:$16 sps:$4 sm:$0xff]   ;;  %v3308_v1 = vld [vmem:[#allocation2 + $0x744] ss:$16 sps:$4 sm:$0xff]  }
  0x7e   :  { %1762 = vmatprep.subr.bf16.mxu0 %v3217_v0  ;;  %v3303_v0 = vld [vmem:[#allocation2 + $0x328] ss:$16 sps:$4 sm:$0xff]  }
  0x80   :  { %1845 = vmatpush1.bf16.msra.mxu1 %v3218_v4  ;;  %v3306_v4 = vld [vmem:[#allocation2 + $0x740] ss:$16 sps:$4 sm:$0xff]  }
  0x81   :  { %1763 = vmatpush1.bf16.msra.mxu0 %v3215_v2  ;;  %1846 = vmatprep.subr.bf16.mxu1 %v3226_v6  ;;  %v3311_v2 = vld [vmem:[#allocation2 + $0x34c] ss:$16 sps:$4 sm:$0xff]   ;;  %v3314_v6 = vld [vmem:[#allocation2 + $0x764] ss:$16 sps:$4 sm:$0xff]  }
  0x82   :  { %1764 = vmatprep.subr.bf16.mxu0 %v3223_v5  ;;  %v3309_v5 = vld [vmem:[#allocation2 + $0x348] ss:$16 sps:$4 sm:$0xff]  }
  0x84   :  { %1847 = vmatpush1.bf16.msra.mxu1 %v3224_v8  ;;  %v3312_v8 = vld [vmem:[#allocation2 + $0x760] ss:$16 sps:$4 sm:$0xff]  }
  0x85   :  { %1765 = vmatpush1.bf16.msra.mxu0 %v3221_v7  ;;  %1848 = vmatprep.subr.bf16.mxu1 %v3232_v10  ;;  %v3317_v7 = vld [vmem:[#allocation2 + $0x36c] ss:$16 sps:$4 sm:$0xff]   ;;  %v3320_v10 = vld [vmem:[#allocation2 + $0x784] ss:$16 sps:$4 sm:$0xff]  }
  0x86   :  { %1766 = vmatprep.subr.bf16.mxu0 %v3229_v9  ;;  %v3315_v9 = vld [vmem:[#allocation2 + $0x368] ss:$16 sps:$4 sm:$0xff]  }
  0x88   :  { %1849 = vmatpush1.bf16.msra.mxu1 %v3230_v12  ;;  %v3318_v12 = vld [vmem:[#allocation2 + $0x780] ss:$16 sps:$4 sm:$0xff]  }
  0x89   :  { %1767 = vmatpush1.bf16.msra.mxu0 %v3227_v11  ;;  %1850 = vmatprep.subr.bf16.mxu1 %v3238_v15  ;;  %v3323_v11 = vld [vmem:[#allocation2 + $0x38c] ss:$16 sps:$4 sm:$0xff]   ;;  %v3326_v15 = vld [vmem:[#allocation2 + $0x7a4] ss:$16 sps:$4 sm:$0xff]  }
  0x8a   :  { %1768 = vmatprep.subr.bf16.mxu0 %v3235_v14  ;;  %v3321_v14 = vld [vmem:[#allocation2 + $0x388] ss:$16 sps:$4 sm:$0xff]  }
  0x8c   :  { %1851 = vmatpush1.bf16.msra.mxu1 %v3236_v17  ;;  %v3324_v17 = vld [vmem:[#allocation2 + $0x7a0] ss:$16 sps:$4 sm:$0xff]  }
  0x8d   :  { %1769 = vmatpush1.bf16.msra.mxu0 %v3233_v16  ;;  %1852 = vmatprep.subr.bf16.mxu1 %v3244_v20  ;;  %v3329_v16 = vld [vmem:[#allocation2 + $0x3ac] ss:$16 sps:$4 sm:$0xff]   ;;  %v3332_v20 = vld [vmem:[#allocation2 + $0x7c4] ss:$16 sps:$4 sm:$0xff]  }
  0x8e   :  { %1770 = vmatprep.subr.bf16.mxu0 %v3241_v18  ;;  %v3327_v18 = vld [vmem:[#allocation2 + $0x3a8] ss:$16 sps:$4 sm:$0xff]  }
  0x90   :  { %1853 = vmatpush1.bf16.msra.mxu1 %v3242_v22  ;;  %v3330_v22 = vld [vmem:[#allocation2 + $0x7c0] ss:$16 sps:$4 sm:$0xff]  }
  0x91   :  { %1771 = vmatpush1.bf16.msra.mxu0 %v3239_v21  ;;  %1863 = vmatprep.subr.bf16.mxu1 %v3251_v25  ;;  %v3335_v21 = vld [vmem:[#allocation2 + $0x3cc] ss:$16 sps:$4 sm:$0xff]   ;;  %v3338_v25 = vld [vmem:[#allocation2 + $0x7e4] ss:$16 sps:$4 sm:$0xff]  }
  0x92   :  { %1781 = vmatprep.subr.bf16.mxu0 %v3248_v24  ;;  %v3333_v24 = vld [vmem:[#allocation2 + $0x3c8] ss:$16 sps:$4 sm:$0xff]  }
  0x93   :  { %1855 = vmatmul.mubr.bf16.vlgmr.msra.gmra.mrb[4].mxu1 %v3648_v13  ;;  %v3269_v13 = vld [vmem:[#allocation2 + $0x26c] ss:$16 sps:$4 sm:$0xff]  }
  0x94   :  { %1773 = vmatmul.mubr.bf16.vlgmr.msra.gmra.mrb[0].mxu0 %v3642_v63  ;;  %1864 = vmatpush1.bf16.msra.mxu1 %v3249_v27  ;;  %v3336_v27 = vld [vmem:[#allocation2 + $0x7e0] ss:$16 sps:$4 sm:$0xff]  }
  0x95   :  { %1782 = vmatpush1.bf16.msra.mxu0 %v3246_v26  ;;  %1865 = vmatprep.subr.bf16.mxu1 %v3257_v29  ;;  %v3341_v26 = vld [vmem:[#allocation2 + $0x3ec] ss:$16 sps:$4 sm:$0xff]  }
  0x96   :  { %1783 = vmatprep.subr.bf16.mxu0 %v3254_v28  ;;  %1813 = vmatprep.mubr.bf16.mxu0 %v3662_v30  ;;  %v3339_v28 = vld [vmem:[#allocation2 + $0x3e8] ss:$16 sps:$4 sm:$0xff]   ;;  %v3344_v29 = vld [vmem:[#allocation2 + $0x40c] ss:$16 sps:$4 sm:$0xff]  }
  0x97   :  { %1895 = vmatprep.mubr.bf16.mxu1 %v3644_v3  ;;  %v3273_v3 = vld [vmem:[#allocation2 + $0x288] ss:$16 sps:$4 sm:$0xff]  }
  0x98   :  { %1866 = vmatpush1.bf16.msra.mxu1 %v3255_v32  ;;  %v3670_v32 = vcombine.high %v3642_v63, %v3642_v63 }
  0x99   :  { %1784 = vmatpush1.bf16.msra.mxu0 %v3252_v31  ;;  %1867 = vmatprep.subr.bf16.mxu1 %v3263_v34  ;;  %v3342_v31 = vld [vmem:[#allocation2 + $0x408] ss:$16 sps:$4 sm:$0xff]  }
  0x9a   :  { %1785 = vmatprep.subr.bf16.mxu0 %v3260_v33  ;;  %v3347_v33 = vld [vmem:[#allocation2 + $0x42c] ss:$16 sps:$4 sm:$0xff]   ;;  %v3438_v34 = vld [vmem:[%s3951_s3] ss:$8 sps:$4 sm:$0xff]  }
  0x9c   :  { %1868 = vmatpush1.bf16.msra.mxu1 %v3261_v36  ;;  %v3345_v36 = vld [vmem:[#allocation2 + $0x428] ss:$16 sps:$4 sm:$0xff]  }
  0x9d   :  { %1786 = vmatpush1.bf16.msra.mxu0 %v3258_v35  ;;  %1869 = vmatprep.subr.bf16.mxu1 %v3269_v13  ;;  %v3440_v35 = vld [vmem:[%s3951_s3 + $0x4] ss:$8 sps:$4 sm:$0xff]  }
  0x9e   :  { %1787 = vmatprep.subr.bf16.mxu0 %v3266_v37  ;;  %v3443_v37 = vld [vmem:[%s3951_s3 + $0x14] ss:$8 sps:$4 sm:$0xff]  }
  0x9f   :  { %v3350_v13 = vld [vmem:[#allocation2 + $0x44c] ss:$16 sps:$4 sm:$0xff]  }
  0xa0   :  { %1870 = vmatpush1.bf16.msra.mxu1 %v3267_v39  ;;  %v3348_v39 = vld [vmem:[#allocation2 + $0x448] ss:$16 sps:$4 sm:$0xff]  }
  0xa1   :  { %1788 = vmatpush1.bf16.msra.mxu0 %v3264_v38  ;;  %1871 = vmatprep.subr.bf16.mxu1 %v3275_v41  ;;  %v3446_v38 = vld [vmem:[%s3951_s3 + $0x24] ss:$8 sps:$4 sm:$0xff]   ;;  %v3351_v41 = vld [vmem:[#allocation2 + $0x468] ss:$16 sps:$4 sm:$0xff]  }
  0xa2   :  { %1789 = vmatprep.subr.bf16.mxu0 %v3272_v40  ;;  %v3444_v40 = vld [vmem:[%s3951_s3 + $0x20] ss:$8 sps:$4 sm:$0xff]  }
  0xa4   :  { %1872 = vmatpush1.bf16.msra.mxu1 %v3273_v3  ;;  %v3449_v3 = vld [vmem:[%s3951_s3 + $0x34] ss:$8 sps:$4 sm:$0xff]  }
  0xa5   :  { %1790 = vmatpush1.bf16.msra.mxu0 %v3270_v43  ;;  %1873 = vmatprep.subr.bf16.mxu1 %v3281_v45  ;;  %v3356_v43 = vld [vmem:[#allocation2 + $0x48c] ss:$16 sps:$4 sm:$0xff]  }
  0xa6   :  { %1791 = vmatprep.subr.bf16.mxu0 %v3278_v44  ;;  %v3447_v44 = vld [vmem:[%s3951_s3 + $0x30] ss:$8 sps:$4 sm:$0xff]   ;;  %v3452_v45 = vld [vmem:[%s3951_s3 + $0x44] ss:$8 sps:$4 sm:$0xff]  }
  0xa8   :  { %1874 = vmatpush1.bf16.msra.mxu1 %v3279_v47  ;;  %v3359_v47 = vld [vmem:[#allocation2 + $0x4ac] ss:$16 sps:$4 sm:$0xff]  }
  0xa9   :  { %1792 = vmatpush1.bf16.msra.mxu0 %v3276_v46  ;;  %1875 = vmatprep.subr.bf16.mxu1 %v3287_v49  ;;  %v3354_v46 = vld [vmem:[#allocation2 + $0x488] ss:$16 sps:$4 sm:$0xff]   ;;  %v3455_v49 = vld [vmem:[%s3951_s3 + $0x54] ss:$8 sps:$4 sm:$0xff]  }
  0xaa   :  { %1793 = vmatprep.subr.bf16.mxu0 %v3284_v48  ;;  %v3450_v48 = vld [vmem:[%s3951_s3 + $0x40] ss:$8 sps:$4 sm:$0xff]  }
  0xac   :  { %1876 = vmatpush1.bf16.msra.mxu1 %v3285_v51  ;;  %v3362_v51 = vld [vmem:[#allocation2 + $0x4cc] ss:$16 sps:$4 sm:$0xff]  }
  0xad   :  { %1794 = vmatpush1.bf16.msra.mxu0 %v3282_v50  ;;  %1877 = vmatprep.subr.bf16.mxu1 %v3293_v53  ;;  %v3357_v50 = vld [vmem:[#allocation2 + $0x4a8] ss:$16 sps:$4 sm:$0xff]   ;;  %v3458_v53 = vld [vmem:[%s3951_s3 + $0x64] ss:$8 sps:$4 sm:$0xff]  }
  0xae   :  { %1795 = vmatprep.subr.bf16.mxu0 %v3290_v52  ;;  %v3453_v52 = vld [vmem:[%s3951_s3 + $0x50] ss:$8 sps:$4 sm:$0xff]  }
  0xb0   :  { %1878 = vmatpush1.bf16.msra.mxu1 %v3291_v55  ;;  %v3365_v55 = vld [vmem:[#allocation2 + $0x4ec] ss:$16 sps:$4 sm:$0xff]  }
  0xb1   :  { %1796 = vmatpush1.bf16.msra.mxu0 %v3288_v54  ;;  %1879 = vmatprep.subr.bf16.mxu1 %v3299_v57  ;;  %v3360_v54 = vld [vmem:[#allocation2 + $0x4c8] ss:$16 sps:$4 sm:$0xff]   ;;  %v3461_v57 = vld [vmem:[%s3951_s3 + $0x74] ss:$8 sps:$4 sm:$0xff]  }
  0xb2   :  { %1797 = vmatprep.subr.bf16.mxu0 %v3296_v56  ;;  %v3456_v56 = vld [vmem:[%s3951_s3 + $0x60] ss:$8 sps:$4 sm:$0xff]  }
  0xb4   :  { %1880 = vmatpush1.bf16.msra.mxu1 %v3297_v59  ;;  %v3368_v59 = vld [vmem:[#allocation2 + $0x50c] ss:$16 sps:$4 sm:$0xff]  }
  0xb5   :  { %1798 = vmatpush1.bf16.msra.mxu0 %v3294_v58  ;;  %1881 = vmatprep.subr.bf16.mxu1 %v3305_v61  ;;  %v3363_v58 = vld [vmem:[#allocation2 + $0x4e8] ss:$16 sps:$4 sm:$0xff]   ;;  %v3464_v61 = vld [vmem:[%s3951_s3 + $0x84] ss:$8 sps:$4 sm:$0xff]  }
  0xb6   :  { %1799 = vmatprep.subr.bf16.mxu0 %v3302_v60  ;;  %v3459_v60 = vld [vmem:[%s3951_s3 + $0x70] ss:$8 sps:$4 sm:$0xff]  }
  0xb8   :  { %1882 = vmatpush1.bf16.msra.mxu1 %v3303_v0  ;;  %v3371_v0 = vld [vmem:[#allocation2 + $0x52c] ss:$16 sps:$4 sm:$0xff]  }
  0xb9   :  { %1800 = vmatpush1.bf16.msra.mxu0 %v3300_v62  ;;  %1883 = vmatprep.subr.bf16.mxu1 %v3311_v2  ;;  %v3366_v62 = vld [vmem:[#allocation2 + $0x508] ss:$16 sps:$4 sm:$0xff]   ;;  %v3467_v2 = vld [vmem:[%s3951_s3 + $0x94] ss:$8 sps:$4 sm:$0xff]  }
  0xba   :  { %1801 = vmatprep.subr.bf16.mxu0 %v3308_v1  ;;  %v3462_v1 = vld [vmem:[%s3951_s3 + $0x80] ss:$8 sps:$4 sm:$0xff]  }
  0xbc   :  { %1884 = vmatpush1.bf16.msra.mxu1 %v3309_v5  ;;  %v3374_v5 = vld [vmem:[#allocation2 + $0x54c] ss:$16 sps:$4 sm:$0xff]  }
  0xbd   :  { %1802 = vmatpush1.bf16.msra.mxu0 %v3306_v4  ;;  %1885 = vmatprep.subr.bf16.mxu1 %v3317_v7  ;;  %v3369_v4 = vld [vmem:[#allocation2 + $0x528] ss:$16 sps:$4 sm:$0xff]   ;;  %v3470_v7 = vld [vmem:[%s3951_s3 + $0xa4] ss:$8 sps:$4 sm:$0xff]  }
  0xbe   :  { %1803 = vmatprep.subr.bf16.mxu0 %v3314_v6  ;;  %v3465_v6 = vld [vmem:[%s3951_s3 + $0x90] ss:$8 sps:$4 sm:$0xff]  }
  0xc0   :  { %1886 = vmatpush1.bf16.msra.mxu1 %v3315_v9  ;;  %v3377_v9 = vld [vmem:[#allocation2 + $0x56c] ss:$16 sps:$4 sm:$0xff]  }
  0xc1   :  { %1804 = vmatpush1.bf16.msra.mxu0 %v3312_v8  ;;  %1887 = vmatprep.subr.bf16.mxu1 %v3323_v11  ;;  %v3372_v8 = vld [vmem:[#allocation2 + $0x548] ss:$16 sps:$4 sm:$0xff]   ;;  %v3473_v11 = vld [vmem:[%s3951_s3 + $0xb4] ss:$8 sps:$4 sm:$0xff]  }
  0xc2   :  { %1805 = vmatprep.subr.bf16.mxu0 %v3320_v10  ;;  %v3468_v10 = vld [vmem:[%s3951_s3 + $0xa0] ss:$8 sps:$4 sm:$0xff]  }
  0xc4   :  { %1888 = vmatpush1.bf16.msra.mxu1 %v3321_v14  ;;  %v3380_v14 = vld [vmem:[#allocation2 + $0x58c] ss:$16 sps:$4 sm:$0xff]  }
  0xc5   :  { %1806 = vmatpush1.bf16.msra.mxu0 %v3318_v12  ;;  %1889 = vmatprep.subr.bf16.mxu1 %v3329_v16  ;;  %v3375_v12 = vld [vmem:[#allocation2 + $0x568] ss:$16 sps:$4 sm:$0xff]   ;;  %v3476_v16 = vld [vmem:[%s3951_s3 + $0xc4] ss:$8 sps:$4 sm:$0xff]  }
  0xc6   :  { %1807 = vmatprep.subr.bf16.mxu0 %v3326_v15  ;;  %v3471_v15 = vld [vmem:[%s3951_s3 + $0xb0] ss:$8 sps:$4 sm:$0xff]  }
  0xc8   :  { %1890 = vmatpush1.bf16.msra.mxu1 %v3327_v18  ;;  %v3383_v18 = vld [vmem:[#allocation2 + $0x5ac] ss:$16 sps:$4 sm:$0xff]  }
  0xc9   :  { %1808 = vmatpush1.bf16.msra.mxu0 %v3324_v17  ;;  %1891 = vmatprep.subr.bf16.mxu1 %v3335_v21  ;;  %v3378_v17 = vld [vmem:[#allocation2 + $0x588] ss:$16 sps:$4 sm:$0xff]   ;;  %v3479_v21 = vld [vmem:[%s3951_s3 + $0xd4] ss:$8 sps:$4 sm:$0xff]  }
  0xca   :  { %1809 = vmatprep.subr.bf16.mxu0 %v3332_v20  ;;  %v3474_v20 = vld [vmem:[%s3951_s3 + $0xc0] ss:$8 sps:$4 sm:$0xff]  }
  0xcc   :  { %1892 = vmatpush1.bf16.msra.mxu1 %v3333_v24  ;;  %v3386_v24 = vld [vmem:[#allocation2 + $0x5cc] ss:$16 sps:$4 sm:$0xff]  }
  0xcd   :  { %1810 = vmatpush1.bf16.msra.mxu0 %v3330_v22  ;;  %1893 = vmatprep.subr.bf16.mxu1 %v3341_v26  ;;  %v3381_v22 = vld [vmem:[#allocation2 + $0x5a8] ss:$16 sps:$4 sm:$0xff]  }
  0xce   :  { %1811 = vmatprep.subr.bf16.mxu0 %v3338_v25  ;;  %v3477_v25 = vld [vmem:[%s3951_s3 + $0xd0] ss:$8 sps:$4 sm:$0xff]  }
  0xcf   :  { %v3384_v26 = vld [vmem:[#allocation2 + $0x5c8] ss:$16 sps:$4 sm:$0xff]  }
  0xd0   :  { %1894 = vmatpush1.bf16.msra.mxu1 %v3339_v28  ;;  %v3387_v28 = vld [vmem:[#allocation2 + $0x5e8] ss:$16 sps:$4 sm:$0xff]  }
  0xd1   :  { %1812 = vmatpush1.bf16.msra.mxu0 %v3336_v27  ;;  %1904 = vmatprep.subr.bf16.mxu1 %v3344_v29  ;;  %v3389_v27 = vld [vmem:[#allocation2 + $0x5ec] ss:$16 sps:$4 sm:$0xff]  }
  0xd2   :  { %2390 = vmatprep.subr.bf16.mxu0 %v3440_v35  ;;  %v3392_v29 = vld [vmem:[#allocation2 + $0x60c] ss:$16 sps:$4 sm:$0xff]  }
  0xd3   :  { %1896 = vmatmul.mubr.bf16.vlgmr.msra.gmra.mrb[4].mxu1 %v3652_v19  ;;  %v3441_v19 = vld [vmem:[%s3951_s3 + $0x10] ss:$8 sps:$4 sm:$0xff]   ;;  %v3398_v35 = vld [vmem:[#allocation2 + $0x64c] ss:$16 sps:$4 sm:$0xff]  }
  0xd4   :  { %1814 = vmatmul.mubr.bf16.vlgmr.msra.gmra.mrb[0].mxu0 %v3670_v32  ;;  %1905 = vmatpush1.bf16.msra.mxu1 %v3342_v31  ;;  %v3390_v31 = vld [vmem:[#allocation2 + $0x608] ss:$16 sps:$4 sm:$0xff]  }
  0xd5   :  { %1936 = vmatprep.mubr.bf16.mxu1 %v3655_v23  ;;  %1906 = vmatprep.subr.bf16.mxu1 %v3347_v33  ;;  %v3353_v23 = vld [vmem:[#allocation2 + $0x46c] ss:$16 sps:$4 sm:$0xff]  }
  0xd6   :  { %2391 = vmatpush1.bf16.msra.mxu0 %v3438_v34  ;;  %v3395_v33 = vld [vmem:[#allocation2 + $0x62c] ss:$16 sps:$4 sm:$0xff]   ;;  %v3393_v34 = vld [vmem:[#allocation2 + $0x628] ss:$16 sps:$4 sm:$0xff]  }
  0xd7   :  { %2392 = vmatprep.subr.bf16.mxu0 %v3443_v37  ;;  %v3401_v37 = vld [vmem:[#allocation2 + $0x66c] ss:$16 sps:$4 sm:$0xff]  }
  0xd8   :  { %1907 = vmatpush1.bf16.msra.mxu1 %v3345_v36  ;;  %v3396_v36 = vld [vmem:[#allocation2 + $0x648] ss:$16 sps:$4 sm:$0xff]  }
  0xd9   :  { %1908 = vmatprep.subr.bf16.mxu1 %v3350_v13  ;;  %v3399_v13 = vld [vmem:[#allocation2 + $0x668] ss:$16 sps:$4 sm:$0xff]  }
  0xda   :  { %2393 = vmatpush1.bf16.msra.mxu0 %v3441_v19  ;;  %v3404_v19 = vld [vmem:[#allocation2 + $0x68c] ss:$16 sps:$4 sm:$0xff]  }
  0xdb   :  { %2394 = vmatprep.subr.bf16.mxu0 %v3446_v38  ;;  %v3402_v38 = vld [vmem:[#allocation2 + $0x688] ss:$16 sps:$4 sm:$0xff]  }
  0xdc   :  { %1909 = vmatpush1.bf16.msra.mxu1 %v3348_v39  ;;  %v3407_v39 = vld [vmem:[#allocation2 + $0x6ac] ss:$16 sps:$4 sm:$0xff]  }
  0xdd   :  { %1910 = vmatprep.subr.bf16.mxu1 %v3353_v23  ;;  %v3410_v23 = vld [vmem:[#allocation2 + $0x6cc] ss:$16 sps:$4 sm:$0xff]  }
  0xde   :  { %2395 = vmatpush1.bf16.msra.mxu0 %v3444_v40 }
  0xdf   :  { %2396 = vmatprep.subr.bf16.mxu0 %v3449_v3 }
  0xe0   :  { %1911 = vmatpush1.bf16.msra.mxu1 %v3351_v41  ;;  %v3480_v41 = vld [vmem:[%s3951_s3 + $0xe0] ss:$8 sps:$4 sm:$0xff]  }
  0xe1   :  { %1912 = vmatprep.subr.bf16.mxu1 %v3356_v43 }
  0xe2   :  { %2397 = vmatpush1.bf16.msra.mxu0 %v3447_v44  ;;  %v3408_v44 = vld [vmem:[#allocation2 + $0x6c8] ss:$16 sps:$4 sm:$0xff]  }
  0xe3   :  { %2398 = vmatprep.subr.bf16.mxu0 %v3452_v45 }
  0xe4   :  { %1913 = vmatpush1.bf16.msra.mxu1 %v3354_v46  ;;  %v3413_v46 = vld [vmem:[#allocation2 + $0x6ec] ss:$16 sps:$4 sm:$0xff]  }
  0xe5   :  { %1914 = vmatprep.subr.bf16.mxu1 %v3359_v47  ;;  %v3485_v47 = vld [vmem:[%s3951_s3 + $0xf4] ss:$8 sps:$4 sm:$0xff]  }
  0xe6   :  { %2399 = vmatpush1.bf16.msra.mxu0 %v3450_v48  ;;  %v3483_v48 = vld [vmem:[%s3951_s3 + $0xf0] ss:$8 sps:$4 sm:$0xff]  }
  0xe7   :  { %2400 = vmatprep.subr.bf16.mxu0 %v3455_v49  ;;  %v3411_v49 = vld [vmem:[#allocation2 + $0x6e8] ss:$16 sps:$4 sm:$0xff]  }
  0xe8   :  { %1915 = vmatpush1.bf16.msra.mxu1 %v3357_v50  ;;  %v3416_v50 = vld [vmem:[#allocation2 + $0x70c] ss:$16 sps:$4 sm:$0xff]  }
  0xe9   :  { %1916 = vmatprep.subr.bf16.mxu1 %v3362_v51  ;;  %v3488_v51 = vld [vmem:[%s3951_s3 + $0x104] ss:$8 sps:$4 sm:$0xff]  }
  0xea   :  { %2401 = vmatpush1.bf16.msra.mxu0 %v3453_v52  ;;  %v3414_v52 = vld [vmem:[#allocation2 + $0x708] ss:$16 sps:$4 sm:$0xff]  }
  0xeb   :  { %2402 = vmatprep.subr.bf16.mxu0 %v3458_v53  ;;  %v3419_v53 = vld [vmem:[#allocation2 + $0x72c] ss:$16 sps:$4 sm:$0xff]  }
  0xec   :  { %1917 = vmatpush1.bf16.msra.mxu1 %v3360_v54  ;;  %v3417_v54 = vld [vmem:[#allocation2 + $0x728] ss:$16 sps:$4 sm:$0xff]  }
  0xed   :  { %1918 = vmatprep.subr.bf16.mxu1 %v3365_v55  ;;  %v3422_v55 = vld [vmem:[#allocation2 + $0x74c] ss:$16 sps:$4 sm:$0xff]  }
  0xee   :  { %2403 = vmatpush1.bf16.msra.mxu0 %v3456_v56  ;;  %v3420_v56 = vld [vmem:[#allocation2 + $0x748] ss:$16 sps:$4 sm:$0xff]  }
  0xef   :  { %2404 = vmatprep.subr.bf16.mxu0 %v3461_v57  ;;  %v3425_v57 = vld [vmem:[#allocation2 + $0x76c] ss:$16 sps:$4 sm:$0xff]  }
  0xf0   :  { %1919 = vmatpush1.bf16.msra.mxu1 %v3363_v58  ;;  %v3423_v58 = vld [vmem:[#allocation2 + $0x768] ss:$16 sps:$4 sm:$0xff]  }
  0xf1   :  { %1920 = vmatprep.subr.bf16.mxu1 %v3368_v59  ;;  %v3428_v59 = vld [vmem:[#allocation2 + $0x78c] ss:$16 sps:$4 sm:$0xff]  }
  0xf2   :  { %2405 = vmatpush1.bf16.msra.mxu0 %v3459_v60  ;;  %v3426_v60 = vld [vmem:[#allocation2 + $0x788] ss:$16 sps:$4 sm:$0xff]  }
  0xf3   :  { %2406 = vmatprep.subr.bf16.mxu0 %v3464_v61  ;;  %v3431_v61 = vld [vmem:[#allocation2 + $0x7ac] ss:$16 sps:$4 sm:$0xff]  }
  0xf4   :  { %1921 = vmatpush1.bf16.msra.mxu1 %v3366_v62  ;;  %v3429_v62 = vld [vmem:[#allocation2 + $0x7a8] ss:$16 sps:$4 sm:$0xff]  }
  0xf5   :  { %1922 = vmatprep.subr.bf16.mxu1 %v3371_v0  ;;  %v3434_v0 = vld [vmem:[#allocation2 + $0x7cc] ss:$16 sps:$4 sm:$0xff]  }
  0xf6   :  { %2407 = vmatpush1.bf16.msra.mxu0 %v3462_v1  ;;  %v3432_v1 = vld [vmem:[#allocation2 + $0x7c8] ss:$16 sps:$4 sm:$0xff]  }
  0xf7   :  { %2408 = vmatprep.subr.bf16.mxu0 %v3467_v2  ;;  %v3437_v2 = vld [vmem:[#allocation2 + $0x7ec] ss:$16 sps:$4 sm:$0xff]  }
  0xf8   :  { %1923 = vmatpush1.bf16.msra.mxu1 %v3369_v4  ;;  %v3435_v4 = vld [vmem:[#allocation2 + $0x7e8] ss:$16 sps:$4 sm:$0xff]  }
  0xf9   :  { %1924 = vmatprep.subr.bf16.mxu1 %v3374_v5  ;;  %v302_v5 = vsub.s32 0, %v3630_v42 }
  0xfa   :  { %2409 = vmatpush1.bf16.msra.mxu0 %v3465_v6  ;;  %v3781_v6 = vld [vmem:[%s3950_s2] sm:$0xf] }
  0xfb   :  { %2410 = vmatprep.subr.bf16.mxu0 %v3470_v7  ;;  %v306_v7 = vsub.s32 1, %v3630_v42 }
  0xfc   :  { %1925 = vmatpush1.bf16.msra.mxu1 %v3372_v8  ;;  %v303_v8 = vrot.slane %v3781_v6, %v302_v5 }
  0xfd   :  { %1926 = vmatprep.subr.bf16.mxu1 %v3377_v9  ;;  %v307_v9 = vrot.slane %v3781_v6, %v306_v7 }
  0xfe   :  { %2411 = vmatpush1.bf16.msra.mxu0 %v3468_v10 }
  0xff   :  { %2412 = vmatprep.subr.bf16.mxu0 %v3473_v11 }
 0x100   :  { %1927 = vmatpush1.bf16.msra.mxu1 %v3375_v12 }
 0x101   :  { %1928 = vmatprep.subr.bf16.mxu1 %v3380_v14 }
 0x102   :  { %2413 = vmatpush1.bf16.msra.mxu0 %v3471_v15 }
 0x103   :  { %2414 = vmatprep.subr.bf16.mxu0 %v3476_v16 }
 0x104   :  { %1929 = vmatpush1.bf16.msra.mxu1 %v3378_v17 }
 0x105   :  { %1930 = vmatprep.subr.bf16.mxu1 %v3383_v18 }
 0x106   :  { %2415 = vmatpush1.bf16.msra.mxu0 %v3474_v20 }
 0x107   :  { %2416 = vmatprep.subr.bf16.mxu0 %v3479_v21 }
 0x108   :  { %1931 = vmatpush1.bf16.msra.mxu1 %v3381_v22  ;;  %v3486_v22 = vld [vmem:[%s3951_s3 + $0x100] ss:$8 sps:$4 sm:$0xff]  }
 0x109   :  { %1932 = vmatprep.subr.bf16.mxu1 %v3386_v24 }
 0x10a   :  { %2417 = vmatpush1.bf16.msra.mxu0 %v3477_v25  ;;  %v3491_v25 = vld [vmem:[%s3951_s3 + $0x114] ss:$8 sps:$4 sm:$0xff]  }
 0x10c   :  { %1933 = vmatpush1.bf16.msra.mxu1 %v3384_v26  ;;  %v3534_v26 = vld [vmem:[%s3953_s5 + $0x40] sm:$0xff]  }
 0x10d   :  { %1934 = vmatprep.subr.bf16.mxu1 %v3389_v27  ;;  %v3535_v27 = vld [vmem:[%s3953_s5] sm:$0xff]  }
 0x110   :  { %1935 = vmatpush1.bf16.msra.mxu1 %v3387_v28  ;;  %v3536_v28 = vld [vmem:[%s3953_s5 + $0x48] sm:$0xff]  }
 0x111   :  { %1945 = vmatprep.subr.bf16.mxu1 %v3392_v29  ;;  %v3489_v29 = vld [vmem:[%s3951_s3 + $0x110] ss:$8 sps:$4 sm:$0xff]  }
 0x113   :  { %1937 = vmatmul.mubr.bf16.vlgmr.msra.gmra.mrb[4].mxu1 %v3642_v63  ;;  %v3405_v63 = vld [vmem:[#allocation2 + $0x6a8] ss:$16 sps:$4 sm:$0xff]  }
 0x114   :  { %1946 = vmatpush1.bf16.msra.mxu1 %v3390_v31  ;;  %1977 = vmatprep.mubr.bf16.mxu1 %v3662_v30  ;;  %v3482_v30 = vld [vmem:[%s3951_s3 + $0xe4] ss:$8 sps:$4 sm:$0xff]  }
 0x115   :  { %1947 = vmatprep.subr.bf16.mxu1 %v3395_v33  ;;  %2418 = vmatprep.subr.bf16.mxu0 %v3482_v30  ;;  %v3494_v31 = vld [vmem:[%s3951_s3 + $0x124] ss:$8 sps:$4 sm:$0xff]   ;;  %v3503_v30 = vld [vmem:[%s3951_s3 + $0x154] ss:$8 sps:$4 sm:$0xff]  }
 0x116   :  { %2419 = vmatpush1.bf16.msra.mxu0 %v3480_v41  ;;  %v3537_v33 = vld [vmem:[%s3953_s5 + $0x8] sm:$0xff]  }
 0x117   :  { %2420 = vmatprep.subr.bf16.mxu0 %v3485_v47  ;;  %v3544_v41 = vld [vmem:[%s3953_s5 + $0x68] sm:$0xff]   ;;  %v3507_v47 = vld [vmem:[%s3951_s3 + $0x170] ss:$8 sps:$4 sm:$0xff]  }
 0x118   :  { %1948 = vmatpush1.bf16.msra.mxu1 %v3393_v34  ;;  %v3538_v34 = vld [vmem:[%s3953_s5 + $0x50] sm:$0xff]  }
 0x119   :  { %1949 = vmatprep.subr.bf16.mxu1 %v3398_v35  ;;  %v3492_v35 = vld [vmem:[%s3951_s3 + $0x120] ss:$8 sps:$4 sm:$0xff]  }
 0x11a   :  { %2421 = vmatpush1.bf16.msra.mxu0 %v3483_v48  ;;  %v3512_v48 = vld [vmem:[%s3951_s3 + $0x184] ss:$8 sps:$4 sm:$0xff]  }
 0x11b   :  { %2431 = vmatprep.subr.bf16.mxu0 %v3488_v51  ;;  %v3513_v51 = vld [vmem:[%s3951_s3 + $0x190] ss:$8 sps:$4 sm:$0xff]  }
 0x11c   :  { %1950 = vmatpush1.bf16.msra.mxu1 %v3396_v36  ;;  %v3497_v36 = vld [vmem:[%s3951_s3 + $0x134] ss:$8 sps:$4 sm:$0xff]  }
 0x11d   :  { %1951 = vmatprep.subr.bf16.mxu1 %v3401_v37  ;;  %v3539_v37 = vld [vmem:[%s3953_s5 + $0x10] sm:$0xff]  }
 0x120   :  { %1952 = vmatpush1.bf16.msra.mxu1 %v3399_v13  ;;  %v3540_v13 = vld [vmem:[%s3953_s5 + $0x58] sm:$0xff]  }
 0x121   :  { %1953 = vmatprep.subr.bf16.mxu1 %v3404_v19  ;;  %v3495_v19 = vld [vmem:[%s3951_s3 + $0x130] ss:$8 sps:$4 sm:$0xff]  }
 0x124   :  { %1954 = vmatpush1.bf16.msra.mxu1 %v3402_v38  ;;  %v3500_v38 = vld [vmem:[%s3951_s3 + $0x144] ss:$8 sps:$4 sm:$0xff]  }
 0x125   :  { %1955 = vmatprep.subr.bf16.mxu1 %v3407_v39  ;;  %v3541_v39 = vld [vmem:[%s3953_s5 + $0x18] sm:$0xff]  }
 0x126   :  { %v1692_v40 = vpop.f32.mrb[0].mxu1 }
 0x127   :  { %v1694_v43 = vpop.f32.mrb[1].mxu1  ;;  %v1693_v10 = vadd.f32 %v1692_v40, %v303_v8  ;;  %v3543_v40 = vld [vmem:[%s3953_s5 + $0x20] sm:$0xff]  }
 0x128   :  { %v1696_v3 = vpop.f32.mrb[2].mxu1  ;;  %1956 = vmatpush1.bf16.msra.mxu1 %v3405_v63  ;;  %v1695_v11 = vadd.f32 %v1694_v43, %v307_v9  ;;  %v3542_v63 = vld [vmem:[%s3953_s5 + $0x60] sm:$0xff]   ;;  %v3501_v43 = vld [vmem:[%s3951_s3 + $0x150] ss:$8 sps:$4 sm:$0xff]  }
 0x129   :  { %v1697_v45 = vpop.f32.mrb[3].mxu1  ;;  %1957 = vmatprep.subr.bf16.mxu1 %v3410_v23  ;;  %v3498_v23 = vld [vmem:[%s3951_s3 + $0x140] ss:$8 sps:$4 sm:$0xff]   ;;  %v3506_v3 = vld [vmem:[%s3951_s3 + $0x164] ss:$8 sps:$4 sm:$0xff]  }
 0x12a   :  { %v3504_v45 = vld [vmem:[%s3951_s3 + $0x160] ss:$8 sps:$4 sm:$0xff]  }
 0x12c   :  { %1958 = vmatpush1.bf16.msra.mxu1 %v3408_v44  ;;  %v3545_v44 = vld [vmem:[%s3953_s5 + $0x28] sm:$0xff]  }
 0x12d   :  { %1959 = vmatprep.subr.bf16.mxu1 %v3413_v46  ;;  %v3509_v46 = vld [vmem:[%s3951_s3 + $0x174] ss:$8 sps:$4 sm:$0xff]  }
 0x130   :  { %1960 = vmatpush1.bf16.msra.mxu1 %v3411_v49  ;;  %v3510_v49 = vld [vmem:[%s3951_s3 + $0x180] ss:$8 sps:$4 sm:$0xff]  }
 0x131   :  { %1961 = vmatprep.subr.bf16.mxu1 %v3416_v50  ;;  %v3515_v50 = vld [vmem:[%s3951_s3 + $0x194] ss:$8 sps:$4 sm:$0xff]  }
 0x134   :  { %1962 = vmatpush1.bf16.msra.mxu1 %v3414_v52  ;;  %v3518_v52 = vld [vmem:[%s3951_s3 + $0x1a4] ss:$8 sps:$4 sm:$0xff]  }
 0x135   :  { %1963 = vmatprep.subr.bf16.mxu1 %v3419_v53  ;;  %v3516_v53 = vld [vmem:[%s3951_s3 + $0x1a0] ss:$8 sps:$4 sm:$0xff]  }
 0x138   :  { %1964 = vmatpush1.bf16.msra.mxu1 %v3417_v54  ;;  %v3521_v54 = vld [vmem:[%s3951_s3 + $0x1b4] ss:$8 sps:$4 sm:$0xff]  }
 0x139   :  { %1965 = vmatprep.subr.bf16.mxu1 %v3422_v55  ;;  %v3519_v55 = vld [vmem:[%s3951_s3 + $0x1b0] ss:$8 sps:$4 sm:$0xff]  }
 0x13c   :  { %1966 = vmatpush1.bf16.msra.mxu1 %v3420_v56  ;;  %v3524_v56 = vld [vmem:[%s3951_s3 + $0x1c4] ss:$8 sps:$4 sm:$0xff]  }
 0x13d   :  { %1967 = vmatprep.subr.bf16.mxu1 %v3425_v57  ;;  %v3522_v57 = vld [vmem:[%s3951_s3 + $0x1c0] ss:$8 sps:$4 sm:$0xff]  }
 0x140   :  { %1968 = vmatpush1.bf16.msra.mxu1 %v3423_v58  ;;  %v3527_v58 = vld [vmem:[%s3951_s3 + $0x1d4] ss:$8 sps:$4 sm:$0xff]  }
 0x141   :  { %1969 = vmatprep.subr.bf16.mxu1 %v3428_v59  ;;  %v3525_v59 = vld [vmem:[%s3951_s3 + $0x1d0] ss:$8 sps:$4 sm:$0xff]  }
 0x144   :  { %1970 = vmatpush1.bf16.msra.mxu1 %v3426_v60  ;;  %v3530_v60 = vld [vmem:[%s3951_s3 + $0x1e4] ss:$8 sps:$4 sm:$0xff]  }
 0x145   :  { %1971 = vmatprep.subr.bf16.mxu1 %v3431_v61  ;;  %v3528_v61 = vld [vmem:[%s3951_s3 + $0x1e0] ss:$8 sps:$4 sm:$0xff]  }
 0x148   :  { %1972 = vmatpush1.bf16.msra.mxu1 %v3429_v62  ;;  %v3533_v62 = vld [vmem:[%s3951_s3 + $0x1f4] ss:$8 sps:$4 sm:$0xff]  }
 0x149   :  { %1973 = vmatprep.subr.bf16.mxu1 %v3434_v0  ;;  %v3531_v0 = vld [vmem:[%s3951_s3 + $0x1f0] ss:$8 sps:$4 sm:$0xff]  }
 0x14c   :  { %1974 = vmatpush1.bf16.msra.mxu1 %v3432_v1  ;;  %v310_v1 = vsub.s32 2, %v3630_v42 }
 0x14d   :  { %1975 = vmatprep.subr.bf16.mxu1 %v3437_v2  ;;  %v314_v2 = vsub.s32 3, %v3630_v42 }
 0x14f   :  { %v315_v8 = vrot.slane %v3781_v6, %v314_v2 }
 0x150   :  { %1976 = vmatpush1.bf16.msra.mxu1 %v3435_v4  ;;  %v311_v4 = vrot.slane %v3781_v6, %v310_v1  ;;  %v3547_v6 = vld [vmem:[%s3953_s5 + $0x30] sm:$0xff]  }
 0x151   :  { %2995 = vmatprep.subr.bf16.mxu1 %v3534_v26 }
 0x153   :  { %1978 = vmatmul.mubr.bf16.vlgmr.msra.gmra.mrb[4].mxu1 %v3670_v32 }
 0x154   :  { %2996 = vmatpush3.bf16.msra.mxu1 %v3535_v27 }
 0x155   :  { %2997 = vmatprep.subr.bf16.mxu1 %v3536_v28 }
 0x158   :  { %2998 = vmatpush3.bf16.msra.mxu1 %v3537_v33 }
 0x159   :  { %2999 = vmatprep.subr.bf16.mxu1 %v3538_v34 }
 0x15c   :  { %3000 = vmatpush3.bf16.msra.mxu1 %v3539_v37 }
 0x15d   :  { %3001 = vmatprep.subr.bf16.mxu1 %v3540_v13 }
 0x160   :  { %3002 = vmatpush3.bf16.msra.mxu1 %v3541_v39 }
 0x161   :  { %3003 = vmatprep.subr.bf16.mxu1 %v3542_v63 }
 0x164   :  { %3004 = vmatpush3.bf16.msra.mxu1 %v3543_v40 }
 0x165   :  { %3005 = vmatprep.subr.bf16.mxu1 %v3544_v41 }
 0x168   :  { %3006 = vmatpush3.bf16.msra.mxu1 %v3545_v44 }
 0x1a7   :  { %v1815_v32 = vpop.f32.mrb[0].mxu0 }
 0x1a8   :  { %v3018_v12 = vadd.f32 %v1815_v32, %v1693_v10  ;;  %v1817_v14 = vpop.f32.mrb[1].mxu0 }
 0x1a9   :  { %v3020_v15 = vadd.f32 %v1817_v14, %v1695_v11  ;;  %v1819_v16 = vpop.f32.mrb[2].mxu0 }
 0x1aa   :  { %v1986_v17 = vmax.f32 %v3018_v12, 0.0  ;;  %v1820_v18 = vpop.f32.mrb[3].mxu0 }
 0x1ab   :  { %v1987_v20 = vmax.f32 %v3020_v15, 0.0 }
 0x1ac   :  { %v1990_v24 = vpack.c.bf16 %v1986_v17, %v1986_v17 }
 0x1ad   :  { %v1991_v21 = vpack.c.bf16 %v1987_v20, %v1987_v20  ;;  %v3546_v20 = vld [vmem:[%s3953_s5 + $0x70] sm:$0xff]  }
 0x1ae   :  { %3007 = vmatprep.subr.bf16.mxu1 %v3546_v20 }
 0x1af   :  { %2422 = vmatprep.mubr.bf16.mxu0 %v1991_v21  ;;  %3008 = vmatpush3.bf16.msra.mxu1 %v3547_v6  ;;  %v3548_v21 = vld [vmem:[%s3953_s5 + $0x78] sm:$0xff]  }
 0x1b0   :  { %2423 = vmatmul.mubr.bf16.vlgmr.msra.gmra.mrb[4].mxu0 %v1990_v24  ;;  %3009 = vmatprep.subr.bf16.mxu1 %v3548_v21  ;;  %v2058_v24 = vld [vmem:[%s3952_s4] sm:$0x3] }
 0x1b1   :  { %2432 = vmatpush1.bf16.msra.mxu0 %v3486_v22  ;;  %v3549_v22 = vld [vmem:[%s3953_s5 + $0x38] sm:$0xff]   ;;  %v2067_v26 = vrot.slane %v2058_v24, %v306_v7 }
 0x1b2   :  { %2433 = vmatprep.subr.bf16.mxu0 %v3491_v25  ;;  %v2063_v25 = vrot.slane %v2058_v24, %v302_v5  ;;  %v2978_v5 = vld [vmem:[%s3954_s6] ss:$0 sm:$0xff] }
 0x1b3   :  { %3010 = vmatpush3.bf16.msra.mxu1 %v3549_v22 }
 0x1b5   :  { %2434 = vmatpush1.bf16.msra.mxu0 %v3489_v29 }
 0x1b6   :  { %2435 = vmatprep.subr.bf16.mxu0 %v3494_v31 }
 0x1b9   :  { %2436 = vmatpush1.bf16.msra.mxu0 %v3492_v35 }
 0x1ba   :  { %2437 = vmatprep.subr.bf16.mxu0 %v3497_v36 }
 0x1bd   :  { %2438 = vmatpush1.bf16.msra.mxu0 %v3495_v19 }
 0x1be   :  { %2439 = vmatprep.subr.bf16.mxu0 %v3500_v38 }
 0x1c1   :  { %2440 = vmatpush1.bf16.msra.mxu0 %v3498_v23 }
 0x1c2   :  { %2441 = vmatprep.subr.bf16.mxu0 %v3503_v30 }
 0x1c5   :  { %2442 = vmatpush1.bf16.msra.mxu0 %v3501_v43 }
 0x1c6   :  { %2443 = vmatprep.subr.bf16.mxu0 %v3506_v3 }
 0x1c9   :  { %2444 = vmatpush1.bf16.msra.mxu0 %v3504_v45 }
 0x1ca   :  { %2445 = vmatprep.subr.bf16.mxu0 %v3509_v46 }
 0x1cd   :  { %2446 = vmatpush1.bf16.msra.mxu0 %v3507_v47 }
 0x1ce   :  { %2447 = vmatprep.subr.bf16.mxu0 %v3512_v48 }
 0x1d1   :  { %2448 = vmatpush1.bf16.msra.mxu0 %v3510_v49 }
 0x1d2   :  { %2449 = vmatprep.subr.bf16.mxu0 %v3515_v50 }
 0x1d5   :  { %2450 = vmatpush1.bf16.msra.mxu0 %v3513_v51 }
 0x1d6   :  { %2451 = vmatprep.subr.bf16.mxu0 %v3518_v52 }
 0x1d9   :  { %2452 = vmatpush1.bf16.msra.mxu0 %v3516_v53 }
 0x1da   :  { %2453 = vmatprep.subr.bf16.mxu0 %v3521_v54 }
 0x1dd   :  { %2454 = vmatpush1.bf16.msra.mxu0 %v3519_v55 }
 0x1de   :  { %2455 = vmatprep.subr.bf16.mxu0 %v3524_v56 }
 0x1e1   :  { %2456 = vmatpush1.bf16.msra.mxu0 %v3522_v57 }
 0x1e2   :  { %2457 = vmatprep.subr.bf16.mxu0 %v3527_v58 }
 0x1e5   :  { %2458 = vmatpush1.bf16.msra.mxu0 %v3525_v59 }
 0x1e6   :  { %2459 = vmatprep.subr.bf16.mxu0 %v3530_v60 }
 0x1e9   :  { %2460 = vmatpush1.bf16.msra.mxu0 %v3528_v61 }
 0x1ea   :  { %2461 = vmatprep.subr.bf16.mxu0 %v3533_v62 }
 0x1ed   :  { %2462 = vmatpush1.bf16.msra.mxu0 %v3531_v0 }
 0x226   :  { %v1979_v9 = vpop.f32.mrb[4].mxu1 }
 0x227   :  { %v3021_v10 = vadd.f32 %v1979_v9, %v311_v4  ;;  %v1981_v11 = vpop.f32.mrb[5].mxu1 }
 0x228   :  { %v3022_v32 = vadd.f32 %v1981_v11, %v315_v8  ;;  %v1983_v12 = vpop.f32.mrb[6].mxu1 }
 0x229   :  { %v1988_v14 = vmax.f32 %v3021_v10, 0.0  ;;  %v1984_v15 = vpop.f32.mrb[7].mxu1 }
 0x22a   :  { %v1989_v16 = vmax.f32 %v3022_v32, 0.0 }
 0x22b   :  { %v1992_v18 = vpack.c.bf16 %v1988_v14, %v1988_v14 }
 0x22c   :  { %v1993_v17 = vpack.c.bf16 %v1989_v16, %v1989_v16 }
 0x22e   :  { %2463 = vmatprep.mubr.bf16.mxu0 %v1993_v17 }
 0x22f   :  { %2464 = vmatmul.mubr.bf16.vlgmr.msra.gmra.mrb[4].mxu0 %v1992_v18 }
 0x302   :  { %v2465_v27 = vpop.f32.mrb[4].mxu0 }
 0x303   :  { %v3023_v28 = vadd.f32 %v2465_v27, %v2063_v25  ;;  %v2467_v29 = vpop.f32.mrb[5].mxu0 }
 0x304   :  { %v3024_v31 = vadd.f32 %v2467_v29, %v2067_v26  ;;  %v2469_v33 = vpop.f32.mrb[6].mxu0 }
 0x305   :  { %v2472_v34 = vmax.f32 %v3023_v28, 0.0  ;;  %v2470_v35 = vpop.f32.mrb[7].mxu0 }
 0x306   :  { %v2473_v36 = vmax.f32 %v3024_v31, 0.0 }
 0x307   :  { %v2474_v13 = vpack.c.bf16 %v2472_v34, %v2472_v34 }
 0x308   :  { %v2475_v37 = vpack.c.bf16 %v2473_v36, %v2473_v36 }
 0x30a   :  { %2643 = vmatprep.mubr.bf16.mxu1 %v2475_v37 }
 0x30b   :  { %2644 = vmatmul.mubr.bf16.vlgmr.msra.gmra.mrb[8].mxu1 %v2474_v13 }
 0x3de   :  { %v3011_v19 = vpop.f32.mrb[8].mxu1 }
 0x3df   :  { %v3012_v38 = vpop.f32.mrb[9].mxu1 }
 0x3e0   :  { %v3013_v42 = vadd.f32 %v3012_v38, %v3011_v19  ;;  %v3014_v7 = vpop.f32.mrb[10].mxu1 }
 0x3e1   :  { %v3015_v39 = vpop.f32.mrb[11].mxu1 }
 0x3e2   :  { %v2646_v63 = vadd.f32 %v3013_v42, %v2978_v5 }
 0x3e4   :  { %2652 = vst.msk [vmem:[%s3955_s7] sm:$0x3] %vm2651_vm0, %v2646_v63 }
 0x3e5   :  { %2657 = vsyncpa [#allocation3], 1 }

</bundles_post_ra>
